<compile_context>
chip_gen: v6e
topology: v6e:2x2x1
jax: 0.10.0
libtpu: 0.0.40
codegen_flags: <defaults>
</compile_context>

<pallas_src>
import functools

import jax
import jax.numpy as jnp
from jax.experimental import pallas as pl
from jax.experimental.pallas import tpu as pltpu


# ----------------------------------------------------------------------------
# BlockSpec helpers
# ----------------------------------------------------------------------------
def _row_spec(tile_rows, cols):
    # Row-blocked spec over a 1-D grid.
    return pl.BlockSpec((tile_rows, cols), lambda i: (i, 0))


def _full_spec(shape):
    # Full-array block, resident across all grid iterations.
    nd = len(shape)
    return pl.BlockSpec(shape, lambda i, _nd=nd: (0,) * _nd)


# ----------------------------------------------------------------------------
# Kernel 1: per-edge multi-head attention messages (row-tiled over edges)
# ----------------------------------------------------------------------------
def _attn_edge_kernel(xsrc_ref, xdst_ref, ef_ref,
                      wq_ref, wkv_ref, we_ref, bsel_ref,
                      score_ref, wv_ref, attn_ref, *, inv_sqrt_d, feat):
    xs = xsrc_ref[...].astype(jnp.bfloat16)
    xd = xdst_ref[...].astype(jnp.bfloat16)
    ef = ef_ref[...].astype(jnp.bfloat16)

    # Q / fused-KV / proj_e projections (bf16 inputs, f32 accumulation).
    q = jnp.dot(xs, wq_ref[...], preferred_element_type=jnp.float32)
    kv = jnp.dot(xd, wkv_ref[...], preferred_element_type=jnp.float32)
    pe = jnp.dot(ef, we_ref[...], preferred_element_type=jnp.float32)

    k = kv[:, :feat]
    v = kv[:, feat:]

    # score = Q * K / sqrt(Dh) * proj_e   (TE, F)
    score = (q * k) * inv_sqrt_d * pe

    # Per-head sum over Dh, broadcast back over that head's lanes, in a single
    # (F, F) block-diagonal matmul (kept in f32 for exact reduction).
    sums_b = jnp.dot(score, bsel_ref[...], preferred_element_type=jnp.float32)
    attn_b = jnp.exp(jnp.clip(sums_b, -5.0, 5.0))       # (TE, F), lane-dense

    score_ref[...] = score           # e_attn_out (pre-exp per-edge score)
    wv_ref[...] = v * attn_b         # weighted value messages
    attn_ref[...] = attn_b           # attention weights, broadcast per head


def attn_edge(x_src, x_dst, e_feat, wq_bf16, wkv_bf16, we_bf16, bsel,
              head_dim, *, tile_rows=256):
    E, fin = x_src.shape
    F = wq_bf16.shape[1]
    te = min(tile_rows, E)
    grid = (pl.cdiv(E, te),)
    inv_sqrt_d = 1.0 / float(head_dim) ** 0.5

    kernel = functools.partial(_attn_edge_kernel,
                               inv_sqrt_d=inv_sqrt_d, feat=F)
    return pl.pallas_call(
        kernel,
        grid=grid,
        in_specs=[_row_spec(te, fin), _row_spec(te, fin), _row_spec(te, fin),
                  _full_spec(wq_bf16.shape), _full_spec(wkv_bf16.shape),
                  _full_spec(we_bf16.shape), _full_spec(bsel.shape)],
        out_specs=[_row_spec(te, F), _row_spec(te, F), _row_spec(te, F)],
        out_shape=[jax.ShapeDtypeStruct((E, F), jnp.float32),
                   jax.ShapeDtypeStruct((E, F), jnp.float32),
                   jax.ShapeDtypeStruct((E, F), jnp.float32)],
        compiler_params=pltpu.CompilerParams(
            dimension_semantics=("parallel",)),
    )(x_src, x_dst, e_feat, wq_bf16, wkv_bf16, we_bf16, bsel)


# ----------------------------------------------------------------------------
# Kernels 2-4: post-attention path, row-tiled
#   (a) O projection + residual
#   (b) BN1 affine (precomputed scale/shift) + FFN + residual
#   (c) BN2 affine
# BatchNorm batch statistics are computed as tiny JAX reductions over the full
# row dimension between the tiled calls (so row tiling stays exact).
# ----------------------------------------------------------------------------
def _oproj_res_kernel(x_ref, res_ref, wo_ref, bo_ref, out_ref):
    y = jnp.dot(x_ref[...].astype(jnp.bfloat16), wo_ref[...],
                preferred_element_type=jnp.float32) + bo_ref[...]
    out_ref[...] = res_ref[...] + y


def _bn_ffn_res_kernel(x_ref, scale_ref, shift_ref,
                       w1_ref, b1_ref, w2_ref, b2_ref, out_ref):
    hbn = x_ref[...] * scale_ref[...] + shift_ref[...]
    f = jnp.dot(hbn.astype(jnp.bfloat16), w1_ref[...],
                preferred_element_type=jnp.float32) + b1_ref[...]
    f = jnp.maximum(f, 0.0)
    f = jnp.dot(f.astype(jnp.bfloat16), w2_ref[...],
                preferred_element_type=jnp.float32) + b2_ref[...]
    out_ref[...] = hbn + f


def _affine_kernel(x_ref, scale_ref, shift_ref, out_ref):
    out_ref[...] = x_ref[...] * scale_ref[...] + shift_ref[...]


def _row_tiled_call(kernel, row_inputs, resident_inputs, out_cols,
                    *, tile_rows=512):
    rows = row_inputs[0].shape[0]
    tr = min(tile_rows, rows)
    grid = (pl.cdiv(rows, tr),)
    in_specs = ([_row_spec(tr, a.shape[1]) for a in row_inputs]
                + [_full_spec(a.shape) for a in resident_inputs])
    return pl.pallas_call(
        kernel,
        grid=grid,
        in_specs=in_specs,
        out_specs=_row_spec(tr, out_cols),
        out_shape=jax.ShapeDtypeStruct((rows, out_cols), jnp.float32),
        compiler_params=pltpu.CompilerParams(
            dimension_semantics=("parallel",)),
    )(*row_inputs, *resident_inputs)


def _bn_fold(y, gamma, beta, eps):
    # Training-mode BatchNorm1d: biased batch variance, folded to scale/shift.
    mu = jnp.mean(y, axis=0, keepdims=True)
    var = jnp.mean((y - mu) ** 2, axis=0, keepdims=True)
    scale = gamma * jax.lax.rsqrt(var + eps)
    shift = beta - mu * scale
    return scale.astype(jnp.float32), shift.astype(jnp.float32)


def post_attn(x, res, wo_bf16, bo, g1, be1, w1_bf16, b1, w2_bf16, b2, g2, be2,
              *, eps=1e-5, tile_rows=512):
    F = res.shape[1]
    # (a) O projection + residual
    y1 = _row_tiled_call(_oproj_res_kernel, [x, res], [wo_bf16, bo], F,
                         tile_rows=tile_rows)
    # BN1 batch stats (tiny JAX reduction between tiled Pallas calls)
    scale1, shift1 = _bn_fold(y1, g1, be1, eps)
    # (b) BN1 affine + FFN (Linear-ReLU-Linear) + residual
    y2 = _row_tiled_call(_bn_ffn_res_kernel, [y1],
                         [scale1, shift1, w1_bf16, b1, w2_bf16, b2], F,
                         tile_rows=tile_rows)
    # BN2 batch stats + affine
    scale2, shift2 = _bn_fold(y2, g2, be2, eps)
    out = _row_tiled_call(_affine_kernel, [y2], [scale2, shift2], F,
                          tile_rows=tile_rows)
    return out


# ----------------------------------------------------------------------------
# Full GraphTransformerLayer forward
# ----------------------------------------------------------------------------
def graph_transformer_layer(h, e, edge_index, params, num_heads,
                            *, edge_tile=256, row_tile=512):
    N, _ = h.shape
    F = params["wq"].shape[1]
    head_dim = F // num_heads
    src = edge_index[0]
    dst = edge_index[1]

    # TODO(synk): fold this gather into the attention kernel via scalar-prefetched
    # edge indices (pl.Element / manual DMA gather) to avoid the HBM round trip.
    x_src = h[src]
    x_dst = h[dst]

    score, wv_msg, attn_b = attn_edge(
        x_src, x_dst, e,
        params["wq_bf16"], params["wkv_bf16"], params["we_bf16"],
        params["bsel"], head_dim, tile_rows=edge_tile)

    # scatter-sum aggregation over destination nodes (glue)
    # TODO(synk): with dst-sorted edges this could be fused into a Pallas
    # grouped reduction (MoE-style scalar-prefetch offsets).
    wv_sum = jax.ops.segment_sum(wv_msg, dst, num_segments=N)    # (N, F)
    z_b = jax.ops.segment_sum(attn_b, dst, num_segments=N)       # (N, F)
    h_attn = wv_sum / (z_b + 1e-6)
    e_attn = score

    h_out = post_attn(h_attn, h,
                      params["wo_h_bf16"], params["bo_h"],
                      params["g1_h"], params["be1_h"],
                      params["w1_h_bf16"], params["b1_h"],
                      params["w2_h_bf16"], params["b2_h"],
                      params["g2_h"], params["be2_h"], tile_rows=row_tile)
    e_out = post_attn(e_attn, e,
                      params["wo_e_bf16"], params["bo_e"],
                      params["g1_e"], params["be1_e"],
                      params["w1_e_bf16"], params["b1_e"],
                      params["w2_e_bf16"], params["b2_e"],
                      params["g2_e"], params["be2_e"], tile_rows=row_tile)
    return h_out, e_out


# ----------------------------------------------------------------------------
# Parameter construction
# ----------------------------------------------------------------------------
def init_params(key, in_dim, out_dim):
    ks = jax.random.split(key, 16)
    scale = 0.1

    def w(k, shape):
        return (scale * jax.random.normal(k, shape)).astype(jnp.float32)

    F = out_dim
    params = {
        # attention projections (use_bias=False -> no biases)
        "wq": w(ks[0], (in_dim, F)),
        "wk": w(ks[1], (in_dim, F)),
        "wv": w(ks[2], (in_dim, F)),
        "we": w(ks[3], (in_dim, F)),
        # node path
        "wo_h": w(ks[4], (F, F)), "bo_h": w(ks[5], (1, F)),
        "w1_h": w(ks[6], (F, 2 * F)), "b1_h": w(ks[7], (1, 2 * F)),
        "w2_h": w(ks[8], (2 * F, F)), "b2_h": w(ks[9], (1, F)),
        "g1_h": jnp.ones((1, F), jnp.float32), "be1_h": jnp.zeros((1, F), jnp.float32),
        "g2_h": jnp.ones((1, F), jnp.float32), "be2_h": jnp.zeros((1, F), jnp.float32),
        # edge path
        "wo_e": w(ks[10], (F, F)), "bo_e": w(ks[11], (1, F)),
        "w1_e": w(ks[12], (F, 2 * F)), "b1_e": w(ks[13], (1, 2 * F)),
        "w2_e": w(ks[14], (2 * F, F)), "b2_e": w(ks[15], (1, F)),
        "g1_e": jnp.ones((1, F), jnp.float32), "be1_e": jnp.zeros((1, F), jnp.float32),
        "g2_e": jnp.ones((1, F), jnp.float32), "be2_e": jnp.zeros((1, F), jnp.float32),
    }
    return params


def prepare_params(params, num_heads):
    """Precompute bf16 weights, fused K/V weight, and the block-diagonal
    per-head sum/broadcast matrix."""
    F = params["wq"].shape[1]
    head_dim = F // num_heads
    p = dict(params)
    p["wq_bf16"] = params["wq"].astype(jnp.bfloat16)
    p["wkv_bf16"] = jnp.concatenate([params["wk"], params["wv"]],
                                    axis=1).astype(jnp.bfloat16)
    p["we_bf16"] = params["we"].astype(jnp.bfloat16)
    # Block-diagonal ones (F, F): sums each head's Dh lanes and broadcasts back.
    p["bsel"] = jnp.kron(jnp.eye(num_heads, dtype=jnp.float32),
                         jnp.ones((head_dim, head_dim), dtype=jnp.float32))
    for path in ("h", "e"):
        p[f"wo_{path}_bf16"] = params[f"wo_{path}"].astype(jnp.bfloat16)
        p[f"w1_{path}_bf16"] = params[f"w1_{path}"].astype(jnp.bfloat16)
        p[f"w2_{path}_bf16"] = params[f"w2_{path}"].astype(jnp.bfloat16)
    return p


if __name__ == "__main__":
    # Small but hardware-friendly shapes: 64 nodes, 256 edges, F=128, 4 heads.
    N, E = 64, 256
    in_dim = out_dim = 128
    num_heads = 4

    key = jax.random.PRNGKey(0)
    k_h, k_e, k_p = jax.random.split(key, 3)
    h = jax.random.normal(k_h, (N, in_dim), dtype=jnp.float32)
    e = jax.random.normal(k_e, (E, in_dim), dtype=jnp.float32)

    # deterministic edge_index; dst covers every node so dim_size inference in
    # the reference (index.max()+1 == N) matches.
    dst = jnp.arange(E, dtype=jnp.int32) % N
    src = (3 * jnp.arange(E, dtype=jnp.int32) + 1) % N
    edge_index = jnp.stack([src, dst], axis=0)

    params = prepare_params(init_params(k_p, in_dim, out_dim), num_heads)

    layer = jax.jit(functools.partial(graph_transformer_layer,
                                      num_heads=num_heads))
    h_out, e_out = layer(h, e, edge_index, params)
    jax.block_until_ready((h_out, e_out))
    assert h_out.shape == (N, out_dim) and e_out.shape == (E, out_dim)
    assert bool(jnp.all(jnp.isfinite(h_out))) and bool(jnp.all(jnp.isfinite(e_out)))
    print("KERNEL_OK")
</pallas_src>

<mosaic_0001>
module attributes {stable_mosaic.version = 11 : i64} {
  func.func @_attn_edge_kernel(%arg0: i32, %arg1: memref<256x128xf32, #tpu.memory_space<vmem>>, %arg2: memref<256x128xf32, #tpu.memory_space<vmem>>, %arg3: memref<256x128xf32, #tpu.memory_space<vmem>>, %arg4: memref<128x128xbf16, #tpu.memory_space<vmem>>, %arg5: memref<128x256xbf16, #tpu.memory_space<vmem>>, %arg6: memref<128x128xbf16, #tpu.memory_space<vmem>>, %arg7: memref<128x128xf32, #tpu.memory_space<vmem>>, %arg8: memref<256x128xf32, #tpu.memory_space<vmem>>, %arg9: memref<256x128xf32, #tpu.memory_space<vmem>>, %arg10: memref<256x128xf32, #tpu.memory_space<vmem>>) attributes {dimension_semantics = [#tpu.dimension_semantics<parallel>], iteration_bounds = array<i64: 1>, scalar_prefetch = 0 : i64, scratch_operands = 0 : i64, tpu.core_type = #tpu.core_type<tc>, window_params = [{transform_indices = @transform_0, window_bounds = array<i64: 256, 128>}, {transform_indices = @transform_1, window_bounds = array<i64: 256, 128>}, {transform_indices = @transform_2, window_bounds = array<i64: 256, 128>}, {pipeline_mode = #tpu.pipeline_mode<synchronous>, transform_indices = @transform_3, window_bounds = array<i64: 128, 128>}, {pipeline_mode = #tpu.pipeline_mode<synchronous>, transform_indices = @transform_4, window_bounds = array<i64: 128, 256>}, {pipeline_mode = #tpu.pipeline_mode<synchronous>, transform_indices = @transform_5, window_bounds = array<i64: 128, 128>}, {pipeline_mode = #tpu.pipeline_mode<synchronous>, transform_indices = @transform_6, window_bounds = array<i64: 128, 128>}, {transform_indices = @transform_7, window_bounds = array<i64: 256, 128>}, {transform_indices = @transform_8, window_bounds = array<i64: 256, 128>}, {transform_indices = @transform_9, window_bounds = array<i64: 256, 128>}]} {
    %c0 = arith.constant 0 : index
    %c0_0 = arith.constant 0 : index
    %0 = vector.load %arg1[%c0, %c0_0] : memref<256x128xf32, #tpu.memory_space<vmem>>, vector<256x128xf32>
    %1 = arith.truncf %0 : vector<256x128xf32> to vector<256x128xbf16>
    %c0_1 = arith.constant 0 : index
    %c0_2 = arith.constant 0 : index
    %2 = vector.load %arg2[%c0_1, %c0_2] : memref<256x128xf32, #tpu.memory_space<vmem>>, vector<256x128xf32>
    %3 = arith.truncf %2 : vector<256x128xf32> to vector<256x128xbf16>
    %c0_3 = arith.constant 0 : index
    %c0_4 = arith.constant 0 : index
    %4 = vector.load %arg3[%c0_3, %c0_4] : memref<256x128xf32, #tpu.memory_space<vmem>>, vector<256x128xf32>
    %5 = arith.truncf %4 : vector<256x128xf32> to vector<256x128xbf16>
    %c0_5 = arith.constant 0 : index
    %c0_6 = arith.constant 0 : index
    %6 = vector.load %arg4[%c0_5, %c0_6] : memref<128x128xbf16, #tpu.memory_space<vmem>>, vector<128x128xbf16>
    %cst = arith.constant dense<0.000000e+00> : vector<256x128xf32>
    %7 = tpu.matmul %1, %6, %cst {dimension_numbers = #tpu.dot_dimension_numbers<[1], [0], [0], [1], [0, 0, 1, 1], [], []>} : vector<256x128xbf16>, vector<128x128xbf16>, vector<256x128xf32> -> vector<256x128xf32>
    %c0_7 = arith.constant 0 : index
    %c0_8 = arith.constant 0 : index
    %8 = vector.load %arg5[%c0_7, %c0_8] : memref<128x256xbf16, #tpu.memory_space<vmem>>, vector<128x256xbf16>
    %cst_9 = arith.constant dense<0.000000e+00> : vector<256x256xf32>
    %9 = tpu.matmul %3, %8, %cst_9 {dimension_numbers = #tpu.dot_dimension_numbers<[1], [0], [0], [1], [0, 0, 1, 1], [], []>} : vector<256x128xbf16>, vector<128x256xbf16>, vector<256x256xf32> -> vector<256x256xf32>
    %c0_10 = arith.constant 0 : index
    %c0_11 = arith.constant 0 : index
    %10 = vector.load %arg6[%c0_10, %c0_11] : memref<128x128xbf16, #tpu.memory_space<vmem>>, vector<128x128xbf16>
    %cst_12 = arith.constant dense<0.000000e+00> : vector<256x128xf32>
    %11 = tpu.matmul %5, %10, %cst_12 {dimension_numbers = #tpu.dot_dimension_numbers<[1], [0], [0], [1], [0, 0, 1, 1], [], []>} : vector<256x128xbf16>, vector<128x128xbf16>, vector<256x128xf32> -> vector<256x128xf32>
    %12 = vector.extract_strided_slice %9 {offsets = [0, 0], sizes = [256, 128], strides = [1, 1]} : vector<256x256xf32> to vector<256x128xf32>
    %13 = vector.extract_strided_slice %9 {offsets = [0, 128], sizes = [256, 128], strides = [1, 1]} : vector<256x256xf32> to vector<256x128xf32>
    %14 = arith.mulf %7, %12 : vector<256x128xf32>
    %cst_13 = arith.constant 0.176776692 : f32
    %15 = vector.broadcast %cst_13 : f32 to vector<256x128xf32>
    %16 = arith.mulf %14, %15 : vector<256x128xf32>
    %17 = arith.mulf %16, %11 : vector<256x128xf32>
    %c0_14 = arith.constant 0 : index
    %c0_15 = arith.constant 0 : index
    %18 = vector.load %arg7[%c0_14, %c0_15] : memref<128x128xf32, #tpu.memory_space<vmem>>, vector<128x128xf32>
    %cst_16 = arith.constant dense<0.000000e+00> : vector<256x128xf32>
    %19 = tpu.matmul %17, %18, %cst_16 {dimension_numbers = #tpu.dot_dimension_numbers<[1], [0], [0], [1], [0, 0, 1, 1], [], []>} : vector<256x128xf32>, vector<128x128xf32>, vector<256x128xf32> -> vector<256x128xf32>
    %cst_17 = arith.constant -5.000000e+00 : f32
    %cst_18 = arith.constant 5.000000e+00 : f32
    %20 = vector.broadcast %cst_17 : f32 to vector<256x128xf32>
    %21 = arith.maximumf %20, %19 : vector<256x128xf32>
    %22 = vector.broadcast %cst_18 : f32 to vector<256x128xf32>
    %23 = arith.minimumf %22, %21 : vector<256x128xf32>
    %24 = math.exp %23 : vector<256x128xf32>
    %c0_19 = arith.constant 0 : index
    %c0_20 = arith.constant 0 : index
    %25 = vector.load %arg8[%c0_19, %c0_20] : memref<256x128xf32, #tpu.memory_space<vmem>>, vector<256x128xf32>
    tpu.vector_store %arg8[%c0_19, %c0_20], %17 {strides = array<i32>} : memref<256x128xf32, #tpu.memory_space<vmem>>, vector<256x128xf32>,
    %26 = arith.mulf %13, %24 : vector<256x128xf32>
    %c0_21 = arith.constant 0 : index
    %c0_22 = arith.constant 0 : index
    %27 = vector.load %arg9[%c0_21, %c0_22] : memref<256x128xf32, #tpu.memory_space<vmem>>, vector<256x128xf32>
    tpu.vector_store %arg9[%c0_21, %c0_22], %26 {strides = array<i32>} : memref<256x128xf32, #tpu.memory_space<vmem>>, vector<256x128xf32>,
    %c0_23 = arith.constant 0 : index
    %c0_24 = arith.constant 0 : index
    %28 = vector.load %arg10[%c0_23, %c0_24] : memref<256x128xf32, #tpu.memory_space<vmem>>, vector<256x128xf32>
    tpu.vector_store %arg10[%c0_23, %c0_24], %24 {strides = array<i32>} : memref<256x128xf32, #tpu.memory_space<vmem>>, vector<256x128xf32>,
    return
  }
  func.func @transform_0(%arg0: i32) -> (i32, i32) {
    %c0_i32 = arith.constant 0 : i32
    %c0_i32_0 = arith.constant 0 : i32
    return %arg0, %c0_i32 : i32, i32
  }
  func.func @transform_1(%arg0: i32) -> (i32, i32) {
    %c0_i32 = arith.constant 0 : i32
    %c0_i32_0 = arith.constant 0 : i32
    return %arg0, %c0_i32 : i32, i32
  }
  func.func @transform_2(%arg0: i32) -> (i32, i32) {
    %c0_i32 = arith.constant 0 : i32
    %c0_i32_0 = arith.constant 0 : i32
    return %arg0, %c0_i32 : i32, i32
  }
  func.func @transform_3(%arg0: i32) -> (i32, i32) {
    %c0_i32 = arith.constant 0 : i32
    %c0_i32_0 = arith.constant 0 : i32
    %c0_i32_1 = arith.constant 0 : i32
    return %c0_i32, %c0_i32_0 : i32, i32
  }
  func.func @transform_4(%arg0: i32) -> (i32, i32) {
    %c0_i32 = arith.constant 0 : i32
    %c0_i32_0 = arith.constant 0 : i32
    %c0_i32_1 = arith.constant 0 : i32
    return %c0_i32, %c0_i32_0 : i32, i32
  }
  func.func @transform_5(%arg0: i32) -> (i32, i32) {
    %c0_i32 = arith.constant 0 : i32
    %c0_i32_0 = arith.constant 0 : i32
    %c0_i32_1 = arith.constant 0 : i32
    return %c0_i32, %c0_i32_0 : i32, i32
  }
  func.func @transform_6(%arg0: i32) -> (i32, i32) {
    %c0_i32 = arith.constant 0 : i32
    %c0_i32_0 = arith.constant 0 : i32
    %c0_i32_1 = arith.constant 0 : i32
    return %c0_i32, %c0_i32_0 : i32, i32
  }
  func.func @transform_7(%arg0: i32) -> (i32, i32) {
    %c0_i32 = arith.constant 0 : i32
    %c0_i32_0 = arith.constant 0 : i32
    return %arg0, %c0_i32 : i32, i32
  }
  func.func @transform_8(%arg0: i32) -> (i32, i32) {
    %c0_i32 = arith.constant 0 : i32
    %c0_i32_0 = arith.constant 0 : i32
    return %arg0, %c0_i32 : i32, i32
  }
  func.func @transform_9(%arg0: i32) -> (i32, i32) {
    %c0_i32 = arith.constant 0 : i32
    %c0_i32_0 = arith.constant 0 : i32
    return %arg0, %c0_i32 : i32, i32
  }
}

module attributes {stable_mosaic.version = 11 : i64} {
  func.func @_oproj_res_kernel(%arg0: i32, %arg1: memref<256x128xf32, #tpu.memory_space<vmem>>, %arg2: memref<256x128xf32, #tpu.memory_space<vmem>>, %arg3: memref<128x128xbf16, #tpu.memory_space<vmem>>, %arg4: memref<1x128xf32, #tpu.memory_space<vmem>>, %arg5: memref<256x128xf32, #tpu.memory_space<vmem>>) attributes {dimension_semantics = [#tpu.dimension_semantics<parallel>], iteration_bounds = array<i64: 1>, scalar_prefetch = 0 : i64, scratch_operands = 0 : i64, tpu.core_type = #tpu.core_type<tc>, window_params = [{transform_indices = @transform_0, window_bounds = array<i64: 256, 128>}, {transform_indices = @transform_1, window_bounds = array<i64: 256, 128>}, {pipeline_mode = #tpu.pipeline_mode<synchronous>, transform_indices = @transform_2, window_bounds = array<i64: 128, 128>}, {pipeline_mode = #tpu.pipeline_mode<synchronous>, transform_indices = @transform_3, window_bounds = array<i64: 1, 128>}, {transform_indices = @transform_4, window_bounds = array<i64: 256, 128>}]} {
    %c0 = arith.constant 0 : index
    %c0_0 = arith.constant 0 : index
    %0 = vector.load %arg1[%c0, %c0_0] : memref<256x128xf32, #tpu.memory_space<vmem>>, vector<256x128xf32>
    %1 = arith.truncf %0 : vector<256x128xf32> to vector<256x128xbf16>
    %c0_1 = arith.constant 0 : index
    %c0_2 = arith.constant 0 : index
    %2 = vector.load %arg3[%c0_1, %c0_2] : memref<128x128xbf16, #tpu.memory_space<vmem>>, vector<128x128xbf16>
    %cst = arith.constant dense<0.000000e+00> : vector<256x128xf32>
    %3 = tpu.matmul %1, %2, %cst {dimension_numbers = #tpu.dot_dimension_numbers<[1], [0], [0], [1], [0, 0, 1, 1], [], []>} : vector<256x128xbf16>, vector<128x128xbf16>, vector<256x128xf32> -> vector<256x128xf32>
    %c0_3 = arith.constant 0 : index
    %c0_4 = arith.constant 0 : index
    %4 = vector.load %arg4[%c0_3, %c0_4] : memref<1x128xf32, #tpu.memory_space<vmem>>, vector<1x128xf32>
    %5 = vector.broadcast %4 : vector<1x128xf32> to vector<256x128xf32>
    %6 = arith.addf %3, %5 : vector<256x128xf32>
    %c0_5 = arith.constant 0 : index
    %c0_6 = arith.constant 0 : index
    %7 = vector.load %arg2[%c0_5, %c0_6] : memref<256x128xf32, #tpu.memory_space<vmem>>, vector<256x128xf32>
    %8 = arith.addf %7, %6 : vector<256x128xf32>
    %c0_7 = arith.constant 0 : index
    %c0_8 = arith.constant 0 : index
    %9 = vector.load %arg5[%c0_7, %c0_8] : memref<256x128xf32, #tpu.memory_space<vmem>>, vector<256x128xf32>
    tpu.vector_store %arg5[%c0_7, %c0_8], %8 {strides = array<i32>} : memref<256x128xf32, #tpu.memory_space<vmem>>, vector<256x128xf32>,
    return
  }
  func.func @transform_0(%arg0: i32) -> (i32, i32) {
    %c0_i32 = arith.constant 0 : i32
    %c0_i32_0 = arith.constant 0 : i32
    return %arg0, %c0_i32 : i32, i32
  }
  func.func @transform_1(%arg0: i32) -> (i32, i32) {
    %c0_i32 = arith.constant 0 : i32
    %c0_i32_0 = arith.constant 0 : i32
    return %arg0, %c0_i32 : i32, i32
  }
  func.func @transform_2(%arg0: i32) -> (i32, i32) {
    %c0_i32 = arith.constant 0 : i32
    %c0_i32_0 = arith.constant 0 : i32
    %c0_i32_1 = arith.constant 0 : i32
    return %c0_i32, %c0_i32_0 : i32, i32
  }
  func.func @transform_3(%arg0: i32) -> (i32, i32) {
    %c0_i32 = arith.constant 0 : i32
    %c0_i32_0 = arith.constant 0 : i32
    %c0_i32_1 = arith.constant 0 : i32
    return %c0_i32, %c0_i32_0 : i32, i32
  }
  func.func @transform_4(%arg0: i32) -> (i32, i32) {
    %c0_i32 = arith.constant 0 : i32
    %c0_i32_0 = arith.constant 0 : i32
    return %arg0, %c0_i32 : i32, i32
  }
}

module attributes {stable_mosaic.version = 11 : i64} {
  func.func @_affine_kernel(%arg0: i32, %arg1: memref<256x128xf32, #tpu.memory_space<vmem>>, %arg2: memref<1x128xf32, #tpu.memory_space<vmem>>, %arg3: memref<1x128xf32, #tpu.memory_space<vmem>>, %arg4: memref<256x128xf32, #tpu.memory_space<vmem>>) attributes {dimension_semantics = [#tpu.dimension_semantics<parallel>], iteration_bounds = array<i64: 1>, scalar_prefetch = 0 : i64, scratch_operands = 0 : i64, tpu.core_type = #tpu.core_type<tc>, window_params = [{transform_indices = @transform_0, window_bounds = array<i64: 256, 128>}, {pipeline_mode = #tpu.pipeline_mode<synchronous>, transform_indices = @transform_1, window_bounds = array<i64: 1, 128>}, {pipeline_mode = #tpu.pipeline_mode<synchronous>, transform_indices = @transform_2, window_bounds = array<i64: 1, 128>}, {transform_indices = @transform_3, window_bounds = array<i64: 256, 128>}]} {
    %c0 = arith.constant 0 : index
    %c0_0 = arith.constant 0 : index
    %0 = vector.load %arg1[%c0, %c0_0] : memref<256x128xf32, #tpu.memory_space<vmem>>, vector<256x128xf32>
    %c0_1 = arith.constant 0 : index
    %c0_2 = arith.constant 0 : index
    %1 = vector.load %arg2[%c0_1, %c0_2] : memref<1x128xf32, #tpu.memory_space<vmem>>, vector<1x128xf32>
    %2 = vector.broadcast %1 : vector<1x128xf32> to vector<256x128xf32>
    %3 = arith.mulf %0, %2 : vector<256x128xf32>
    %c0_3 = arith.constant 0 : index
    %c0_4 = arith.constant 0 : index
    %4 = vector.load %arg3[%c0_3, %c0_4] : memref<1x128xf32, #tpu.memory_space<vmem>>, vector<1x128xf32>
    %5 = vector.broadcast %4 : vector<1x128xf32> to vector<256x128xf32>
    %6 = arith.addf %3, %5 : vector<256x128xf32>
    %c0_5 = arith.constant 0 : index
    %c0_6 = arith.constant 0 : index
    %7 = vector.load %arg4[%c0_5, %c0_6] : memref<256x128xf32, #tpu.memory_space<vmem>>, vector<256x128xf32>
    tpu.vector_store %arg4[%c0_5, %c0_6], %6 {strides = array<i32>} : memref<256x128xf32, #tpu.memory_space<vmem>>, vector<256x128xf32>,
    return
  }
  func.func @transform_0(%arg0: i32) -> (i32, i32) {
    %c0_i32 = arith.constant 0 : i32
    %c0_i32_0 = arith.constant 0 : i32
    return %arg0, %c0_i32 : i32, i32
  }
  func.func @transform_1(%arg0: i32) -> (i32, i32) {
    %c0_i32 = arith.constant 0 : i32
    %c0_i32_0 = arith.constant 0 : i32
    %c0_i32_1 = arith.constant 0 : i32
    return %c0_i32, %c0_i32_0 : i32, i32
  }
  func.func @transform_2(%arg0: i32) -> (i32, i32) {
    %c0_i32 = arith.constant 0 : i32
    %c0_i32_0 = arith.constant 0 : i32
    %c0_i32_1 = arith.constant 0 : i32
    return %c0_i32, %c0_i32_0 : i32, i32
  }
  func.func @transform_3(%arg0: i32) -> (i32, i32) {
    %c0_i32 = arith.constant 0 : i32
    %c0_i32_0 = arith.constant 0 : i32
    return %arg0, %c0_i32 : i32, i32
  }
}

module attributes {stable_mosaic.version = 11 : i64} {
  func.func @_bn_ffn_res_kernel(%arg0: i32, %arg1: memref<256x128xf32, #tpu.memory_space<vmem>>, %arg2: memref<1x128xf32, #tpu.memory_space<vmem>>, %arg3: memref<1x128xf32, #tpu.memory_space<vmem>>, %arg4: memref<128x256xbf16, #tpu.memory_space<vmem>>, %arg5: memref<1x256xf32, #tpu.memory_space<vmem>>, %arg6: memref<256x128xbf16, #tpu.memory_space<vmem>>, %arg7: memref<1x128xf32, #tpu.memory_space<vmem>>, %arg8: memref<256x128xf32, #tpu.memory_space<vmem>>) attributes {dimension_semantics = [#tpu.dimension_semantics<parallel>], iteration_bounds = array<i64: 1>, scalar_prefetch = 0 : i64, scratch_operands = 0 : i64, tpu.core_type = #tpu.core_type<tc>, window_params = [{transform_indices = @transform_0, window_bounds = array<i64: 256, 128>}, {pipeline_mode = #tpu.pipeline_mode<synchronous>, transform_indices = @transform_1, window_bounds = array<i64: 1, 128>}, {pipeline_mode = #tpu.pipeline_mode<synchronous>, transform_indices = @transform_2, window_bounds = array<i64: 1, 128>}, {pipeline_mode = #tpu.pipeline_mode<synchronous>, transform_indices = @transform_3, window_bounds = array<i64: 128, 256>}, {pipeline_mode = #tpu.pipeline_mode<synchronous>, transform_indices = @transform_4, window_bounds = array<i64: 1, 256>}, {pipeline_mode = #tpu.pipeline_mode<synchronous>, transform_indices = @transform_5, window_bounds = array<i64: 256, 128>}, {pipeline_mode = #tpu.pipeline_mode<synchronous>, transform_indices = @transform_6, window_bounds = array<i64: 1, 128>}, {transform_indices = @transform_7, window_bounds = array<i64: 256, 128>}]} {
    %c0 = arith.constant 0 : index
    %c0_0 = arith.constant 0 : index
    %0 = vector.load %arg1[%c0, %c0_0] : memref<256x128xf32, #tpu.memory_space<vmem>>, vector<256x128xf32>
    %c0_1 = arith.constant 0 : index
    %c0_2 = arith.constant 0 : index
    %1 = vector.load %arg2[%c0_1, %c0_2] : memref<1x128xf32, #tpu.memory_space<vmem>>, vector<1x128xf32>
    %2 = vector.broadcast %1 : vector<1x128xf32> to vector<256x128xf32>
    %3 = arith.mulf %0, %2 : vector<256x128xf32>
    %c0_3 = arith.constant 0 : index
    %c0_4 = arith.constant 0 : index
    %4 = vector.load %arg3[%c0_3, %c0_4] : memref<1x128xf32, #tpu.memory_space<vmem>>, vector<1x128xf32>
    %5 = vector.broadcast %4 : vector<1x128xf32> to vector<256x128xf32>
    %6 = arith.addf %3, %5 : vector<256x128xf32>
    %7 = arith.truncf %6 : vector<256x128xf32> to vector<256x128xbf16>
    %c0_5 = arith.constant 0 : index
    %c0_6 = arith.constant 0 : index
    %8 = vector.load %arg4[%c0_5, %c0_6] : memref<128x256xbf16, #tpu.memory_space<vmem>>, vector<128x256xbf16>
    %cst = arith.constant dense<0.000000e+00> : vector<256x256xf32>
    %9 = tpu.matmul %7, %8, %cst {dimension_numbers = #tpu.dot_dimension_numbers<[1], [0], [0], [1], [0, 0, 1, 1], [], []>} : vector<256x128xbf16>, vector<128x256xbf16>, vector<256x256xf32> -> vector<256x256xf32>
    %c0_7 = arith.constant 0 : index
    %c0_8 = arith.constant 0 : index
    %10 = vector.load %arg5[%c0_7, %c0_8] : memref<1x256xf32, #tpu.memory_space<vmem>>, vector<1x256xf32>
    %11 = vector.broadcast %10 : vector<1x256xf32> to vector<256x256xf32>
    %12 = arith.addf %9, %11 : vector<256x256xf32>
    %cst_9 = arith.constant 0.000000e+00 : f32
    %13 = vector.broadcast %cst_9 : f32 to vector<256x256xf32>
    %14 = arith.maximumf %12, %13 : vector<256x256xf32>
    %15 = arith.truncf %14 : vector<256x256xf32> to vector<256x256xbf16>
    %c0_10 = arith.constant 0 : index
    %c0_11 = arith.constant 0 : index
    %16 = vector.load %arg6[%c0_10, %c0_11] : memref<256x128xbf16, #tpu.memory_space<vmem>>, vector<256x128xbf16>
    %cst_12 = arith.constant dense<0.000000e+00> : vector<256x128xf32>
    %17 = tpu.matmul %15, %16, %cst_12 {dimension_numbers = #tpu.dot_dimension_numbers<[1], [0], [0], [1], [0, 0, 1, 1], [], []>} : vector<256x256xbf16>, vector<256x128xbf16>, vector<256x128xf32> -> vector<256x128xf32>
    %c0_13 = arith.constant 0 : index
    %c0_14 = arith.constant 0 : index
    %18 = vector.load %arg7[%c0_13, %c0_14] : memref<1x128xf32, #tpu.memory_space<vmem>>, vector<1x128xf32>
    %19 = vector.broadcast %18 : vector<1x128xf32> to vector<256x128xf32>
    %20 = arith.addf %17, %19 : vector<256x128xf32>
    %21 = arith.addf %6, %20 : vector<256x128xf32>
    %c0_15 = arith.constant 0 : index
    %c0_16 = arith.constant 0 : index
    %22 = vector.load %arg8[%c0_15, %c0_16] : memref<256x128xf32, #tpu.memory_space<vmem>>, vector<256x128xf32>
    tpu.vector_store %arg8[%c0_15, %c0_16], %21 {strides = array<i32>} : memref<256x128xf32, #tpu.memory_space<vmem>>, vector<256x128xf32>,
    return
  }
  func.func @transform_0(%arg0: i32) -> (i32, i32) {
    %c0_i32 = arith.constant 0 : i32
    %c0_i32_0 = arith.constant 0 : i32
    return %arg0, %c0_i32 : i32, i32
  }
  func.func @transform_1(%arg0: i32) -> (i32, i32) {
    %c0_i32 = arith.constant 0 : i32
    %c0_i32_0 = arith.constant 0 : i32
    %c0_i32_1 = arith.constant 0 : i32
    return %c0_i32, %c0_i32_0 : i32, i32
  }
  func.func @transform_2(%arg0: i32) -> (i32, i32) {
    %c0_i32 = arith.constant 0 : i32
    %c0_i32_0 = arith.constant 0 : i32
    %c0_i32_1 = arith.constant 0 : i32
    return %c0_i32, %c0_i32_0 : i32, i32
  }
  func.func @transform_3(%arg0: i32) -> (i32, i32) {
    %c0_i32 = arith.constant 0 : i32
    %c0_i32_0 = arith.constant 0 : i32
    %c0_i32_1 = arith.constant 0 : i32
    return %c0_i32, %c0_i32_0 : i32, i32
  }
  func.func @transform_4(%arg0: i32) -> (i32, i32) {
    %c0_i32 = arith.constant 0 : i32
    %c0_i32_0 = arith.constant 0 : i32
    %c0_i32_1 = arith.constant 0 : i32
    return %c0_i32, %c0_i32_0 : i32, i32
  }
  func.func @transform_5(%arg0: i32) -> (i32, i32) {
    %c0_i32 = arith.constant 0 : i32
    %c0_i32_0 = arith.constant 0 : i32
    %c0_i32_1 = arith.constant 0 : i32
    return %c0_i32, %c0_i32_0 : i32, i32
  }
  func.func @transform_6(%arg0: i32) -> (i32, i32) {
    %c0_i32 = arith.constant 0 : i32
    %c0_i32_0 = arith.constant 0 : i32
    %c0_i32_1 = arith.constant 0 : i32
    return %c0_i32, %c0_i32_0 : i32, i32
  }
  func.func @transform_7(%arg0: i32) -> (i32, i32) {
    %c0_i32 = arith.constant 0 : i32
    %c0_i32_0 = arith.constant 0 : i32
    return %arg0, %c0_i32 : i32, i32
  }
}

module attributes {stable_mosaic.version = 11 : i64} {
  func.func @_oproj_res_kernel(%arg0: i32, %arg1: memref<64x128xf32, #tpu.memory_space<vmem>>, %arg2: memref<64x128xf32, #tpu.memory_space<vmem>>, %arg3: memref<128x128xbf16, #tpu.memory_space<vmem>>, %arg4: memref<1x128xf32, #tpu.memory_space<vmem>>, %arg5: memref<64x128xf32, #tpu.memory_space<vmem>>) attributes {dimension_semantics = [#tpu.dimension_semantics<parallel>], iteration_bounds = array<i64: 1>, scalar_prefetch = 0 : i64, scratch_operands = 0 : i64, tpu.core_type = #tpu.core_type<tc>, window_params = [{transform_indices = @transform_0, window_bounds = array<i64: 64, 128>}, {transform_indices = @transform_1, window_bounds = array<i64: 64, 128>}, {pipeline_mode = #tpu.pipeline_mode<synchronous>, transform_indices = @transform_2, window_bounds = array<i64: 128, 128>}, {pipeline_mode = #tpu.pipeline_mode<synchronous>, transform_indices = @transform_3, window_bounds = array<i64: 1, 128>}, {transform_indices = @transform_4, window_bounds = array<i64: 64, 128>}]} {
    %c0 = arith.constant 0 : index
    %c0_0 = arith.constant 0 : index
    %0 = vector.load %arg1[%c0, %c0_0] : memref<64x128xf32, #tpu.memory_space<vmem>>, vector<64x128xf32>
    %1 = arith.truncf %0 : vector<64x128xf32> to vector<64x128xbf16>
    %c0_1 = arith.constant 0 : index
    %c0_2 = arith.constant 0 : index
    %2 = vector.load %arg3[%c0_1, %c0_2] : memref<128x128xbf16, #tpu.memory_space<vmem>>, vector<128x128xbf16>
    %cst = arith.constant dense<0.000000e+00> : vector<64x128xf32>
    %3 = tpu.matmul %1, %2, %cst {dimension_numbers = #tpu.dot_dimension_numbers<[1], [0], [0], [1], [0, 0, 1, 1], [], []>} : vector<64x128xbf16>, vector<128x128xbf16>, vector<64x128xf32> -> vector<64x128xf32>
    %c0_3 = arith.constant 0 : index
    %c0_4 = arith.constant 0 : index
    %4 = vector.load %arg4[%c0_3, %c0_4] : memref<1x128xf32, #tpu.memory_space<vmem>>, vector<1x128xf32>
    %5 = vector.broadcast %4 : vector<1x128xf32> to vector<64x128xf32>
    %6 = arith.addf %3, %5 : vector<64x128xf32>
    %c0_5 = arith.constant 0 : index
    %c0_6 = arith.constant 0 : index
    %7 = vector.load %arg2[%c0_5, %c0_6] : memref<64x128xf32, #tpu.memory_space<vmem>>, vector<64x128xf32>
    %8 = arith.addf %7, %6 : vector<64x128xf32>
    %c0_7 = arith.constant 0 : index
    %c0_8 = arith.constant 0 : index
    %9 = vector.load %arg5[%c0_7, %c0_8] : memref<64x128xf32, #tpu.memory_space<vmem>>, vector<64x128xf32>
    tpu.vector_store %arg5[%c0_7, %c0_8], %8 {strides = array<i32>} : memref<64x128xf32, #tpu.memory_space<vmem>>, vector<64x128xf32>,
    return
  }
  func.func @transform_0(%arg0: i32) -> (i32, i32) {
    %c0_i32 = arith.constant 0 : i32
    %c0_i32_0 = arith.constant 0 : i32
    return %arg0, %c0_i32 : i32, i32
  }
  func.func @transform_1(%arg0: i32) -> (i32, i32) {
    %c0_i32 = arith.constant 0 : i32
    %c0_i32_0 = arith.constant 0 : i32
    return %arg0, %c0_i32 : i32, i32
  }
  func.func @transform_2(%arg0: i32) -> (i32, i32) {
    %c0_i32 = arith.constant 0 : i32
    %c0_i32_0 = arith.constant 0 : i32
    %c0_i32_1 = arith.constant 0 : i32
    return %c0_i32, %c0_i32_0 : i32, i32
  }
  func.func @transform_3(%arg0: i32) -> (i32, i32) {
    %c0_i32 = arith.constant 0 : i32
    %c0_i32_0 = arith.constant 0 : i32
    %c0_i32_1 = arith.constant 0 : i32
    return %c0_i32, %c0_i32_0 : i32, i32
  }
  func.func @transform_4(%arg0: i32) -> (i32, i32) {
    %c0_i32 = arith.constant 0 : i32
    %c0_i32_0 = arith.constant 0 : i32
    return %arg0, %c0_i32 : i32, i32
  }
}

module attributes {stable_mosaic.version = 11 : i64} {
  func.func @_bn_ffn_res_kernel(%arg0: i32, %arg1: memref<64x128xf32, #tpu.memory_space<vmem>>, %arg2: memref<1x128xf32, #tpu.memory_space<vmem>>, %arg3: memref<1x128xf32, #tpu.memory_space<vmem>>, %arg4: memref<128x256xbf16, #tpu.memory_space<vmem>>, %arg5: memref<1x256xf32, #tpu.memory_space<vmem>>, %arg6: memref<256x128xbf16, #tpu.memory_space<vmem>>, %arg7: memref<1x128xf32, #tpu.memory_space<vmem>>, %arg8: memref<64x128xf32, #tpu.memory_space<vmem>>) attributes {dimension_semantics = [#tpu.dimension_semantics<parallel>], iteration_bounds = array<i64: 1>, scalar_prefetch = 0 : i64, scratch_operands = 0 : i64, tpu.core_type = #tpu.core_type<tc>, window_params = [{transform_indices = @transform_0, window_bounds = array<i64: 64, 128>}, {pipeline_mode = #tpu.pipeline_mode<synchronous>, transform_indices = @transform_1, window_bounds = array<i64: 1, 128>}, {pipeline_mode = #tpu.pipeline_mode<synchronous>, transform_indices = @transform_2, window_bounds = array<i64: 1, 128>}, {pipeline_mode = #tpu.pipeline_mode<synchronous>, transform_indices = @transform_3, window_bounds = array<i64: 128, 256>}, {pipeline_mode = #tpu.pipeline_mode<synchronous>, transform_indices = @transform_4, window_bounds = array<i64: 1, 256>}, {pipeline_mode = #tpu.pipeline_mode<synchronous>, transform_indices = @transform_5, window_bounds = array<i64: 256, 128>}, {pipeline_mode = #tpu.pipeline_mode<synchronous>, transform_indices = @transform_6, window_bounds = array<i64: 1, 128>}, {transform_indices = @transform_7, window_bounds = array<i64: 64, 128>}]} {
    %c0 = arith.constant 0 : index
    %c0_0 = arith.constant 0 : index
    %0 = vector.load %arg1[%c0, %c0_0] : memref<64x128xf32, #tpu.memory_space<vmem>>, vector<64x128xf32>
    %c0_1 = arith.constant 0 : index
    %c0_2 = arith.constant 0 : index
    %1 = vector.load %arg2[%c0_1, %c0_2] : memref<1x128xf32, #tpu.memory_space<vmem>>, vector<1x128xf32>
    %2 = vector.broadcast %1 : vector<1x128xf32> to vector<64x128xf32>
    %3 = arith.mulf %0, %2 : vector<64x128xf32>
    %c0_3 = arith.constant 0 : index
    %c0_4 = arith.constant 0 : index
    %4 = vector.load %arg3[%c0_3, %c0_4] : memref<1x128xf32, #tpu.memory_space<vmem>>, vector<1x128xf32>
    %5 = vector.broadcast %4 : vector<1x128xf32> to vector<64x128xf32>
    %6 = arith.addf %3, %5 : vector<64x128xf32>
    %7 = arith.truncf %6 : vector<64x128xf32> to vector<64x128xbf16>
    %c0_5 = arith.constant 0 : index
    %c0_6 = arith.constant 0 : index
    %8 = vector.load %arg4[%c0_5, %c0_6] : memref<128x256xbf16, #tpu.memory_space<vmem>>, vector<128x256xbf16>
    %cst = arith.constant dense<0.000000e+00> : vector<64x256xf32>
    %9 = tpu.matmul %7, %8, %cst {dimension_numbers = #tpu.dot_dimension_numbers<[1], [0], [0], [1], [0, 0, 1, 1], [], []>} : vector<64x128xbf16>, vector<128x256xbf16>, vector<64x256xf32> -> vector<64x256xf32>
    %c0_7 = arith.constant 0 : index
    %c0_8 = arith.constant 0 : index
    %10 = vector.load %arg5[%c0_7, %c0_8] : memref<1x256xf32, #tpu.memory_space<vmem>>, vector<1x256xf32>
    %11 = vector.broadcast %10 : vector<1x256xf32> to vector<64x256xf32>
    %12 = arith.addf %9, %11 : vector<64x256xf32>
    %cst_9 = arith.constant 0.000000e+00 : f32
    %13 = vector.broadcast %cst_9 : f32 to vector<64x256xf32>
    %14 = arith.maximumf %12, %13 : vector<64x256xf32>
    %15 = arith.truncf %14 : vector<64x256xf32> to vector<64x256xbf16>
    %c0_10 = arith.constant 0 : index
    %c0_11 = arith.constant 0 : index
    %16 = vector.load %arg6[%c0_10, %c0_11] : memref<256x128xbf16, #tpu.memory_space<vmem>>, vector<256x128xbf16>
    %cst_12 = arith.constant dense<0.000000e+00> : vector<64x128xf32>
    %17 = tpu.matmul %15, %16, %cst_12 {dimension_numbers = #tpu.dot_dimension_numbers<[1], [0], [0], [1], [0, 0, 1, 1], [], []>} : vector<64x256xbf16>, vector<256x128xbf16>, vector<64x128xf32> -> vector<64x128xf32>
    %c0_13 = arith.constant 0 : index
    %c0_14 = arith.constant 0 : index
    %18 = vector.load %arg7[%c0_13, %c0_14] : memref<1x128xf32, #tpu.memory_space<vmem>>, vector<1x128xf32>
    %19 = vector.broadcast %18 : vector<1x128xf32> to vector<64x128xf32>
    %20 = arith.addf %17, %19 : vector<64x128xf32>
    %21 = arith.addf %6, %20 : vector<64x128xf32>
    %c0_15 = arith.constant 0 : index
    %c0_16 = arith.constant 0 : index
    %22 = vector.load %arg8[%c0_15, %c0_16] : memref<64x128xf32, #tpu.memory_space<vmem>>, vector<64x128xf32>
    tpu.vector_store %arg8[%c0_15, %c0_16], %21 {strides = array<i32>} : memref<64x128xf32, #tpu.memory_space<vmem>>, vector<64x128xf32>,
    return
  }
  func.func @transform_0(%arg0: i32) -> (i32, i32) {
    %c0_i32 = arith.constant 0 : i32
    %c0_i32_0 = arith.constant 0 : i32
    return %arg0, %c0_i32 : i32, i32
  }
  func.func @transform_1(%arg0: i32) -> (i32, i32) {
    %c0_i32 = arith.constant 0 : i32
    %c0_i32_0 = arith.constant 0 : i32
    %c0_i32_1 = arith.constant 0 : i32
    return %c0_i32, %c0_i32_0 : i32, i32
  }
  func.func @transform_2(%arg0: i32) -> (i32, i32) {
    %c0_i32 = arith.constant 0 : i32
    %c0_i32_0 = arith.constant 0 : i32
    %c0_i32_1 = arith.constant 0 : i32
    return %c0_i32, %c0_i32_0 : i32, i32
  }
  func.func @transform_3(%arg0: i32) -> (i32, i32) {
    %c0_i32 = arith.constant 0 : i32
    %c0_i32_0 = arith.constant 0 : i32
    %c0_i32_1 = arith.constant 0 : i32
    return %c0_i32, %c0_i32_0 : i32, i32
  }
  func.func @transform_4(%arg0: i32) -> (i32, i32) {
    %c0_i32 = arith.constant 0 : i32
    %c0_i32_0 = arith.constant 0 : i32
    %c0_i32_1 = arith.constant 0 : i32
    return %c0_i32, %c0_i32_0 : i32, i32
  }
  func.func @transform_5(%arg0: i32) -> (i32, i32) {
    %c0_i32 = arith.constant 0 : i32
    %c0_i32_0 = arith.constant 0 : i32
    %c0_i32_1 = arith.constant 0 : i32
    return %c0_i32, %c0_i32_0 : i32, i32
  }
  func.func @transform_6(%arg0: i32) -> (i32, i32) {
    %c0_i32 = arith.constant 0 : i32
    %c0_i32_0 = arith.constant 0 : i32
    %c0_i32_1 = arith.constant 0 : i32
    return %c0_i32, %c0_i32_0 : i32, i32
  }
  func.func @transform_7(%arg0: i32) -> (i32, i32) {
    %c0_i32 = arith.constant 0 : i32
    %c0_i32_0 = arith.constant 0 : i32
    return %arg0, %c0_i32 : i32, i32
  }
}

module attributes {stable_mosaic.version = 11 : i64} {
  func.func @_affine_kernel(%arg0: i32, %arg1: memref<64x128xf32, #tpu.memory_space<vmem>>, %arg2: memref<1x128xf32, #tpu.memory_space<vmem>>, %arg3: memref<1x128xf32, #tpu.memory_space<vmem>>, %arg4: memref<64x128xf32, #tpu.memory_space<vmem>>) attributes {dimension_semantics = [#tpu.dimension_semantics<parallel>], iteration_bounds = array<i64: 1>, scalar_prefetch = 0 : i64, scratch_operands = 0 : i64, tpu.core_type = #tpu.core_type<tc>, window_params = [{transform_indices = @transform_0, window_bounds = array<i64: 64, 128>}, {pipeline_mode = #tpu.pipeline_mode<synchronous>, transform_indices = @transform_1, window_bounds = array<i64: 1, 128>}, {pipeline_mode = #tpu.pipeline_mode<synchronous>, transform_indices = @transform_2, window_bounds = array<i64: 1, 128>}, {transform_indices = @transform_3, window_bounds = array<i64: 64, 128>}]} {
    %c0 = arith.constant 0 : index
    %c0_0 = arith.constant 0 : index
    %0 = vector.load %arg1[%c0, %c0_0] : memref<64x128xf32, #tpu.memory_space<vmem>>, vector<64x128xf32>
    %c0_1 = arith.constant 0 : index
    %c0_2 = arith.constant 0 : index
    %1 = vector.load %arg2[%c0_1, %c0_2] : memref<1x128xf32, #tpu.memory_space<vmem>>, vector<1x128xf32>
    %2 = vector.broadcast %1 : vector<1x128xf32> to vector<64x128xf32>
    %3 = arith.mulf %0, %2 : vector<64x128xf32>
    %c0_3 = arith.constant 0 : index
    %c0_4 = arith.constant 0 : index
    %4 = vector.load %arg3[%c0_3, %c0_4] : memref<1x128xf32, #tpu.memory_space<vmem>>, vector<1x128xf32>
    %5 = vector.broadcast %4 : vector<1x128xf32> to vector<64x128xf32>
    %6 = arith.addf %3, %5 : vector<64x128xf32>
    %c0_5 = arith.constant 0 : index
    %c0_6 = arith.constant 0 : index
    %7 = vector.load %arg4[%c0_5, %c0_6] : memref<64x128xf32, #tpu.memory_space<vmem>>, vector<64x128xf32>
    tpu.vector_store %arg4[%c0_5, %c0_6], %6 {strides = array<i32>} : memref<64x128xf32, #tpu.memory_space<vmem>>, vector<64x128xf32>,
    return
  }
  func.func @transform_0(%arg0: i32) -> (i32, i32) {
    %c0_i32 = arith.constant 0 : i32
    %c0_i32_0 = arith.constant 0 : i32
    return %arg0, %c0_i32 : i32, i32
  }
  func.func @transform_1(%arg0: i32) -> (i32, i32) {
    %c0_i32 = arith.constant 0 : i32
    %c0_i32_0 = arith.constant 0 : i32
    %c0_i32_1 = arith.constant 0 : i32
    return %c0_i32, %c0_i32_0 : i32, i32
  }
  func.func @transform_2(%arg0: i32) -> (i32, i32) {
    %c0_i32 = arith.constant 0 : i32
    %c0_i32_0 = arith.constant 0 : i32
    %c0_i32_1 = arith.constant 0 : i32
    return %c0_i32, %c0_i32_0 : i32, i32
  }
  func.func @transform_3(%arg0: i32) -> (i32, i32) {
    %c0_i32 = arith.constant 0 : i32
    %c0_i32_0 = arith.constant 0 : i32
    return %arg0, %c0_i32 : i32, i32
  }
}

</mosaic_0001>

<bundles_post_ra>
// kernel: graph_transformer_layer.11
= control target key start
LH: loop header
LB: loop body
LE: loop exit
PB: predicated region body
PF: predicated region fallthrough
CT: control target
= control target key end

     0   :  { %s877_s2 = inlined_call_operand.vmem [shape: bf16[128,128], index: 2, kind: input, shape index: {}]   ;;  %s878_s0 = inlined_call_operand.vmem [shape: f32[256,128], index: 0, kind: input, shape index: {}]   ;;  %s879_s3 = inlined_call_operand.vmem [shape: f32[1,128], index: 3, kind: input, shape index: {}]   ;;  %s880_s1 = inlined_call_operand.vmem [shape: f32[256,128], index: 1, kind: input, shape index: {}]   ;;  %s881_s4 = inlined_call_operand.vmem [shape: f32[256,128], index: 4, kind: output, shape index: {}]  }
   0x1   :  { %v495_v0 = vld [vmem:[%s877_s2 + $0x38] sm:$0xff]   ;;  %v496_v1 = vld [vmem:[%s877_s2 + $0x30] sm:$0xff]   ;;  %v497_v2 = vld [vmem:[%s877_s2 + $0x28] sm:$0xff]  }
   0x2   :  { %431 = vmatprep.subr.bf16.mxu0 %v495_v0  ;;  %479 = vmatprep.subr.bf16.mxu1 %v495_v0  ;;  %v498_v3 = vld [vmem:[%s877_s2 + $0x20] sm:$0xff]   ;;  %v19_v5 = vld [vmem:[%s878_s0 + $0x8] sm:$0xff]  ;;  %v499_v10 = vld [vmem:[%s877_s2 + $0x18] sm:$0xff]  }
   0x3   :  { %432 = vmatpush3.bf16.msra.mxu0 %v495_v0  ;;  %487 = vmatpush3.bf16.msra.mxu1 %v495_v0  ;;  %v18_v4 = vld [vmem:[%s878_s0] sm:$0xff]  ;;  %v35_v8 = vld [vmem:[%s878_s0 + $0x88] sm:$0xff]  ;;  %v500_v11 = vld [vmem:[%s877_s2 + $0x10] sm:$0xff]  }
   0x4   :  { %433 = vmatprep.subr.bf16.mxu0 %v496_v1  ;;  %480 = vmatprep.subr.bf16.mxu1 %v496_v1  ;;  %v34_v6 = vld [vmem:[%s878_s0 + $0x80] sm:$0xff]  ;;  %v50_v7 = vpack.c.bf16 %v19_v5, %v18_v4  ;;  %v501_v12 = vld [vmem:[%s877_s2 + $0x8] sm:$0xff]   ;;  %v20_v14 = vld [vmem:[%s878_s0 + $0x10] sm:$0xff] }
   0x5   :  { %v58_v9 = vpack.c.bf16 %v35_v8, %v34_v6  ;;  %v502_v13 = vld [vmem:[%s877_s2] sm:$0xff]   ;;  %v21_v15 = vld [vmem:[%s878_s0 + $0x18] sm:$0xff]  ;;  %v36_v16 = vld [vmem:[%s878_s0 + $0x90] sm:$0xff] }
   0x6   :  { %447 = vmatprep.mubr.bf16.mxu0 %v50_v7  ;;  %v37_v17 = vld [vmem:[%s878_s0 + $0x98] sm:$0xff]  ;;  %v22_v18 = vld [vmem:[%s878_s0 + $0x20] sm:$0xff]  ;;  %v23_v19 = vld [vmem:[%s878_s0 + $0x28] sm:$0xff]  ;;  %v51_v22 = vpack.c.bf16 %v21_v15, %v20_v14 }
   0x7   :  { %434 = vmatpush3.bf16.msra.mxu0 %v496_v1  ;;  %488 = vmatpush3.bf16.msra.mxu1 %v496_v1  ;;  %v38_v20 = vld [vmem:[%s878_s0 + $0xa0] sm:$0xff]  ;;  %v39_v21 = vld [vmem:[%s878_s0 + $0xa8] sm:$0xff]  ;;  %v59_v23 = vpack.c.bf16 %v37_v17, %v36_v16  ;;  %v52_v24 = vpack.c.bf16 %v23_v19, %v22_v18  ;;  %v24_v26 = vld [vmem:[%s878_s0 + $0x30] sm:$0xff] }
   0x8   :  { %435 = vmatprep.subr.bf16.mxu0 %v497_v2  ;;  %481 = vmatprep.subr.bf16.mxu1 %v497_v2  ;;  %v60_v25 = vpack.c.bf16 %v39_v21, %v38_v20  ;;  %v25_v27 = vld [vmem:[%s878_s0 + $0x38] sm:$0xff]  ;;  %v40_v28 = vld [vmem:[%s878_s0 + $0xb0] sm:$0xff]  ;;  %v26_v30 = vld [vmem:[%s878_s0 + $0x40] sm:$0xff] }
   0x9   :  { %463 = vmatprep.mubr.bf16.mxu1 %v58_v9  ;;  %v41_v29 = vld [vmem:[%s878_s0 + $0xb8] sm:$0xff]  ;;  %v27_v31 = vld [vmem:[%s878_s0 + $0x48] sm:$0xff]  ;;  %v42_v32 = vld [vmem:[%s878_s0 + $0xc0] sm:$0xff]  ;;  %v53_v34 = vpack.c.bf16 %v25_v27, %v24_v26 }
   0xa   :  { %v43_v33 = vld [vmem:[%s878_s0 + $0xc8] sm:$0xff]  ;;  %v61_v35 = vpack.c.bf16 %v41_v29, %v40_v28  ;;  %v54_v36 = vpack.c.bf16 %v27_v31, %v26_v30  ;;  %v28_v38 = vld [vmem:[%s878_s0 + $0x50] sm:$0xff]  ;;  %v29_v39 = vld [vmem:[%s878_s0 + $0x58] sm:$0xff] }
   0xb   :  { %436 = vmatpush3.bf16.msra.mxu0 %v497_v2  ;;  %489 = vmatpush3.bf16.msra.mxu1 %v497_v2  ;;  %v62_v37 = vpack.c.bf16 %v43_v33, %v42_v32  ;;  %v44_v40 = vld [vmem:[%s878_s0 + $0xd0] sm:$0xff]  ;;  %v45_v41 = vld [vmem:[%s878_s0 + $0xd8] sm:$0xff]  ;;  %v30_v42 = vld [vmem:[%s878_s0 + $0x60] sm:$0xff]  ;;  %v55_v46 = vpack.c.bf16 %v29_v39, %v28_v38 }
   0xc   :  { %437 = vmatprep.subr.bf16.mxu0 %v498_v3  ;;  %482 = vmatprep.subr.bf16.mxu1 %v498_v3  ;;  %v31_v43 = vld [vmem:[%s878_s0 + $0x68] sm:$0xff]  ;;  %v46_v44 = vld [vmem:[%s878_s0 + $0xe0] sm:$0xff]  ;;  %v63_v47 = vpack.c.bf16 %v45_v41, %v44_v40  ;;  %v32_v50 = vld [vmem:[%s878_s0 + $0x70] sm:$0xff] }
   0xd   :  { %v47_v45 = vld [vmem:[%s878_s0 + $0xe8] sm:$0xff]  ;;  %v56_v48 = vpack.c.bf16 %v31_v43, %v30_v42  ;;  %v33_v51 = vld [vmem:[%s878_s0 + $0x78] sm:$0xff]  ;;  %v48_v52 = vld [vmem:[%s878_s0 + $0xf0] sm:$0xff] }
   0xe   :  { %v64_v49 = vpack.c.bf16 %v47_v45, %v46_v44  ;;  %v49_v53 = vld [vmem:[%s878_s0 + $0xf8] sm:$0xff]  ;;  %v57_v54 = vpack.c.bf16 %v33_v51, %v32_v50  ;;  %v651_v56 = vld [vmem:[%s879_s3] ss:$0 sm:$0xff]  ;;  %v300_v58 = vld [vmem:[%s880_s1 + $0x10] sm:$0xff] }
   0xf   :  { %438 = vmatpush3.bf16.msra.mxu0 %v498_v3  ;;  %490 = vmatpush3.bf16.msra.mxu1 %v498_v3  ;;  %v65_v55 = vpack.c.bf16 %v49_v53, %v48_v52  ;;  %v316_v60 = vld [vmem:[%s880_s1 + $0x90] sm:$0xff]  ;;  %v298_v0 = vld [vmem:[%s880_s1] sm:$0xff]  ;;  %v301_v8 = vld [vmem:[%s880_s1 + $0x18] sm:$0xff] }
  0x10   :  { %439 = vmatprep.subr.bf16.mxu0 %v499_v10  ;;  %483 = vmatprep.subr.bf16.mxu1 %v499_v10  ;;  %v314_v2 = vld [vmem:[%s880_s1 + $0x80] sm:$0xff]  ;;  %v299_v16 = vld [vmem:[%s880_s1 + $0x8] sm:$0xff]  ;;  %v320_v26 = vld [vmem:[%s880_s1 + $0xb0] sm:$0xff] }
  0x11   :  { %v315_v18 = vld [vmem:[%s880_s1 + $0x88] sm:$0xff]  ;;  %v302_v32 = vld [vmem:[%s880_s1 + $0x20] sm:$0xff]  ;;  %v305_v40 = vld [vmem:[%s880_s1 + $0x38] sm:$0xff] }
  0x12   :  { %v321_v42 = vld [vmem:[%s880_s1 + $0xb8] sm:$0xff]  ;;  %v319_v50 = vld [vmem:[%s880_s1 + $0xa8] sm:$0xff] }
  0x13   :  { %440 = vmatpush3.bf16.msra.mxu0 %v499_v10  ;;  %491 = vmatpush3.bf16.msra.mxu1 %v499_v10  ;;  %v317_v10 = vld [vmem:[%s880_s1 + $0x98] sm:$0xff] }
  0x14   :  { %441 = vmatprep.subr.bf16.mxu0 %v500_v11  ;;  %484 = vmatprep.subr.bf16.mxu1 %v500_v11 }
  0x17   :  { %442 = vmatpush3.bf16.msra.mxu0 %v500_v11  ;;  %492 = vmatpush3.bf16.msra.mxu1 %v500_v11 }
  0x18   :  { %443 = vmatprep.subr.bf16.mxu0 %v501_v12  ;;  %485 = vmatprep.subr.bf16.mxu1 %v501_v12 }
  0x1b   :  { %444 = vmatpush3.bf16.msra.mxu0 %v501_v12  ;;  %493 = vmatpush3.bf16.msra.mxu1 %v501_v12 }
  0x1c   :  { %445 = vmatprep.subr.bf16.mxu0 %v502_v13  ;;  %486 = vmatprep.subr.bf16.mxu1 %v502_v13 }
  0x1f   :  { %446 = vmatpush3.bf16.msra.mxu0 %v502_v13  ;;  %494 = vmatpush3.bf16.msra.mxu1 %v502_v13 }
  0x22   :  { %448 = vmatmul.mubr.bf16.vlgmr.msra.gmra.mxu0 %v51_v22  ;;  %464 = vmatmul.mubr.bf16.vlgmr.msra.gmra.mxu1 %v59_v23 }
  0x23   :  { %451 = vmatprep.mubr.bf16.mxu0 %v52_v24  ;;  %467 = vmatprep.mubr.bf16.mxu1 %v60_v25  ;;  %v304_v24 = vld [vmem:[%s880_s1 + $0x30] sm:$0xff] }
  0x2a   :  { %452 = vmatmul.mubr.bf16.gmra.mxu0 %v53_v34  ;;  %468 = vmatmul.mubr.bf16.gmra.mxu1 %v61_v35  ;;  %v318_v34 = vld [vmem:[%s880_s1 + $0xa0] sm:$0xff] }
  0x2b   :  { %455 = vmatprep.mubr.bf16.mxu0 %v54_v36  ;;  %471 = vmatprep.mubr.bf16.mxu1 %v62_v37 }
  0x32   :  { %456 = vmatmul.mubr.bf16.gmra.mxu0 %v55_v46  ;;  %472 = vmatmul.mubr.bf16.gmra.mxu1 %v63_v47 }
  0x33   :  { %459 = vmatprep.mubr.bf16.mxu0 %v56_v48  ;;  %475 = vmatprep.mubr.bf16.mxu1 %v64_v49  ;;  %v303_v48 = vld [vmem:[%s880_s1 + $0x28] sm:$0xff] }
  0x3a   :  { %460 = vmatmul.mubr.bf16.gmra.mxu0 %v57_v54  ;;  %476 = vmatmul.mubr.bf16.gmra.mxu1 %v65_v55 }
  0xe2   :  { %v449_v57 = vpop.f32.mrf.mxu0  ;;  %v465_v59 = vpop.f32.mrf.mxu1 }
  0xe3   :  { %v180_v61 = vadd.f32 %v449_v57, %v651_v56  ;;  %v244_v62 = vadd.f32 %v465_v59, %v651_v56  ;;  %v308_v57 = vld [vmem:[%s880_s1 + $0x50] sm:$0xff] }
  0xe4   :  { %v171_v63 = vpop.f32.mrf.mxu0  ;;  %v235_v1 = vpop.f32.mrf.mxu1  ;;  %v324_v59 = vld [vmem:[%s880_s1 + $0xd0] sm:$0xff] }
  0xe5   :  { %v332_v3 = vadd.f32 %v300_v58, %v180_v61  ;;  %v348_v4 = vadd.f32 %v316_v60, %v244_v62  ;;  %v172_v5 = vadd.f32 %v651_v56, %v171_v63  ;;  %v236_v6 = vadd.f32 %v651_v56, %v235_v1  ;;  %v306_v1 = vld [vmem:[%s880_s1 + $0x40] sm:$0xff] }
  0xe6   :  { %v450_v7 = vpop.f32.mrf.mxu0  ;;  %v466_v9 = vpop.f32.mrf.mxu1 }
  0xe7   :  { %364 = vst [vmem:[%s881_s4 + $0x10] sm:$0xff] %v332_v3  ;;  %380 = vst [vmem:[%s881_s4 + $0x90] sm:$0xff] %v348_v4  ;;  %v330_v11 = vadd.f32 %v298_v0, %v172_v5  ;;  %v346_v12 = vadd.f32 %v314_v2, %v236_v6  ;;  %v183_v13 = vadd.f32 %v450_v7, %v651_v56  ;;  %v322_v3 = vld [vmem:[%s880_s1 + $0xc0] sm:$0xff] }
  0xe8   :  { %v247_v14 = vadd.f32 %v466_v9, %v651_v56  ;;  %v174_v15 = vpop.f32.mrf.mxu0  ;;  %v238_v17 = vpop.f32.mrf.mxu1  ;;  %v309_v9 = vld [vmem:[%s880_s1 + $0x58] sm:$0xff] }
  0xe9   :  { %362 = vst [vmem:[%s881_s4] sm:$0xff] %v330_v11  ;;  %378 = vst [vmem:[%s881_s4 + $0x80] sm:$0xff] %v346_v12  ;;  %v333_v19 = vadd.f32 %v301_v8, %v183_v13  ;;  %v175_v21 = vadd.f32 %v651_v56, %v174_v15  ;;  %v239_v22 = vadd.f32 %v651_v56, %v238_v17  ;;  %v325_v11 = vld [vmem:[%s880_s1 + $0xd8] sm:$0xff]  ;;  %v307_v17 = vld [vmem:[%s880_s1 + $0x48] sm:$0xff] }
  0xea   :  { %v349_v20 = vadd.f32 %v317_v10, %v247_v14  ;;  %v453_v23 = vpop.f32.mrf.mxu0  ;;  %v469_v25 = vpop.f32.mrf.mxu1 }
  0xeb   :  { %365 = vst [vmem:[%s881_s4 + $0x18] sm:$0xff] %v333_v19  ;;  %v331_v27 = vadd.f32 %v299_v16, %v175_v21  ;;  %v347_v28 = vadd.f32 %v315_v18, %v239_v22  ;;  %v196_v29 = vadd.f32 %v453_v23, %v651_v56  ;;  %v260_v30 = vadd.f32 %v469_v25, %v651_v56  ;;  %v323_v19 = vld [vmem:[%s880_s1 + $0xc8] sm:$0xff]  ;;  %v312_v25 = vld [vmem:[%s880_s1 + $0x70] sm:$0xff] }
  0xec   :  { %381 = vst [vmem:[%s881_s4 + $0x98] sm:$0xff] %v349_v20  ;;  %v187_v31 = vpop.f32.mrf.mxu0  ;;  %v251_v33 = vpop.f32.mrf.mxu1 }
  0xed   :  { %363 = vst [vmem:[%s881_s4 + $0x8] sm:$0xff] %v331_v27  ;;  %379 = vst [vmem:[%s881_s4 + $0x88] sm:$0xff] %v347_v28  ;;  %v336_v35 = vadd.f32 %v304_v24, %v196_v29  ;;  %v352_v36 = vadd.f32 %v320_v26, %v260_v30  ;;  %v188_v37 = vadd.f32 %v651_v56, %v187_v31  ;;  %v328_v27 = vld [vmem:[%s880_s1 + $0xf0] sm:$0xff] }
  0xee   :  { %v252_v38 = vadd.f32 %v651_v56, %v251_v33  ;;  %v454_v39 = vpop.f32.mrf.mxu0  ;;  %v470_v41 = vpop.f32.mrf.mxu1  ;;  %v310_v33 = vld [vmem:[%s880_s1 + $0x60] sm:$0xff] }
  0xef   :  { %368 = vst [vmem:[%s881_s4 + $0x30] sm:$0xff] %v336_v35  ;;  %384 = vst [vmem:[%s881_s4 + $0xb0] sm:$0xff] %v352_v36  ;;  %v334_v43 = vadd.f32 %v302_v32, %v188_v37  ;;  %v199_v45 = vadd.f32 %v454_v39, %v651_v56  ;;  %v263_v46 = vadd.f32 %v470_v41, %v651_v56  ;;  %v326_v35 = vld [vmem:[%s880_s1 + $0xe0] sm:$0xff]  ;;  %v313_v41 = vld [vmem:[%s880_s1 + $0x78] sm:$0xff] }
  0xf0   :  { %v350_v44 = vadd.f32 %v318_v34, %v252_v38  ;;  %v190_v47 = vpop.f32.mrf.mxu0  ;;  %v254_v49 = vpop.f32.mrf.mxu1 }
  0xf1   :  { %366 = vst [vmem:[%s881_s4 + $0x20] sm:$0xff] %v334_v43  ;;  %v337_v51 = vadd.f32 %v305_v40, %v199_v45  ;;  %v353_v52 = vadd.f32 %v321_v42, %v263_v46  ;;  %v191_v53 = vadd.f32 %v651_v56, %v190_v47  ;;  %v255_v54 = vadd.f32 %v651_v56, %v254_v49  ;;  %v329_v43 = vld [vmem:[%s880_s1 + $0xf8] sm:$0xff]  ;;  %v311_v49 = vld [vmem:[%s880_s1 + $0x68] sm:$0xff] }
  0xf2   :  { %382 = vst [vmem:[%s881_s4 + $0xa0] sm:$0xff] %v350_v44  ;;  %v457_v55 = vpop.f32.mrf.mxu0  ;;  %v473_v58 = vpop.f32.mrf.mxu1 }
  0xf3   :  { %369 = vst [vmem:[%s881_s4 + $0x38] sm:$0xff] %v337_v51  ;;  %385 = vst [vmem:[%s881_s4 + $0xb8] sm:$0xff] %v353_v52  ;;  %v335_v60 = vadd.f32 %v303_v48, %v191_v53  ;;  %v351_v61 = vadd.f32 %v319_v50, %v255_v54  ;;  %v212_v62 = vadd.f32 %v457_v55, %v651_v56  ;;  %v327_v51 = vld [vmem:[%s880_s1 + $0xe8] sm:$0xff] }
  0xf4   :  { %v276_v63 = vadd.f32 %v473_v58, %v651_v56  ;;  %v203_v0 = vpop.f32.mrf.mxu0  ;;  %v267_v2 = vpop.f32.mrf.mxu1 }
  0xf5   :  { %367 = vst [vmem:[%s881_s4 + $0x28] sm:$0xff] %v335_v60  ;;  %383 = vst [vmem:[%s881_s4 + $0xa8] sm:$0xff] %v351_v61  ;;  %v340_v4 = vadd.f32 %v308_v57, %v212_v62  ;;  %v204_v6 = vadd.f32 %v651_v56, %v203_v0  ;;  %v268_v7 = vadd.f32 %v651_v56, %v267_v2 }
  0xf6   :  { %v356_v5 = vadd.f32 %v324_v59, %v276_v63  ;;  %v458_v8 = vpop.f32.mrf.mxu0  ;;  %v474_v10 = vpop.f32.mrf.mxu1 }
  0xf7   :  { %372 = vst [vmem:[%s881_s4 + $0x50] sm:$0xff] %v340_v4  ;;  %v338_v12 = vadd.f32 %v306_v1, %v204_v6  ;;  %v354_v13 = vadd.f32 %v322_v3, %v268_v7  ;;  %v215_v14 = vadd.f32 %v458_v8, %v651_v56  ;;  %v279_v15 = vadd.f32 %v474_v10, %v651_v56 }
  0xf8   :  { %388 = vst [vmem:[%s881_s4 + $0xd0] sm:$0xff] %v356_v5  ;;  %v206_v16 = vpop.f32.mrf.mxu0  ;;  %v270_v18 = vpop.f32.mrf.mxu1 }
  0xf9   :  { %370 = vst [vmem:[%s881_s4 + $0x40] sm:$0xff] %v338_v12  ;;  %386 = vst [vmem:[%s881_s4 + $0xc0] sm:$0xff] %v354_v13  ;;  %v341_v20 = vadd.f32 %v309_v9, %v215_v14  ;;  %v357_v21 = vadd.f32 %v325_v11, %v279_v15  ;;  %v207_v22 = vadd.f32 %v651_v56, %v206_v16 }
  0xfa   :  { %v271_v23 = vadd.f32 %v651_v56, %v270_v18  ;;  %v461_v24 = vpop.f32.mrf.mxu0  ;;  %v477_v26 = vpop.f32.mrf.mxu1 }
  0xfb   :  { %373 = vst [vmem:[%s881_s4 + $0x58] sm:$0xff] %v341_v20  ;;  %389 = vst [vmem:[%s881_s4 + $0xd8] sm:$0xff] %v357_v21  ;;  %v339_v28 = vadd.f32 %v307_v17, %v207_v22  ;;  %v228_v30 = vadd.f32 %v461_v24, %v651_v56  ;;  %v292_v31 = vadd.f32 %v477_v26, %v651_v56 }
  0xfc   :  { %v355_v29 = vadd.f32 %v323_v19, %v271_v23  ;;  %v219_v32 = vpop.f32.mrf.mxu0  ;;  %v283_v34 = vpop.f32.mrf.mxu1 }
  0xfd   :  { %371 = vst [vmem:[%s881_s4 + $0x48] sm:$0xff] %v339_v28  ;;  %v344_v36 = vadd.f32 %v312_v25, %v228_v30  ;;  %v360_v37 = vadd.f32 %v328_v27, %v292_v31  ;;  %v220_v38 = vadd.f32 %v651_v56, %v219_v32  ;;  %v284_v39 = vadd.f32 %v651_v56, %v283_v34 }
  0xfe   :  { %387 = vst [vmem:[%s881_s4 + $0xc8] sm:$0xff] %v355_v29  ;;  %v462_v40 = vpop.f32.mrf.mxu0  ;;  %v478_v42 = vpop.f32.mrf.mxu1 }
  0xff   :  { %376 = vst [vmem:[%s881_s4 + $0x70] sm:$0xff] %v344_v36  ;;  %392 = vst [vmem:[%s881_s4 + $0xf0] sm:$0xff] %v360_v37  ;;  %v342_v44 = vadd.f32 %v310_v33, %v220_v38  ;;  %v358_v45 = vadd.f32 %v326_v35, %v284_v39  ;;  %v231_v46 = vadd.f32 %v462_v40, %v651_v56 }
 0x100   :  { %v295_v47 = vadd.f32 %v478_v42, %v651_v56  ;;  %v222_v48 = vpop.f32.mrf.mxu0  ;;  %v286_v50 = vpop.f32.mrf.mxu1 }
 0x101   :  { %374 = vst [vmem:[%s881_s4 + $0x60] sm:$0xff] %v342_v44  ;;  %390 = vst [vmem:[%s881_s4 + $0xe0] sm:$0xff] %v358_v45  ;;  %v345_v52 = vadd.f32 %v313_v41, %v231_v46  ;;  %v223_v54 = vadd.f32 %v651_v56, %v222_v48  ;;  %v287_v55 = vadd.f32 %v651_v56, %v286_v50 }
 0x102   :  { %v361_v53 = vadd.f32 %v329_v43, %v295_v47 }
 0x103   :  { %377 = vst [vmem:[%s881_s4 + $0x78] sm:$0xff] %v345_v52  ;;  %v343_v57 = vadd.f32 %v311_v49, %v223_v54  ;;  %v359_v58 = vadd.f32 %v327_v51, %v287_v55 }
 0x104   :  { %393 = vst [vmem:[%s881_s4 + $0xf8] sm:$0xff] %v361_v53 }
 0x105   :  { %375 = vst [vmem:[%s881_s4 + $0x68] sm:$0xff] %v343_v57  ;;  %391 = vst [vmem:[%s881_s4 + $0xe8] sm:$0xff] %v359_v58 }

// kernel: graph_transformer_layer.13
= control target key start
LH: loop header
LB: loop body
LE: loop exit
PB: predicated region body
PF: predicated region fallthrough
CT: control target
= control target key end

     0   :  { %s396_s0 = inlined_call_operand.vmem [shape: f32[256,128], index: 0, kind: input, shape index: {}]   ;;  %s397_s1 = inlined_call_operand.vmem [shape: f32[1,128], index: 1, kind: input, shape index: {}]   ;;  %s398_s2 = inlined_call_operand.vmem [shape: f32[1,128], index: 2, kind: input, shape index: {}]   ;;  %s399_s3 = inlined_call_operand.hbm [shape: f32[256,128], index: 3, kind: output, shape index: {}]  }
   0x1   :  { %v15_v0 = vld [vmem:[%s396_s0] sm:$0xff]  ;;  %v16_v4 = vld [vmem:[%s396_s0 + $0x8] sm:$0xff]  ;;  %v17_v5 = vld [vmem:[%s396_s0 + $0x10] sm:$0xff] }
   0x2   :  { %v229_v1 = vld [vmem:[%s397_s1] ss:$0 sm:$0xff]  ;;  %v18_v6 = vld [vmem:[%s396_s0 + $0x18] sm:$0xff]  ;;  %v20_v11 = vld [vmem:[%s396_s0 + $0x28] sm:$0xff] }
   0x3   :  { %v234_v2 = vld [vmem:[%s398_s2] ss:$0 sm:$0xff]  ;;  %v54_v3 = vmul.f32 %v229_v1, %v15_v0  ;;  %v55_v7 = vmul.f32 %v229_v1, %v16_v4  ;;  %v56_v8 = vmul.f32 %v229_v1, %v17_v5  ;;  %v57_v9 = vmul.f32 %v229_v1, %v18_v6  ;;  %v21_v12 = vld [vmem:[%s396_s0 + $0x30] sm:$0xff]  ;;  %v22_v17 = vld [vmem:[%s396_s0 + $0x38] sm:$0xff] }
   0x4   :  { %v19_v10 = vld [vmem:[%s396_s0 + $0x20] sm:$0xff]  ;;  %v59_v15 = vmul.f32 %v229_v1, %v20_v11  ;;  %v60_v16 = vmul.f32 %v229_v1, %v21_v12  ;;  %v24_v19 = vld [vmem:[%s396_s0 + $0x48] sm:$0xff]  ;;  %v61_v23 = vmul.f32 %v229_v1, %v22_v17  ;;  %v25_v24 = vld [vmem:[%s396_s0 + $0x50] sm:$0xff] }
   0x5   :  { %v93_v13 = vadd.f32 %v234_v2, %v54_v3  ;;  %v58_v14 = vmul.f32 %v229_v1, %v19_v10  ;;  %v23_v18 = vld [vmem:[%s396_s0 + $0x40] sm:$0xff]  ;;  %v94_v20 = vadd.f32 %v234_v2, %v55_v7  ;;  %v95_v21 = vadd.f32 %v234_v2, %v56_v8  ;;  %v26_v25 = vld [vmem:[%s396_s0 + $0x58] sm:$0xff]  ;;  %v28_v31 = vld [vmem:[%s396_s0 + $0x68] sm:$0xff] }
   0x6   :  { %v96_v22 = vadd.f32 %v234_v2, %v57_v9  ;;  %v27_v26 = vld [vmem:[%s396_s0 + $0x60] sm:$0xff]  ;;  %v98_v28 = vadd.f32 %v234_v2, %v59_v15  ;;  %v99_v29 = vadd.f32 %v234_v2, %v60_v16  ;;  %v62_v30 = vmul.f32 %v229_v1, %v23_v18  ;;  %v29_v32 = vld [vmem:[%s396_s0 + $0x70] sm:$0xff]  ;;  %v30_v33 = vld [vmem:[%s396_s0 + $0x78] sm:$0xff] }
   0x7   :  { %125 = vst [vmem:[#allocation2] sm:$0xff] %v93_v13  ;;  %v97_v27 = vadd.f32 %v234_v2, %v58_v14  ;;  %126 = vst [vmem:[#allocation2 + $0x8] sm:$0xff] %v94_v20  ;;  %v100_v34 = vadd.f32 %v234_v2, %v61_v23  ;;  %v63_v35 = vmul.f32 %v229_v1, %v24_v19  ;;  %v31_v38 = vld [vmem:[%s396_s0 + $0x80] sm:$0xff]  ;;  %v32_v43 = vld [vmem:[%s396_s0 + $0x88] sm:$0xff] }
   0x8   :  { %127 = vst [vmem:[#allocation2 + $0x10] sm:$0xff] %v95_v21  ;;  %128 = vst [vmem:[#allocation2 + $0x18] sm:$0xff] %v96_v22  ;;  %v64_v36 = vmul.f32 %v229_v1, %v25_v24  ;;  %v65_v37 = vmul.f32 %v229_v1, %v26_v25  ;;  %v101_v39 = vadd.f32 %v234_v2, %v62_v30  ;;  %v33_v44 = vld [vmem:[%s396_s0 + $0x90] sm:$0xff]  ;;  %v34_v45 = vld [vmem:[%s396_s0 + $0x98] sm:$0xff] }
   0x9   :  { %129 = vst [vmem:[#allocation2 + $0x20] sm:$0xff] %v97_v27  ;;  %130 = vst [vmem:[#allocation2 + $0x28] sm:$0xff] %v98_v28  ;;  %v66_v40 = vmul.f32 %v229_v1, %v27_v26  ;;  %v67_v41 = vmul.f32 %v229_v1, %v28_v31  ;;  %v68_v42 = vmul.f32 %v229_v1, %v29_v32  ;;  %v35_v50 = vld [vmem:[%s396_s0 + $0xa0] sm:$0xff]  ;;  %v36_v51 = vld [vmem:[%s396_s0 + $0xa8] sm:$0xff] }
   0xa   :  { %131 = vst [vmem:[#allocation2 + $0x30] sm:$0xff] %v99_v29  ;;  %132 = vst [vmem:[#allocation2 + $0x38] sm:$0xff] %v100_v34  ;;  %v102_v46 = vadd.f32 %v234_v2, %v63_v35  ;;  %v103_v47 = vadd.f32 %v234_v2, %v64_v36  ;;  %v104_v48 = vadd.f32 %v234_v2, %v65_v37  ;;  %v37_v52 = vld [vmem:[%s396_s0 + $0xb0] sm:$0xff]  ;;  %v38_v57 = vld [vmem:[%s396_s0 + $0xb8] sm:$0xff] }
   0xb   :  { %v69_v49 = vmul.f32 %v229_v1, %v30_v33  ;;  %133 = vst [vmem:[#allocation2 + $0x40] sm:$0xff] %v101_v39  ;;  %v105_v53 = vadd.f32 %v234_v2, %v66_v40  ;;  %v106_v54 = vadd.f32 %v234_v2, %v67_v41  ;;  %v107_v55 = vadd.f32 %v234_v2, %v68_v42  ;;  %v39_v62 = vld [vmem:[%s396_s0 + $0xc0] sm:$0xff]  ;;  %v40_v63 = vld [vmem:[%s396_s0 + $0xc8] sm:$0xff]  ;;  %v41_v6 = vld [vmem:[%s396_s0 + $0xd0] sm:$0xff] }
   0xc   :  { %v70_v56 = vmul.f32 %v229_v1, %v31_v38  ;;  %134 = vst [vmem:[#allocation2 + $0x48] sm:$0xff] %v102_v46  ;;  %135 = vst [vmem:[#allocation2 + $0x50] sm:$0xff] %v103_v47  ;;  %v71_v59 = vmul.f32 %v229_v1, %v32_v43  ;;  %v72_v60 = vmul.f32 %v229_v1, %v33_v44  ;;  %v42_v7 = vld [vmem:[%s396_s0 + $0xd8] sm:$0xff] }
   0xd   :  { %136 = vst [vmem:[#allocation2 + $0x58] sm:$0xff] %v104_v48  ;;  %v108_v58 = vadd.f32 %v234_v2, %v69_v49  ;;  %v73_v61 = vmul.f32 %v229_v1, %v34_v45  ;;  %137 = vst [vmem:[#allocation2 + $0x60] sm:$0xff] %v105_v53  ;;  %v74_v3 = vmul.f32 %v229_v1, %v35_v50 }
   0xe   :  { %138 = vst [vmem:[#allocation2 + $0x68] sm:$0xff] %v106_v54  ;;  %139 = vst [vmem:[#allocation2 + $0x70] sm:$0xff] %v107_v55  ;;  %v109_v0 = vadd.f32 %v234_v2, %v70_v56  ;;  %v75_v4 = vmul.f32 %v229_v1, %v36_v51  ;;  %v76_v5 = vmul.f32 %v229_v1, %v37_v52 }
   0xf   :  { %8 = vsyncpa [#allocation3], 0  ;;  %140 = vst [vmem:[#allocation2 + $0x78] sm:$0xff] %v108_v58  ;;  %v110_v8 = vadd.f32 %v234_v2, %v71_v59  ;;  %v111_v9 = vadd.f32 %v234_v2, %v72_v60  ;;  %v112_v10 = vadd.f32 %v234_v2, %v73_v61  ;;  %v77_v11 = vmul.f32 %v229_v1, %v38_v57  ;;  %v43_v12 = vld [vmem:[%s396_s0 + $0xe0] sm:$0xff]  ;;  %v44_v13 = vld [vmem:[%s396_s0 + $0xe8] sm:$0xff] }
  0x10   :  { %v45_v14 = vld [vmem:[%s396_s0 + $0xf0] sm:$0xff]  ;;  %141 = vst [vmem:[#allocation2 + $0x80] sm:$0xff] %v109_v0  ;;  %v113_v15 = vadd.f32 %v234_v2, %v74_v3  ;;  %v114_v16 = vadd.f32 %v234_v2, %v75_v4  ;;  %v115_v17 = vadd.f32 %v234_v2, %v76_v5  ;;  %v78_v18 = vmul.f32 %v229_v1, %v39_v62  ;;  %v46_v19 = vld [vmem:[%s396_s0 + $0xf8] sm:$0xff]  ;;  %s200_s0 = smov [#allocation2]  }
  0x11   :  { %142 = vst [vmem:[#allocation2 + $0x88] sm:$0xff] %v110_v8  ;;  %143 = vst [vmem:[#allocation2 + $0x90] sm:$0xff] %v111_v9  ;;  %v116_v20 = vadd.f32 %v234_v2, %v77_v11  ;;  %v79_v21 = vmul.f32 %v229_v1, %v40_v63  ;;  %v80_v22 = vmul.f32 %v229_v1, %v41_v6  ;;  %s162_s22 = sshll.u32 %s200_s0, 4  ;;  %s163_s22 = int_to_ptr.vmem [resolvable:$true] %s162_s22 }
  0x12   :  { %144 = vst [vmem:[#allocation2 + $0x98] sm:$0xff] %v112_v10  ;;  %v81_v23 = vmul.f32 %v229_v1, %v42_v7  ;;  %145 = vst [vmem:[#allocation2 + $0xa0] sm:$0xff] %v113_v15  ;;  %v117_v24 = vadd.f32 %v234_v2, %v78_v18  ;;  %v82_v25 = vmul.f32 %v229_v1, %v43_v12  ;;  %s178_s23 = scalar_lea.vmem %s163_s22, 4096  ;;  %p183_p1 = scmp.lt.s32.totalorder %s163_s22, %s163_s22 }
  0x13   :  { %146 = vst [vmem:[#allocation2 + $0xa8] sm:$0xff] %v114_v16  ;;  %147 = vst [vmem:[#allocation2 + $0xb0] sm:$0xff] %v115_v17  ;;  %v83_v26 = vmul.f32 %v229_v1, %v44_v13  ;;  %v84_v27 = vmul.f32 %v229_v1, %v45_v14  ;;  %v118_v28 = vadd.f32 %v234_v2, %v79_v21  ;;  %p179_p0 = scmp.ne.s32.totalorder %s163_s22, %s178_s23  ;;  %p184_p2 = scmp.lt.s32.totalorder %s178_s23, %s178_s23 }
  0x14   :  { %148 = vst [vmem:[#allocation2 + $0xb8] sm:$0xff] %v116_v20  ;;  %v119_v29 = vadd.f32 %v234_v2, %v80_v22  ;;  %v120_v30 = vadd.f32 %v234_v2, %v81_v23  ;;  %v85_v31 = vmul.f32 %v229_v1, %v46_v19  ;;  %149 = vst [vmem:[#allocation2 + $0xc0] sm:$0xff] %v117_v24 }
  0x15   :  { %v121_v32 = vadd.f32 %v234_v2, %v82_v25  ;;  %v122_v33 = vadd.f32 %v234_v2, %v83_v26  ;;  %v123_v34 = vadd.f32 %v234_v2, %v84_v27  ;;  %150 = vst [vmem:[#allocation2 + $0xc8] sm:$0xff] %v118_v28  ;;  %p185_p3 = por %p184_p2, %p183_p1 }
  0x16   :  { %151 = vst [vmem:[#allocation2 + $0xd0] sm:$0xff] %v119_v29  ;;  %152 = vst [vmem:[#allocation2 + $0xd8] sm:$0xff] %v120_v30  ;;  %v124_v35 = vadd.f32 %v234_v2, %v85_v31 }
  0x17   :  { %153 = vst [vmem:[#allocation2 + $0xe0] sm:$0xff] %v121_v32  ;;  %154 = vst [vmem:[#allocation2 + $0xe8] sm:$0xff] %v122_v33  ;;  %p186_p4 = pnand %p185_p3, %p179_p0 }
  0x18   :  { %155 = vst [vmem:[#allocation2 + $0xf0] sm:$0xff] %v123_v34  ;;  %156 = vst [vmem:[#allocation2 + $0xf8] sm:$0xff] %v124_v35 }
  0x19   :  { %189 = shalt.err (!%p186_p4)
}
  0x1a   :  { %s201_s1 = smov 128   ;;  %s202_s2 = smov 8  }
  0x1b   :  { %168 = dma.vmem_to_hbm [thread:$0]  %s163_s22, 4096, %s399_s3, [#allocation3], %s201_s1, %s201_s1, %s202_s2  }
  0x1c   :  { %198 = dma.done.wait [#allocation3], 4096  }
  0x1d   :  { %199 = vsyncadd [#allocation3], 4294963200 }
  0x1e   :  { %172 = vsyncpa [#allocation3], 1 }

// kernel: graph_transformer_layer.7
= control target key start
LH: loop header
LB: loop body
LE: loop exit
PB: predicated region body
PF: predicated region fallthrough
CT: control target
= control target key end

     0   :  { %s2933_s3 = inlined_call_operand.vmem [shape: bf16[128,128], index: 3, kind: input, shape index: {}]   ;;  %s2934_s0 = inlined_call_operand.vmem [shape: f32[256,128], index: 0, kind: input, shape index: {}]   ;;  %s2935_s4 = inlined_call_operand.vmem [shape: bf16[128,256], index: 4, kind: input, shape index: {}]   ;;  %s2936_s5 = inlined_call_operand.vmem [shape: bf16[128,128], index: 5, kind: input, shape index: {}]   ;;  %s2937_s2 = inlined_call_operand.vmem [shape: f32[256,128], index: 2, kind: input, shape index: {}]   ;;  %s2938_s1 = inlined_call_operand.vmem [shape: f32[256,128], index: 1, kind: input, shape index: {}]   ;;  %s2939_s6 = inlined_call_operand.vmem [shape: f32[128,128], index: 6, kind: input, shape index: {}]   ;;  %s2940_s7 = inlined_call_operand.vmem [shape: f32[256,128], index: 7, kind: output, shape index: {0}]   ;;  %s2941_s9 = inlined_call_operand.vmem [shape: f32[256,128], index: 9, kind: output, shape index: {2}]   ;;  %s2942_s8 = inlined_call_operand.vmem [shape: f32[256,128], index: 8, kind: output, shape index: {1}]  }
   0x1   :  { %v1871_v0 = vld [vmem:[%s2933_s3 + $0x38] sm:$0xff]   ;;  %v1872_v1 = vld [vmem:[%s2933_s3 + $0x30] sm:$0xff]   ;;  %v1873_v2 = vld [vmem:[%s2933_s3 + $0x28] sm:$0xff]  }
   0x2   :  { %1854 = vmatprep.subr.bf16.mxu1 %v1871_v0  ;;  %1678 = vmatprep.subr.bf16.mxu0 %v1871_v0  ;;  %v1874_v3 = vld [vmem:[%s2933_s3 + $0x20] sm:$0xff]   ;;  %v47_v5 = vld [vmem:[%s2934_s0 + $0x88] sm:$0xff]  ;;  %v1875_v9 = vld [vmem:[%s2933_s3 + $0x18] sm:$0xff]  }
   0x3   :  { %1862 = vmatpush3.bf16.msra.mxu1 %v1871_v0  ;;  %1679 = vmatpush3.bf16.msra.mxu0 %v1871_v0  ;;  %v46_v4 = vld [vmem:[%s2934_s0 + $0x80] sm:$0xff]  ;;  %v31_v8 = vld [vmem:[%s2934_s0 + $0x8] sm:$0xff]  ;;  %v1876_v11 = vld [vmem:[%s2933_s3 + $0x10] sm:$0xff]  }
   0x4   :  { %1855 = vmatprep.subr.bf16.mxu1 %v1872_v1  ;;  %1680 = vmatprep.subr.bf16.mxu0 %v1872_v1  ;;  %v70_v6 = vpack.c.bf16 %v47_v5, %v46_v4  ;;  %v30_v7 = vld [vmem:[%s2934_s0] sm:$0xff]  ;;  %v1877_v12 = vld [vmem:[%s2933_s3 + $0x8] sm:$0xff]   ;;  %v48_v14 = vld [vmem:[%s2934_s0 + $0x90] sm:$0xff] }
   0x5   :  { %v62_v10 = vpack.c.bf16 %v31_v8, %v30_v7  ;;  %v1878_v13 = vld [vmem:[%s2933_s3] sm:$0xff]   ;;  %v49_v15 = vld [vmem:[%s2934_s0 + $0x98] sm:$0xff]  ;;  %v32_v16 = vld [vmem:[%s2934_s0 + $0x10] sm:$0xff] }
   0x6   :  { %1710 = vmatprep.mubr.bf16.mxu1 %v70_v6  ;;  %v33_v17 = vld [vmem:[%s2934_s0 + $0x18] sm:$0xff]  ;;  %v50_v20 = vld [vmem:[%s2934_s0 + $0xa0] sm:$0xff]  ;;  %v71_v21 = vpack.c.bf16 %v49_v15, %v48_v14  ;;  %v51_v23 = vld [vmem:[%s2934_s0 + $0xa8] sm:$0xff] }
   0x7   :  { %1863 = vmatpush3.bf16.msra.mxu1 %v1872_v1  ;;  %1681 = vmatpush3.bf16.msra.mxu0 %v1872_v1  ;;  %v1881_v18 = vld [vmem:[%s2935_s4 + $0x74] ss:$8 sps:$4 sm:$0xff]   ;;  %v63_v22 = vpack.c.bf16 %v33_v17, %v32_v16  ;;  %v34_v24 = vld [vmem:[%s2934_s0 + $0x20] sm:$0xff]  ;;  %v35_v25 = vld [vmem:[%s2934_s0 + $0x28] sm:$0xff]  ;;  %v72_v30 = vpack.c.bf16 %v51_v23, %v50_v20 }
   0x8   :  { %1856 = vmatprep.subr.bf16.mxu1 %v1873_v2  ;;  %1682 = vmatprep.subr.bf16.mxu0 %v1873_v2  ;;  %v1882_v19 = vld [vmem:[%s2936_s5 + $0x38] sm:$0xff]   ;;  %v1885_v27 = vld [vmem:[%s2935_s4 + $0x64] ss:$8 sps:$4 sm:$0xff]   ;;  %v1886_v28 = vld [vmem:[%s2936_s5 + $0x30] sm:$0xff]   ;;  %v64_v33 = vpack.c.bf16 %v35_v25, %v34_v24  ;;  %v1975_v25 = vmov 0  }
   0x9   :  { %1694 = vmatprep.mubr.bf16.mxu0 %v62_v10  ;;  %v1879_v26 = vld [vmem:[%s2935_s4 + $0x70] ss:$8 sps:$4 sm:$0xff]   ;;  %v1883_v29 = vld [vmem:[%s2935_s4 + $0x60] ss:$8 sps:$4 sm:$0xff]   ;;  %v1889_v34 = vld [vmem:[%s2935_s4 + $0x54] ss:$8 sps:$4 sm:$0xff]  }
   0xa   :  { %v52_v31 = vld [vmem:[%s2934_s0 + $0xb0] sm:$0xff]  ;;  %v53_v32 = vld [vmem:[%s2934_s0 + $0xb8] sm:$0xff]  ;;  %v1890_v37 = vld [vmem:[%s2936_s5 + $0x28] sm:$0xff]  }
   0xb   :  { %1864 = vmatpush3.bf16.msra.mxu1 %v1873_v2  ;;  %1683 = vmatpush3.bf16.msra.mxu0 %v1873_v2  ;;  %v36_v35 = vld [vmem:[%s2934_s0 + $0x30] sm:$0xff]  ;;  %v37_v36 = vld [vmem:[%s2934_s0 + $0x38] sm:$0xff]  ;;  %v54_v38 = vld [vmem:[%s2934_s0 + $0xc0] sm:$0xff]  ;;  %v73_v39 = vpack.c.bf16 %v53_v32, %v52_v31 }
   0xc   :  { %1857 = vmatprep.subr.bf16.mxu1 %v1874_v3  ;;  %1684 = vmatprep.subr.bf16.mxu0 %v1874_v3  ;;  %v65_v40 = vpack.c.bf16 %v37_v36, %v36_v35  ;;  %v55_v41 = vld [vmem:[%s2934_s0 + $0xc8] sm:$0xff]  ;;  %v38_v42 = vld [vmem:[%s2934_s0 + $0x40] sm:$0xff]  ;;  %v1887_v44 = vld [vmem:[%s2935_s4 + $0x50] ss:$8 sps:$4 sm:$0xff]  }
   0xd   :  { %v39_v43 = vld [vmem:[%s2934_s0 + $0x48] sm:$0xff]  ;;  %v1894_v46 = vld [vmem:[%s2936_s5 + $0x20] sm:$0xff]   ;;  %v74_v47 = vpack.c.bf16 %v55_v41, %v54_v38  ;;  %v56_v50 = vld [vmem:[%s2934_s0 + $0xd0] sm:$0xff] }
   0xe   :  { %v1893_v45 = vld [vmem:[%s2935_s4 + $0x44] ss:$8 sps:$4 sm:$0xff]   ;;  %v66_v48 = vpack.c.bf16 %v39_v43, %v38_v42  ;;  %v1891_v49 = vld [vmem:[%s2935_s4 + $0x40] ss:$8 sps:$4 sm:$0xff]   ;;  %v57_v51 = vld [vmem:[%s2934_s0 + $0xd8] sm:$0xff] }
   0xf   :  { %1865 = vmatpush3.bf16.msra.mxu1 %v1874_v3  ;;  %1685 = vmatpush3.bf16.msra.mxu0 %v1874_v3  ;;  %v40_v52 = vld [vmem:[%s2934_s0 + $0x50] sm:$0xff]  ;;  %v41_v53 = vld [vmem:[%s2934_s0 + $0x58] sm:$0xff]  ;;  %v58_v56 = vld [vmem:[%s2934_s0 + $0xe0] sm:$0xff]  ;;  %v75_v57 = vpack.c.bf16 %v57_v51, %v56_v50 }
  0x10   :  { %1858 = vmatprep.subr.bf16.mxu1 %v1875_v9  ;;  %1686 = vmatprep.subr.bf16.mxu0 %v1875_v9  ;;  %v1897_v54 = vld [vmem:[%s2935_s4 + $0x34] ss:$8 sps:$4 sm:$0xff]   ;;  %v67_v58 = vpack.c.bf16 %v41_v53, %v40_v52  ;;  %v59_v59 = vld [vmem:[%s2934_s0 + $0xe8] sm:$0xff]  ;;  %v42_v60 = vld [vmem:[%s2934_s0 + $0x60] sm:$0xff] }
  0x11   :  { %v1898_v55 = vld [vmem:[%s2936_s5 + $0x18] sm:$0xff]   ;;  %v43_v61 = vld [vmem:[%s2934_s0 + $0x68] sm:$0xff]  ;;  %v1902_v0 = vld [vmem:[%s2936_s5 + $0x10] sm:$0xff]   ;;  %v76_v1 = vpack.c.bf16 %v59_v59, %v58_v56 }
  0x12   :  { %v1895_v62 = vld [vmem:[%s2935_s4 + $0x30] ss:$8 sps:$4 sm:$0xff]   ;;  %v1901_v63 = vld [vmem:[%s2935_s4 + $0x24] ss:$8 sps:$4 sm:$0xff]   ;;  %v68_v2 = vpack.c.bf16 %v43_v61, %v42_v60  ;;  %v1899_v3 = vld [vmem:[%s2935_s4 + $0x20] ss:$8 sps:$4 sm:$0xff]  }
  0x13   :  { %1866 = vmatpush3.bf16.msra.mxu1 %v1875_v9  ;;  %1687 = vmatpush3.bf16.msra.mxu0 %v1875_v9  ;;  %v60_v4 = vld [vmem:[%s2934_s0 + $0xf0] sm:$0xff]  ;;  %v61_v5 = vld [vmem:[%s2934_s0 + $0xf8] sm:$0xff]  ;;  %v1906_v9 = vld [vmem:[%s2936_s5 + $0x8] sm:$0xff]  }
  0x14   :  { %1859 = vmatprep.subr.bf16.mxu1 %v1876_v11  ;;  %1688 = vmatprep.subr.bf16.mxu0 %v1876_v11  ;;  %v44_v6 = vld [vmem:[%s2934_s0 + $0x70] sm:$0xff]  ;;  %v45_v7 = vld [vmem:[%s2934_s0 + $0x78] sm:$0xff]  ;;  %v77_v10 = vpack.c.bf16 %v61_v5, %v60_v4  ;;  %v1909_v15 = vld [vmem:[%s2935_s4 + $0x4] ss:$8 sps:$4 sm:$0xff]  }
  0x15   :  { %v1905_v8 = vld [vmem:[%s2935_s4 + $0x14] ss:$8 sps:$4 sm:$0xff]   ;;  %v1903_v14 = vld [vmem:[%s2935_s4 + $0x10] ss:$8 sps:$4 sm:$0xff]   ;;  %v1910_v16 = vld [vmem:[%s2936_s5] sm:$0xff]  }
  0x16   :  { %v79_v20 = vld [vmem:[%s2938_s1 + $0x8] sm:$0xff]  ;;  %v130_v23 = vld [vmem:[%s2937_s2 + $0x20] sm:$0xff]  ;;  %v132_v31 = vld [vmem:[%s2937_s2 + $0x30] sm:$0xff] }
  0x17   :  { %1867 = vmatpush3.bf16.msra.mxu1 %v1876_v11  ;;  %1689 = vmatpush3.bf16.msra.mxu0 %v1876_v11  ;;  %v69_v11 = vpack.c.bf16 %v45_v7, %v44_v6  ;;  %v131_v24 = vld [vmem:[%s2937_s2 + $0x28] sm:$0xff]  ;;  %v133_v32 = vld [vmem:[%s2937_s2 + $0x38] sm:$0xff]  ;;  %v82_v38 = vld [vmem:[%s2938_s1 + $0x20] sm:$0xff] }
  0x18   :  { %1860 = vmatprep.subr.bf16.mxu1 %v1877_v12  ;;  %1690 = vmatprep.subr.bf16.mxu0 %v1877_v12  ;;  %v161_v36 = vpack.c.bf16 %v133_v32, %v132_v31  ;;  %v137_v41 = vld [vmem:[%s2937_s2 + $0x58] sm:$0xff]  ;;  %v138_v42 = vld [vmem:[%s2937_s2 + $0x60] sm:$0xff]  ;;  %v139_v43 = vld [vmem:[%s2937_s2 + $0x68] sm:$0xff] }
  0x19   :  { %v141_v50 = vld [vmem:[%s2937_s2 + $0x78] sm:$0xff]  ;;  %v142_v51 = vld [vmem:[%s2937_s2 + $0x80] sm:$0xff]  ;;  %v143_v52 = vld [vmem:[%s2937_s2 + $0x88] sm:$0xff] }
  0x1a   :  { %v86_v56 = vld [vmem:[%s2938_s1 + $0x40] sm:$0xff]  ;;  %v145_v59 = vld [vmem:[%s2937_s2 + $0x98] sm:$0xff]  ;;  %v147_v61 = vld [vmem:[%s2937_s2 + $0xa8] sm:$0xff] }
  0x1b   :  { %1868 = vmatpush3.bf16.msra.mxu1 %v1877_v12  ;;  %1691 = vmatpush3.bf16.msra.mxu0 %v1877_v12  ;;  %v126_v12 = vld [vmem:[%s2937_s2] sm:$0xff]  ;;  %v149_v4 = vld [vmem:[%s2937_s2 + $0xb8] sm:$0xff]  ;;  %v151_v6 = vld [vmem:[%s2937_s2 + $0xc8] sm:$0xff] }
  0x1c   :  { %1861 = vmatprep.subr.bf16.mxu1 %v1878_v13  ;;  %1692 = vmatprep.subr.bf16.mxu0 %v1878_v13  ;;  %v146_v60 = vld [vmem:[%s2937_s2 + $0xa0] sm:$0xff]  ;;  %v1019_v31 = vld [vmem:[%s2939_s6 + $0x50] sm:$0xff]  ;;  %v1018_v32 = vld [vmem:[%s2939_s6 + $0x48] sm:$0xff] }
  0x1d   :  { %v150_v5 = vld [vmem:[%s2937_s2 + $0xc0] sm:$0xff] }
  0x1f   :  { %1869 = vmatpush3.bf16.msra.mxu1 %v1878_v13  ;;  %1693 = vmatpush3.bf16.msra.mxu0 %v1878_v13  ;;  %v127_v13 = vld [vmem:[%s2937_s2 + $0x8] sm:$0xff] }
  0x20   :  { %495 = vmatprep.subr.bf16.mxu1 %v1881_v18  ;;  %1726 = vmatprep.subr.bf16.mxu0 %v1882_v19  ;;  %v158_v17 = vpack.c.bf16 %v127_v13, %v126_v12  ;;  %v1907_v18 = vld [vmem:[%s2935_s4] ss:$8 sps:$4 sm:$0xff]   ;;  %v152_v12 = vld [vmem:[%s2937_s2 + $0xd0] sm:$0xff]  ;;  %v153_v13 = vld [vmem:[%s2937_s2 + $0xd8] sm:$0xff] }
  0x22   :  { %1711 = vmatmul.mubr.bf16.vlgmr.msra.gmra.mxu1 %v71_v21  ;;  %1695 = vmatmul.mubr.bf16.vlgmr.msra.gmra.mxu0 %v63_v22  ;;  %v128_v21 = vld [vmem:[%s2937_s2 + $0x10] sm:$0xff]  ;;  %v129_v22 = vld [vmem:[%s2937_s2 + $0x18] sm:$0xff] }
  0x23   :  { %496 = vmatpush1.bf16.msra.mxu1 %v1879_v26  ;;  %1727 = vmatpush3.bf16.msra.mxu0 %v1882_v19  ;;  %v78_v19 = vld [vmem:[%s2938_s1] sm:$0xff] }
  0x24   :  { %497 = vmatprep.subr.bf16.mxu1 %v1885_v27  ;;  %1728 = vmatprep.subr.bf16.mxu0 %v1886_v28  ;;  %v110_v26 = vpack.c.bf16 %v79_v20, %v78_v19  ;;  %v159_v27 = vpack.c.bf16 %v129_v22, %v128_v21  ;;  %v1023_v19 = vld [vmem:[%s2939_s6 + $0x70] sm:$0xff]  ;;  %v1022_v21 = vld [vmem:[%s2939_s6 + $0x68] sm:$0xff] }
  0x25   :  { %1714 = vmatprep.mubr.bf16.mxu1 %v72_v30  ;;  %1698 = vmatprep.mubr.bf16.mxu0 %v64_v33  ;;  %v81_v30 = vld [vmem:[%s2938_s1 + $0x18] sm:$0xff]  ;;  %v134_v33 = vld [vmem:[%s2937_s2 + $0x40] sm:$0xff]  ;;  %v92_v22 = vld [vmem:[%s2938_s1 + $0x70] sm:$0xff] }
  0x27   :  { %498 = vmatpush1.bf16.msra.mxu1 %v1883_v29  ;;  %1729 = vmatpush3.bf16.msra.mxu0 %v1886_v28  ;;  %v160_v28 = vpack.c.bf16 %v131_v24, %v130_v23  ;;  %v80_v29 = vld [vmem:[%s2938_s1 + $0x10] sm:$0xff]  ;;  %v1021_v23 = vld [vmem:[%s2939_s6 + $0x60] sm:$0xff]  ;;  %v93_v24 = vld [vmem:[%s2938_s1 + $0x78] sm:$0xff] }
  0x28   :  { %499 = vmatprep.subr.bf16.mxu1 %v1889_v34  ;;  %1730 = vmatprep.subr.bf16.mxu0 %v1890_v37  ;;  %v135_v34 = vld [vmem:[%s2937_s2 + $0x48] sm:$0xff]  ;;  %v111_v35 = vpack.c.bf16 %v81_v30, %v80_v29  ;;  %v117_v29 = vpack.c.bf16 %v93_v24, %v92_v22 }
  0x2a   :  { %1715 = vmatmul.mubr.bf16.gmra.mxu1 %v73_v39  ;;  %1699 = vmatmul.mubr.bf16.gmra.mxu0 %v65_v40  ;;  %v83_v39 = vld [vmem:[%s2938_s1 + $0x28] sm:$0xff]  ;;  %v136_v40 = vld [vmem:[%s2937_s2 + $0x50] sm:$0xff] }
  0x2b   :  { %500 = vmatpush1.bf16.msra.mxu1 %v1887_v44  ;;  %1731 = vmatpush3.bf16.msra.mxu0 %v1890_v37  ;;  %v162_v37 = vpack.c.bf16 %v135_v34, %v134_v33  ;;  %v112_v44 = vpack.c.bf16 %v83_v39, %v82_v38  ;;  %v94_v33 = vld [vmem:[%s2938_s1 + $0x80] sm:$0xff]  ;;  %v95_v34 = vld [vmem:[%s2938_s1 + $0x88] sm:$0xff]  ;;  %v1015_v38 = vld [vmem:[%s2939_s6 + $0x30] sm:$0xff] }
  0x2c   :  { %501 = vmatprep.subr.bf16.mxu1 %v1893_v45  ;;  %1732 = vmatprep.subr.bf16.mxu0 %v1894_v46  ;;  %v163_v45 = vpack.c.bf16 %v137_v41, %v136_v40  ;;  %v1014_v39 = vld [vmem:[%s2939_s6 + $0x28] sm:$0xff]  ;;  %v96_v40 = vld [vmem:[%s2938_s1 + $0x90] sm:$0xff]  ;;  %v97_v41 = vld [vmem:[%s2938_s1 + $0x98] sm:$0xff] }
  0x2d   :  { %1718 = vmatprep.mubr.bf16.mxu1 %v74_v47  ;;  %1702 = vmatprep.mubr.bf16.mxu0 %v66_v48  ;;  %v84_v47 = vld [vmem:[%s2938_s1 + $0x30] sm:$0xff]  ;;  %v85_v48 = vld [vmem:[%s2938_s1 + $0x38] sm:$0xff] }
  0x2e   :  { %v113_v53 = vpack.c.bf16 %v85_v48, %v84_v47  ;;  %v98_v47 = vld [vmem:[%s2938_s1 + $0xa0] sm:$0xff]  ;;  %v99_v48 = vld [vmem:[%s2938_s1 + $0xa8] sm:$0xff] }
  0x2f   :  { %502 = vmatpush1.bf16.msra.mxu1 %v1891_v49  ;;  %1733 = vmatpush3.bf16.msra.mxu0 %v1894_v46  ;;  %v164_v46 = vpack.c.bf16 %v139_v43, %v138_v42  ;;  %v140_v49 = vld [vmem:[%s2937_s2 + $0x70] sm:$0xff]  ;;  %v1013_v42 = vld [vmem:[%s2939_s6 + $0x20] sm:$0xff]  ;;  %v1012_v43 = vld [vmem:[%s2939_s6 + $0x18] sm:$0xff] }
  0x30   :  { %503 = vmatprep.subr.bf16.mxu1 %v1897_v54  ;;  %1734 = vmatprep.subr.bf16.mxu0 %v1898_v55  ;;  %v165_v54 = vpack.c.bf16 %v141_v50, %v140_v49  ;;  %v1009_v49 = vld [vmem:[%s2939_s6] sm:$0xff]  ;;  %v120_v50 = vpack.c.bf16 %v99_v48, %v98_v47 }
  0x32   :  { %1719 = vmatmul.mubr.bf16.gmra.mxu1 %v75_v57  ;;  %1703 = vmatmul.mubr.bf16.gmra.mxu0 %v67_v58  ;;  %v87_v57 = vld [vmem:[%s2938_s1 + $0x48] sm:$0xff]  ;;  %v144_v58 = vld [vmem:[%s2937_s2 + $0x90] sm:$0xff] }
  0x33   :  { %504 = vmatpush1.bf16.msra.mxu1 %v1895_v62  ;;  %1735 = vmatpush3.bf16.msra.mxu0 %v1898_v55  ;;  %v166_v55 = vpack.c.bf16 %v143_v52, %v142_v51  ;;  %v114_v62 = vpack.c.bf16 %v87_v57, %v86_v56  ;;  %v100_v51 = vld [vmem:[%s2938_s1 + $0xb0] sm:$0xff]  ;;  %v101_v52 = vld [vmem:[%s2938_s1 + $0xb8] sm:$0xff] }
  0x34   :  { %505 = vmatprep.subr.bf16.mxu1 %v1901_v63  ;;  %1736 = vmatprep.subr.bf16.mxu0 %v1902_v0  ;;  %v167_v63 = vpack.c.bf16 %v145_v59, %v144_v58  ;;  %v104_v57 = vld [vmem:[%s2938_s1 + $0xd0] sm:$0xff]  ;;  %v105_v58 = vld [vmem:[%s2938_s1 + $0xd8] sm:$0xff] }
  0x35   :  { %1722 = vmatprep.mubr.bf16.mxu1 %v76_v1  ;;  %1706 = vmatprep.mubr.bf16.mxu0 %v68_v2  ;;  %v88_v1 = vld [vmem:[%s2938_s1 + $0x50] sm:$0xff]  ;;  %v89_v2 = vld [vmem:[%s2938_s1 + $0x58] sm:$0xff]  ;;  %v123_v59 = vpack.c.bf16 %v105_v58, %v104_v57 }
  0x36   :  { %v115_v7 = vpack.c.bf16 %v89_v2, %v88_v1 }
  0x37   :  { %506 = vmatpush1.bf16.msra.mxu1 %v1899_v3  ;;  %1737 = vmatpush3.bf16.msra.mxu0 %v1902_v0  ;;  %v168_v0 = vpack.c.bf16 %v147_v61, %v146_v60  ;;  %v148_v3 = vld [vmem:[%s2937_s2 + $0xb0] sm:$0xff]  ;;  %v106_v60 = vld [vmem:[%s2938_s1 + $0xe0] sm:$0xff]  ;;  %v107_v61 = vld [vmem:[%s2938_s1 + $0xe8] sm:$0xff] }
  0x38   :  { %507 = vmatprep.subr.bf16.mxu1 %v1905_v8  ;;  %1738 = vmatprep.subr.bf16.mxu0 %v1906_v9  ;;  %v169_v8 = vpack.c.bf16 %v149_v4, %v148_v3 }
  0x3a   :  { %1723 = vmatmul.mubr.bf16.gmra.mxu1 %v77_v10  ;;  %1707 = vmatmul.mubr.bf16.gmra.mxu0 %v69_v11  ;;  %v90_v10 = vld [vmem:[%s2938_s1 + $0x60] sm:$0xff]  ;;  %v91_v11 = vld [vmem:[%s2938_s1 + $0x68] sm:$0xff] }
  0x3b   :  { %508 = vmatpush1.bf16.msra.mxu1 %v1903_v14  ;;  %1739 = vmatpush3.bf16.msra.mxu0 %v1906_v9  ;;  %v170_v9 = vpack.c.bf16 %v151_v6, %v150_v5  ;;  %v154_v14 = vld [vmem:[%s2937_s2 + $0xe0] sm:$0xff] }
  0x3c   :  { %509 = vmatprep.subr.bf16.mxu1 %v1909_v15  ;;  %1740 = vmatprep.subr.bf16.mxu0 %v1910_v16  ;;  %v155_v15 = vld [vmem:[%s2937_s2 + $0xe8] sm:$0xff] }
  0x3d   :  { %527 = vmatprep.mubr.bf16.mxu1 %v1975_v25  ;;  %1742 = vmatprep.mubr.bf16.mxu0 %v158_v17  ;;  %v116_v17 = vpack.c.bf16 %v91_v11, %v90_v10  ;;  %v172_v20 = vpack.c.bf16 %v155_v15, %v154_v14 }
  0x3f   :  { %510 = vmatpush1.bf16.msra.mxu1 %v1907_v18  ;;  %1741 = vmatpush3.bf16.msra.mxu0 %v1910_v16  ;;  %v1024_v16 = vld [vmem:[%s2939_s6 + $0x78] sm:$0xff]  ;;  %v171_v18 = vpack.c.bf16 %v153_v13, %v152_v12 }
  0x40   :  { %1774 = vmatprep.subr.mxu0 %v1024_v16 }
  0x42   :  { %528 = vmatmul.mubr.bf16.vlgmr.msra.gmra.mxu1 %v110_v26  ;;  %1743 = vmatmul.mubr.bf16.vlgmr.msra.gmra.mxu0 %v159_v27  ;;  %v156_v26 = vld [vmem:[%s2937_s2 + $0xf0] sm:$0xff]  ;;  %v157_v27 = vld [vmem:[%s2937_s2 + $0xf8] sm:$0xff] }
  0x43   :  { %537 = vmatprep.mubr.bf16.mxu1 %v1975_v25  ;;  %1746 = vmatprep.mubr.bf16.mxu0 %v160_v28  ;;  %v1020_v28 = vld [vmem:[%s2939_s6 + $0x58] sm:$0xff]  ;;  %v173_v30 = vpack.c.bf16 %v157_v27, %v156_v26 }
  0x44   :  { %1775 = vmatpush3.msra.mxu0 %v1024_v16 }
  0x45   :  { %1776 = vmatprep.subr.mxu0 %v1023_v19 }
  0x46   :  { %1777 = vmatpush3.msra.mxu0 %v1023_v19 }
  0x47   :  { %1778 = vmatprep.subr.mxu0 %v1022_v21 }
  0x48   :  { %1779 = vmatpush3.msra.mxu0 %v1022_v21 }
  0x49   :  { %1780 = vmatprep.subr.mxu0 %v1021_v23 }
  0x4a   :  { %538 = vmatmul.mubr.bf16.gmra.mxu1 %v111_v35  ;;  %1747 = vmatmul.mubr.bf16.gmra.mxu0 %v161_v36  ;;  %v1017_v35 = vld [vmem:[%s2939_s6 + $0x40] sm:$0xff]  ;;  %v1016_v36 = vld [vmem:[%s2939_s6 + $0x38] sm:$0xff] }
  0x4b   :  { %547 = vmatprep.mubr.bf16.mxu1 %v1975_v25  ;;  %1750 = vmatprep.mubr.bf16.mxu0 %v162_v37  ;;  %v118_v37 = vpack.c.bf16 %v95_v34, %v94_v33 }
  0x4c   :  { %1781 = vmatpush3.msra.mxu0 %v1021_v23 }
  0x4d   :  { %1782 = vmatprep.subr.mxu0 %v1020_v28 }
  0x4e   :  { %1783 = vmatpush3.msra.mxu0 %v1020_v28 }
  0x4f   :  { %1784 = vmatprep.subr.mxu0 %v1019_v31 }
  0x50   :  { %1785 = vmatpush3.msra.mxu0 %v1019_v31 }
  0x51   :  { %1786 = vmatprep.subr.mxu0 %v1018_v32 }
  0x52   :  { %548 = vmatmul.mubr.bf16.gmra.mxu1 %v112_v44  ;;  %1751 = vmatmul.mubr.bf16.gmra.mxu0 %v163_v45  ;;  %v119_v44 = vpack.c.bf16 %v97_v41, %v96_v40  ;;  %v1011_v45 = vld [vmem:[%s2939_s6 + $0x10] sm:$0xff] }
  0x53   :  { %557 = vmatprep.mubr.bf16.mxu1 %v1975_v25  ;;  %1754 = vmatprep.mubr.bf16.mxu0 %v164_v46  ;;  %v1010_v46 = vld [vmem:[%s2939_s6 + $0x8] sm:$0xff] }
  0x54   :  { %1787 = vmatpush3.msra.mxu0 %v1018_v32 }
  0x55   :  { %1788 = vmatprep.subr.mxu0 %v1017_v35 }
  0x56   :  { %1789 = vmatpush3.msra.mxu0 %v1017_v35 }
  0x57   :  { %1790 = vmatprep.subr.mxu0 %v1016_v36 }
  0x58   :  { %1791 = vmatpush3.msra.mxu0 %v1016_v36 }
  0x59   :  { %1792 = vmatprep.subr.mxu0 %v1015_v38 }
  0x5a   :  { %558 = vmatmul.mubr.bf16.gmra.mxu1 %v113_v53  ;;  %1755 = vmatmul.mubr.bf16.gmra.mxu0 %v165_v54  ;;  %v121_v53 = vpack.c.bf16 %v101_v52, %v100_v51  ;;  %v102_v54 = vld [vmem:[%s2938_s1 + $0xc0] sm:$0xff] }
  0x5b   :  { %567 = vmatprep.mubr.bf16.mxu1 %v1975_v25  ;;  %1758 = vmatprep.mubr.bf16.mxu0 %v166_v55  ;;  %v103_v55 = vld [vmem:[%s2938_s1 + $0xc8] sm:$0xff] }
  0x5c   :  { %1793 = vmatpush3.msra.mxu0 %v1015_v38  ;;  %v122_v56 = vpack.c.bf16 %v103_v55, %v102_v54 }
  0x5d   :  { %1794 = vmatprep.subr.mxu0 %v1014_v39 }
  0x5e   :  { %1795 = vmatpush3.msra.mxu0 %v1014_v39 }
  0x5f   :  { %1796 = vmatprep.subr.mxu0 %v1013_v42 }
  0x60   :  { %1797 = vmatpush3.msra.mxu0 %v1013_v42 }
  0x61   :  { %1798 = vmatprep.subr.mxu0 %v1012_v43 }
  0x62   :  { %568 = vmatmul.mubr.bf16.gmra.mxu1 %v114_v62  ;;  %1759 = vmatmul.mubr.bf16.gmra.mxu0 %v167_v63  ;;  %v124_v62 = vpack.c.bf16 %v107_v61, %v106_v60  ;;  %v108_v63 = vld [vmem:[%s2938_s1 + $0xf0] sm:$0xff] }
  0x63   :  { %577 = vmatprep.mubr.bf16.mxu1 %v1975_v25  ;;  %1762 = vmatprep.mubr.bf16.mxu0 %v168_v0  ;;  %v109_v0 = vld [vmem:[%s2938_s1 + $0xf8] sm:$0xff] }
  0x64   :  { %1799 = vmatpush3.msra.mxu0 %v1012_v43  ;;  %v125_v1 = vpack.c.bf16 %v109_v0, %v108_v63 }
  0x65   :  { %1800 = vmatprep.subr.mxu0 %v1011_v45 }
  0x66   :  { %1801 = vmatpush3.msra.mxu0 %v1011_v45 }
  0x67   :  { %1802 = vmatprep.subr.mxu0 %v1010_v46 }
  0x68   :  { %1803 = vmatpush3.msra.mxu0 %v1010_v46 }
  0x69   :  { %1804 = vmatprep.subr.mxu0 %v1009_v49 }
  0x6a   :  { %578 = vmatmul.mubr.bf16.gmra.mxu1 %v115_v7  ;;  %1763 = vmatmul.mubr.bf16.gmra.mxu0 %v169_v8 }
  0x6b   :  { %587 = vmatprep.mubr.bf16.mxu1 %v1975_v25  ;;  %1766 = vmatprep.mubr.bf16.mxu0 %v170_v9 }
  0x6c   :  { %1805 = vmatpush3.msra.mxu0 %v1009_v49 }
  0x72   :  { %588 = vmatmul.mubr.bf16.gmra.mxu1 %v116_v17  ;;  %1767 = vmatmul.mubr.bf16.gmra.mxu0 %v171_v18 }
  0x73   :  { %597 = vmatprep.mubr.bf16.mxu1 %v1975_v25  ;;  %1770 = vmatprep.mubr.bf16.mxu0 %v172_v20 }
  0x7a   :  { %598 = vmatmul.mubr.bf16.gmra.mxu1 %v117_v29  ;;  %1771 = vmatmul.mubr.bf16.gmra.mxu0 %v173_v30 }
  0x7b   :  { %607 = vmatprep.mubr.bf16.mxu1 %v1975_v25 }
  0x82   :  { %608 = vmatmul.mubr.bf16.gmra.mxu1 %v118_v37 }
  0x83   :  { %617 = vmatprep.mubr.bf16.mxu1 %v1975_v25 }
  0x8a   :  { %618 = vmatmul.mubr.bf16.gmra.mxu1 %v119_v44 }
  0x8b   :  { %627 = vmatprep.mubr.bf16.mxu1 %v1975_v25 }
  0x92   :  { %628 = vmatmul.mubr.bf16.gmra.mxu1 %v120_v50 }
  0x93   :  { %637 = vmatprep.mubr.bf16.mxu1 %v1975_v25 }
  0x9a   :  { %638 = vmatmul.mubr.bf16.gmra.mxu1 %v121_v53 }
  0x9b   :  { %647 = vmatprep.mubr.bf16.mxu1 %v1975_v25 }
  0xa2   :  { %648 = vmatmul.mubr.bf16.gmra.mxu1 %v122_v56 }
  0xa3   :  { %657 = vmatprep.mubr.bf16.mxu1 %v1975_v25 }
  0xaa   :  { %658 = vmatmul.mubr.bf16.gmra.mxu1 %v123_v59 }
  0xab   :  { %667 = vmatprep.mubr.bf16.mxu1 %v1975_v25 }
  0xb2   :  { %668 = vmatmul.mubr.bf16.gmra.mxu1 %v124_v62 }
  0xb3   :  { %677 = vmatprep.mubr.bf16.mxu1 %v1975_v25 }
  0xba   :  { %678 = vmatmul.mubr.bf16.gmra.mxu1 %v125_v1 }
  0xe2   :  { %v2474_v2 = vpop.f32.mrf.mxu1  ;;  %v1696_v3 = vpop.f32.mrf.mxu0 }
  0xe4   :  { %v2476_v4 = vpop.f32.mrf.mxu1  ;;  %v272_v5 = vpop.f32.mrf.mxu0 }
  0xe6   :  { %v2478_v6 = vpop.f32.mrf.mxu1  ;;  %v1697_v7 = vpop.f32.mrf.mxu0 }
  0xe8   :  { %v2480_v25 = vpop.f32.mrf.mxu1  ;;  %v275_v8 = vpop.f32.mrf.mxu0 }
  0xea   :  { %v2482_v9 = vpop.f32.mrf.mxu1  ;;  %v2484_v10 = vpop.f32.mrf.mxu0 }
  0xec   :  { %v2486_v11 = vpop.f32.mrf.mxu1  ;;  %v288_v12 = vpop.f32.mrf.mxu0 }
  0xee   :  { %v2488_v13 = vpop.f32.mrf.mxu1  ;;  %v2490_v14 = vpop.f32.mrf.mxu0 }
  0xf0   :  { %v2492_v15 = vpop.f32.mrf.mxu1  ;;  %v291_v16 = vpop.f32.mrf.mxu0 }
  0xf2   :  { %v2494_v17 = vpop.f32.mrf.mxu1  ;;  %v2496_v18 = vpop.f32.mrf.mxu0 }
  0xf4   :  { %v2498_v19 = vpop.f32.mrf.mxu1  ;;  %v2500_v20 = vpop.f32.mrf.mxu0 }
  0xf6   :  { %v2502_v21 = vpop.f32.mrf.mxu1  ;;  %v2504_v22 = vpop.f32.mrf.mxu0 }
  0xf8   :  { %v2506_v23 = vpop.f32.mrf.mxu1  ;;  %v2508_v24 = vpop.f32.mrf.mxu0 }
  0xfa   :  { %v2510_v26 = vpop.f32.mrf.mxu1  ;;  %v2512_v27 = vpop.f32.mrf.mxu0 }
  0xfc   :  { %v2514_v28 = vpop.f32.mrf.mxu1  ;;  %v2516_v29 = vpop.f32.mrf.mxu0 }
  0xfe   :  { %v2518_v30 = vpop.f32.mrf.mxu1  ;;  %v2520_v31 = vpop.f32.mrf.mxu0 }
 0x100   :  { %v2522_v32 = vpop.f32.mrf.mxu1  ;;  %v2524_v33 = vpop.f32.mrf.mxu0 }
 0x102   :  { %v529_v34 = vpop.f32.mrf.mxu1  ;;  %v1744_v35 = vpop.f32.mrf.mxu0 }
 0x103   :  { %v913_v36 = vmul.f32 %v529_v34, %v272_v5 }
 0x104   :  { %v2526_v37 = vpop.f32.mrf.mxu1  ;;  %v786_v38 = vpop.f32.mrf.mxu0 }
 0x105   :  { %v945_v39 = vmul.f32 0.17677669, %v913_v36 }
 0x106   :  { %v533_v40 = vpop.f32.mrf.mxu1  ;;  %v1745_v41 = vpop.f32.mrf.mxu0 }
 0x107   :  { %v914_v42 = vmul.f32 %v533_v40, %v275_v8  ;;  %v977_v43 = vmul.f32 %v945_v39, %v786_v38 }
 0x108   :  { %v2528_v44 = vpop.f32.mrf.mxu1  ;;  %v789_v45 = vpop.f32.mrf.mxu0 }
 0x109   :  { %v946_v46 = vmul.f32 0.17677669, %v914_v42  ;;  %1378 = vst [vmem:[%s2940_s7] sm:$0xff] %v977_v43  ;;  %1806 = vmatprep.mubr.f32.mxu0 %v977_v43 }
 0x10a   :  { %v539_v47 = vpop.f32.mrf.mxu1  ;;  %v1748_v51 = vpop.f32.mrf.mxu0 }
 0x10b   :  { %v915_v48 = vmul.f32 %v1696_v3, %v539_v47  ;;  %v978_v49 = vmul.f32 %v946_v46, %v789_v45 }
 0x10c   :  { %v2533_v50 = vpop.f32.mrf.mxu1  ;;  %v802_v57 = vpop.f32.mrf.mxu0 }
 0x10d   :  { %v947_v52 = vmul.f32 0.17677669, %v915_v48  ;;  %1379 = vst [vmem:[%s2940_s7 + $0x8] sm:$0xff] %v978_v49  ;;  %1807 = vmatmul.mubr.f32.vlgmr.msra.gmra.mxu0 %v978_v49 }
 0x10e   :  { %v543_v53 = vpop.f32.mrf.mxu1  ;;  %v1749_v63 = vpop.f32.mrf.mxu0 }
 0x10f   :  { %v979_v54 = vmul.f32 %v1744_v35, %v947_v52  ;;  %v916_v55 = vmul.f32 %v1697_v7, %v543_v53 }
 0x110   :  { %v2538_v56 = vpop.f32.mrf.mxu1  ;;  %v805_v8 = vpop.f32.mrf.mxu0 }
 0x111   :  { %1380 = vst [vmem:[%s2940_s7 + $0x10] sm:$0xff] %v979_v54  ;;  %v948_v58 = vmul.f32 0.17677669, %v916_v55  ;;  %1809 = vmatprep.mubr.f32.mxu0 %v979_v54 }
 0x112   :  { %v549_v59 = vpop.f32.mrf.mxu1  ;;  %v1752_v39 = vpop.f32.mrf.mxu0 }
 0x113   :  { %v980_v60 = vmul.f32 %v1745_v41, %v948_v58  ;;  %v917_v61 = vmul.f32 %v549_v59, %v288_v12 }
 0x114   :  { %v2543_v62 = vpop.f32.mrf.mxu1  ;;  %v818_v45 = vpop.f32.mrf.mxu0 }
 0x115   :  { %1381 = vst [vmem:[%s2940_s7 + $0x18] sm:$0xff] %v980_v60  ;;  %v949_v0 = vmul.f32 0.17677669, %v917_v61  ;;  %1810 = vmatmul.mubr.f32.gmra.mxu0 %v980_v60 }
 0x116   :  { %v553_v1 = vpop.f32.mrf.mxu1  ;;  %v1753_v52 = vpop.f32.mrf.mxu0 }
 0x117   :  { %v918_v3 = vmul.f32 %v553_v1, %v291_v16  ;;  %v981_v5 = vmul.f32 %v949_v0, %v802_v57 }
 0x118   :  { %v2548_v7 = vpop.f32.mrf.mxu1  ;;  %v821_v57 = vpop.f32.mrf.mxu0 }
 0x119   :  { %v950_v34 = vmul.f32 0.17677669, %v918_v3  ;;  %1382 = vst [vmem:[%s2940_s7 + $0x20] sm:$0xff] %v981_v5  ;;  %1812 = vmatprep.mubr.f32.mxu0 %v981_v5 }
 0x11a   :  { %v559_v12 = vpop.f32.mrf.mxu1 }
 0x11b   :  { %v919_v35 = vmul.f32 %v2484_v10, %v559_v12  ;;  %v982_v36 = vmul.f32 %v950_v34, %v805_v8 }
 0x11c   :  { %v2554_v38 = vpop.f32.mrf.mxu1 }
 0x11d   :  { %v951_v40 = vmul.f32 0.17677669, %v919_v35  ;;  %1383 = vst [vmem:[%s2940_s7 + $0x28] sm:$0xff] %v982_v36  ;;  %1813 = vmatmul.mubr.f32.gmra.mxu0 %v982_v36 }
 0x11e   :  { %v563_v16 = vpop.f32.mrf.mxu1 }
 0x11f   :  { %v983_v41 = vmul.f32 %v1748_v51, %v951_v40  ;;  %v920_v42 = vmul.f32 %v2490_v14, %v563_v16 }
 0x120   :  { %v2560_v43 = vpop.f32.mrf.mxu1 }
 0x121   :  { %1384 = vst [vmem:[%s2940_s7 + $0x30] sm:$0xff] %v983_v41  ;;  %v952_v10 = vmul.f32 0.17677669, %v920_v42  ;;  %1815 = vmatprep.mubr.f32.mxu0 %v983_v41 }
 0x122   :  { %v569_v46 = vpop.f32.mrf.mxu1 }
 0x123   :  { %v984_v47 = vmul.f32 %v1749_v63, %v952_v10  ;;  %v921_v48 = vmul.f32 %v569_v46, %v2500_v20  ;;  %v1756_v63 = vpop.f32.mrf.mxu0 }
 0x124   :  { %v2566_v49 = vpop.f32.mrf.mxu1 }
 0x125   :  { %1385 = vst [vmem:[%s2940_s7 + $0x38] sm:$0xff] %v984_v47  ;;  %v953_v14 = vmul.f32 0.17677669, %v921_v48  ;;  %1816 = vmatmul.mubr.f32.gmra.mxu0 %v984_v47  ;;  %v834_v8 = vpop.f32.mrf.mxu0 }
 0x126   :  { %v573_v51 = vpop.f32.mrf.mxu1 }
 0x127   :  { %v922_v53 = vmul.f32 %v573_v51, %v2508_v24  ;;  %v985_v54 = vmul.f32 %v953_v14, %v818_v45  ;;  %v1757_v40 = vpop.f32.mrf.mxu0 }
 0x128   :  { %v2572_v55 = vpop.f32.mrf.mxu1 }
 0x129   :  { %v954_v58 = vmul.f32 0.17677669, %v922_v53  ;;  %1386 = vst [vmem:[%s2940_s7 + $0x40] sm:$0xff] %v985_v54  ;;  %1818 = vmatprep.mubr.f32.mxu0 %v985_v54  ;;  %v837_v45 = vpop.f32.mrf.mxu0 }
 0x12a   :  { %v579_v20 = vpop.f32.mrf.mxu1 }
 0x12b   :  { %v923_v59 = vmul.f32 %v2496_v18, %v579_v20  ;;  %v986_v60 = vmul.f32 %v954_v58, %v821_v57 }
 0x12c   :  { %v2578_v61 = vpop.f32.mrf.mxu1 }
 0x12d   :  { %v955_v0 = vmul.f32 0.17677669, %v923_v59  ;;  %1387 = vst [vmem:[%s2940_s7 + $0x48] sm:$0xff] %v986_v60  ;;  %1819 = vmatmul.mubr.f32.gmra.mxu0 %v986_v60 }
 0x12e   :  { %v583_v24 = vpop.f32.mrf.mxu1 }
 0x12f   :  { %v987_v1 = vmul.f32 %v1752_v39, %v955_v0  ;;  %v924_v3 = vmul.f32 %v2504_v22, %v583_v24 }
 0x130   :  { %v2584_v5 = vpop.f32.mrf.mxu1 }
 0x131   :  { %1388 = vst [vmem:[%s2940_s7 + $0x50] sm:$0xff] %v987_v1  ;;  %v956_v18 = vmul.f32 0.17677669, %v924_v3  ;;  %1821 = vmatprep.mubr.f32.mxu0 %v987_v1 }
 0x132   :  { %v589_v34 = vpop.f32.mrf.mxu1 }
 0x133   :  { %v988_v12 = vmul.f32 %v1753_v52, %v956_v18  ;;  %v925_v35 = vmul.f32 %v589_v34, %v2516_v29  ;;  %v1760_v52 = vpop.f32.mrf.mxu0 }
 0x134   :  { %v2590_v36 = vpop.f32.mrf.mxu1 }
 0x135   :  { %1389 = vst [vmem:[%s2940_s7 + $0x58] sm:$0xff] %v988_v12  ;;  %v957_v22 = vmul.f32 0.17677669, %v925_v35  ;;  %1822 = vmatmul.mubr.f32.gmra.mxu0 %v988_v12  ;;  %v850_v57 = vpop.f32.mrf.mxu0 }
 0x136   :  { %v593_v39 = vpop.f32.mrf.mxu1 }
 0x137   :  { %v926_v16 = vmul.f32 %v593_v39, %v2524_v33  ;;  %v989_v41 = vmul.f32 %v957_v22, %v834_v8  ;;  %v1761_v0 = vpop.f32.mrf.mxu0 }
 0x138   :  { %v2596_v42 = vpop.f32.mrf.mxu1 }
 0x139   :  { %v958_v10 = vmul.f32 0.17677669, %v926_v16  ;;  %1390 = vst [vmem:[%s2940_s7 + $0x60] sm:$0xff] %v989_v41  ;;  %1824 = vmatprep.mubr.f32.mxu0 %v989_v41  ;;  %v853_v8 = vpop.f32.mrf.mxu0 }
 0x13a   :  { %v599_v29 = vpop.f32.mrf.mxu1 }
 0x13b   :  { %v927_v46 = vmul.f32 %v2512_v27, %v599_v29  ;;  %v990_v47 = vmul.f32 %v958_v10, %v837_v45 }
 0x13c   :  { %v2602_v48 = vpop.f32.mrf.mxu1 }
 0x13d   :  { %v959_v14 = vmul.f32 0.17677669, %v927_v46  ;;  %1391 = vst [vmem:[%s2940_s7 + $0x68] sm:$0xff] %v990_v47  ;;  %1825 = vmatmul.mubr.f32.gmra.mxu0 %v990_v47 }
 0x13e   :  { %v603_v33 = vpop.f32.mrf.mxu1 }
 0x13f   :  { %v991_v51 = vmul.f32 %v1756_v63, %v959_v14  ;;  %v928_v53 = vmul.f32 %v2520_v31, %v603_v33 }
 0x140   :  { %v2608_v54 = vpop.f32.mrf.mxu1 }
 0x141   :  { %1392 = vst [vmem:[%s2940_s7 + $0x70] sm:$0xff] %v991_v51  ;;  %v960_v27 = vmul.f32 0.17677669, %v928_v53  ;;  %1827 = vmatprep.mubr.f32.mxu0 %v991_v51 }
 0x142   :  { %v609_v58 = vpop.f32.mrf.mxu1 }
 0x143   :  { %v992_v20 = vmul.f32 %v1757_v40, %v960_v27  ;;  %v929_v59 = vmul.f32 %v609_v58, %v2476_v4  ;;  %v1764_v40 = vpop.f32.mrf.mxu0 }
 0x144   :  { %v2614_v60 = vpop.f32.mrf.mxu1 }
 0x145   :  { %1393 = vst [vmem:[%s2940_s7 + $0x78] sm:$0xff] %v992_v20  ;;  %v961_v31 = vmul.f32 0.17677669, %v929_v59  ;;  %1828 = vmatmul.mubr.f32.gmra.mxu0 %v992_v20  ;;  %v866_v45 = vpop.f32.mrf.mxu0 }
 0x146   :  { %v613_v63 = vpop.f32.mrf.mxu1 }
 0x147   :  { %v930_v24 = vmul.f32 %v613_v63, %v2480_v25  ;;  %v993_v1 = vmul.f32 %v961_v31, %v850_v57  ;;  %v1765_v14 = vpop.f32.mrf.mxu0 }
 0x148   :  { %v2620_v3 = vpop.f32.mrf.mxu1 }
 0x149   :  { %v962_v18 = vmul.f32 0.17677669, %v930_v24  ;;  %1394 = vst [vmem:[%s2940_s7 + $0x80] sm:$0xff] %v993_v1  ;;  %1830 = vmatprep.mubr.f32.mxu0 %v993_v1  ;;  %v869_v57 = vpop.f32.mrf.mxu0 }
 0x14a   :  { %v619_v4 = vpop.f32.mrf.mxu1 }
 0x14b   :  { %v931_v34 = vmul.f32 %v2474_v2, %v619_v4  ;;  %v994_v12 = vmul.f32 %v962_v18, %v853_v8 }
 0x14c   :  { %v2626_v35 = vpop.f32.mrf.mxu1 }
 0x14d   :  { %v963_v22 = vmul.f32 0.17677669, %v931_v34  ;;  %1395 = vst [vmem:[%s2940_s7 + $0x88] sm:$0xff] %v994_v12  ;;  %1831 = vmatmul.mubr.f32.gmra.mxu0 %v994_v12 }
 0x14e   :  { %v623_v25 = vpop.f32.mrf.mxu1 }
 0x14f   :  { %v995_v39 = vmul.f32 %v1760_v52, %v963_v22  ;;  %v932_v16 = vmul.f32 %v2478_v6, %v623_v25 }
 0x150   :  { %v2632_v41 = vpop.f32.mrf.mxu1 }
 0x151   :  { %1396 = vst [vmem:[%s2940_s7 + $0x90] sm:$0xff] %v995_v39  ;;  %v964_v2 = vmul.f32 0.17677669, %v932_v16  ;;  %1833 = vmatprep.mubr.f32.mxu0 %v995_v39 }
 0x152   :  { %v629_v10 = vpop.f32.mrf.mxu1 }
 0x153   :  { %v996_v29 = vmul.f32 %v1761_v0, %v964_v2  ;;  %v933_v46 = vmul.f32 %v629_v10, %v2486_v11  ;;  %v1768_v0 = vpop.f32.mrf.mxu0 }
 0x154   :  { %v2638_v47 = vpop.f32.mrf.mxu1 }
 0x155   :  { %1397 = vst [vmem:[%s2940_s7 + $0x98] sm:$0xff] %v996_v29  ;;  %v965_v6 = vmul.f32 0.17677669, %v933_v46  ;;  %1834 = vmatmul.mubr.f32.gmra.mxu0 %v996_v29  ;;  %v882_v8 = vpop.f32.mrf.mxu0 }
 0x156   :  { %v633_v52 = vpop.f32.mrf.mxu1 }
 0x157   :  { %v934_v33 = vmul.f32 %v633_v52, %v2492_v15  ;;  %v997_v51 = vmul.f32 %v965_v6, %v866_v45  ;;  %v1769_v22 = vpop.f32.mrf.mxu0 }
 0x158   :  { %v2644_v53 = vpop.f32.mrf.mxu1 }
 0x159   :  { %v966_v27 = vmul.f32 0.17677669, %v934_v33  ;;  %1398 = vst [vmem:[%s2940_s7 + $0xa0] sm:$0xff] %v997_v51  ;;  %1836 = vmatprep.mubr.f32.mxu0 %v997_v51  ;;  %v885_v45 = vpop.f32.mrf.mxu0 }
 0x15a   :  { %v639_v11 = vpop.f32.mrf.mxu1 }
 0x15b   :  { %v935_v58 = vmul.f32 %v2482_v9, %v639_v11  ;;  %v998_v20 = vmul.f32 %v966_v27, %v869_v57  ;;  %v1772_v6 = vpop.f32.mrf.mxu0 }
 0x15c   :  { %v2650_v59 = vpop.f32.mrf.mxu1 }
 0x15d   :  { %v967_v31 = vmul.f32 0.17677669, %v935_v58  ;;  %1399 = vst [vmem:[%s2940_s7 + $0xa8] sm:$0xff] %v998_v20  ;;  %1837 = vmatmul.mubr.f32.gmra.mxu0 %v998_v20  ;;  %v898_v27 = vpop.f32.mrf.mxu0 }
 0x15e   :  { %v643_v15 = vpop.f32.mrf.mxu1 }
 0x15f   :  { %v999_v63 = vmul.f32 %v1764_v40, %v967_v31  ;;  %v936_v24 = vmul.f32 %v2488_v13, %v643_v15  ;;  %v1773_v31 = vpop.f32.mrf.mxu0 }
 0x160   :  { %v2656_v1 = vpop.f32.mrf.mxu1 }
 0x161   :  { %1400 = vst [vmem:[%s2940_s7 + $0xb0] sm:$0xff] %v999_v63  ;;  %v968_v9 = vmul.f32 0.17677669, %v936_v24  ;;  %1839 = vmatprep.mubr.f32.mxu0 %v999_v63 }
 0x162   :  { %v649_v18 = vpop.f32.mrf.mxu1 }
 0x163   :  { %v1000_v4 = vmul.f32 %v1765_v14, %v968_v9  ;;  %v937_v34 = vmul.f32 %v649_v18, %v2498_v19 }
 0x164   :  { %v2662_v12 = vpop.f32.mrf.mxu1 }
 0x165   :  { %1401 = vst [vmem:[%s2940_s7 + $0xb8] sm:$0xff] %v1000_v4  ;;  %v969_v13 = vmul.f32 0.17677669, %v937_v34  ;;  %1840 = vmatmul.mubr.f32.gmra.mxu0 %v1000_v4 }
 0x166   :  { %v653_v40 = vpop.f32.mrf.mxu1 }
 0x167   :  { %v938_v25 = vmul.f32 %v653_v40, %v2506_v23  ;;  %v1001_v39 = vmul.f32 %v969_v13, %v882_v8  ;;  %v901_v8 = vpop.f32.mrf.mxu0 }
 0x168   :  { %v2668_v16 = vpop.f32.mrf.mxu1 }
 0x169   :  { %v970_v2 = vmul.f32 0.17677669, %v938_v25  ;;  %1402 = vst [vmem:[%s2940_s7 + $0xc0] sm:$0xff] %v1001_v39  ;;  %1842 = vmatprep.mubr.f32.mxu0 %v1001_v39 }
 0x16a   :  { %v659_v19 = vpop.f32.mrf.mxu1 }
 0x16b   :  { %v939_v10 = vmul.f32 %v2494_v17, %v659_v19  ;;  %v1002_v29 = vmul.f32 %v970_v2, %v885_v45 }
 0x16c   :  { %v2674_v46 = vpop.f32.mrf.mxu1 }
 0x16d   :  { %v971_v14 = vmul.f32 0.17677669, %v939_v10  ;;  %1403 = vst [vmem:[%s2940_s7 + $0xc8] sm:$0xff] %v1002_v29  ;;  %1843 = vmatmul.mubr.f32.gmra.mxu0 %v1002_v29 }
 0x16e   :  { %v663_v23 = vpop.f32.mrf.mxu1 }
 0x16f   :  { %v1003_v52 = vmul.f32 %v1768_v0, %v971_v14  ;;  %v940_v33 = vmul.f32 %v2502_v21, %v663_v23 }
 0x170   :  { %v2680_v51 = vpop.f32.mrf.mxu1 }
 0x171   :  { %1404 = vst [vmem:[%s2940_s7 + $0xd0] sm:$0xff] %v1003_v52  ;;  %v972_v17 = vmul.f32 0.17677669, %v940_v33  ;;  %1845 = vmatprep.mubr.f32.mxu0 %v1003_v52 }
 0x172   :  { %v669_v57 = vpop.f32.mrf.mxu1 }
 0x173   :  { %v1004_v11 = vmul.f32 %v1769_v22, %v972_v17  ;;  %v941_v58 = vmul.f32 %v669_v57, %v2514_v28 }
 0x174   :  { %v2686_v20 = vpop.f32.mrf.mxu1 }
 0x175   :  { %1405 = vst [vmem:[%s2940_s7 + $0xd8] sm:$0xff] %v1004_v11  ;;  %v973_v21 = vmul.f32 0.17677669, %v941_v58  ;;  %1846 = vmatmul.mubr.f32.gmra.mxu0 %v1004_v11 }
 0x176   :  { %v673_v0 = vpop.f32.mrf.mxu1 }
 0x177   :  { %v1005_v15 = vmul.f32 %v973_v21, %v898_v27  ;;  %v942_v63 = vmul.f32 %v673_v0, %v2522_v32 }
 0x178   :  { %v2692_v24 = vpop.f32.mrf.mxu1 }
 0x179   :  { %1406 = vst [vmem:[%s2940_s7 + $0xe0] sm:$0xff] %v1005_v15  ;;  %v974_v28 = vmul.f32 0.17677669, %v942_v63  ;;  %1848 = vmatprep.mubr.f32.mxu0 %v1005_v15 }
 0x17a   :  { %v679_v9 = vpop.f32.mrf.mxu1 }
 0x17b   :  { %v1006_v18 = vmul.f32 %v974_v28, %v901_v8  ;;  %v943_v4 = vmul.f32 %v2510_v26, %v679_v9 }
 0x17c   :  { %v2698_v34 = vpop.f32.mrf.mxu1 }
 0x17d   :  { %1407 = vst [vmem:[%s2940_s7 + $0xe8] sm:$0xff] %v1006_v18  ;;  %v975_v32 = vmul.f32 0.17677669, %v943_v4  ;;  %1849 = vmatmul.mubr.f32.gmra.mxu0 %v1006_v18 }
 0x17e   :  { %v683_v22 = vpop.f32.mrf.mxu1 }
 0x17f   :  { %v1007_v13 = vmul.f32 %v1772_v6, %v975_v32  ;;  %v944_v40 = vmul.f32 %v2518_v30, %v683_v22 }
 0x181   :  { %1408 = vst [vmem:[%s2940_s7 + $0xf0] sm:$0xff] %v1007_v13  ;;  %v976_v25 = vmul.f32 0.17677669, %v944_v40  ;;  %1851 = vmatprep.mubr.f32.mxu0 %v1007_v13 }
 0x183   :  { %v1008_v39 = vmul.f32 %v1773_v31, %v976_v25 }
 0x185   :  { %1409 = vst [vmem:[%s2940_s7 + $0xf8] sm:$0xff] %v1008_v39  ;;  %1852 = vmatmul.mubr.f32.gmra.mxu0 %v1008_v39 }
 0x1cd   :  { %v1808_v26 = vpop.f32.mrf.mxu0 }
 0x1ce   :  { %v1551_v45 = vclamps-f32 %v1808_v26, 5.0 }
 0x1cf   :  { %v1091_v2 = vpop.f32.mrf.mxu0 }
 0x1d0   :  { %v1316_v19 = vmul.f32 1.442695, %v1551_v45  ;;  %v1550_v10 = vclamps-f32 %v1091_v2, 5.0 }
 0x1d2   :  { %1911 = vpow2.f32 %v1316_v19  ;;  %v1314_v29 = vmul.f32 1.442695, %v1550_v10 }
 0x1d4   :  { %1913 = vpow2.f32 %v1314_v29 }
 0x1d5   :  { %v1811_v30 = vpop.f32.mrf.mxu0 }
 0x1d6   :  { %v1553_v14 = vclamps-f32 %v1811_v30, 5.0 }
 0x1d7   :  { %v1101_v23 = vpop.f32.mrf.mxu0 }
 0x1d8   :  { %v1320_v6 = vmul.f32 1.442695, %v1553_v14  ;;  %v1552_v52 = vclamps-f32 %v1101_v23, 5.0 }
 0x1da   :  { %1915 = vpow2.f32 %v1320_v6  ;;  %v1318_v33 = vmul.f32 1.442695, %v1552_v52 }
 0x1dc   :  { %1917 = vpow2.f32 %v1318_v33 }
 0x1dd   :  { %v1814_v17 = vpop.f32.mrf.mxu0 }
 0x1de   :  { %v1555_v57 = vclamps-f32 %v1814_v17, 5.0 }
 0x1df   :  { %v1912_v27 = vpop.eup %1911  ;;  %v1111_v11 = vpop.f32.mrf.mxu0 }
 0x1e0   :  { %v1411_v58 = vmul.f32 %v1912_v27, %v2528_v44  ;;  %1475 = vst [vmem:[%s2941_s9 + $0x8] sm:$0xff] %v1912_v27  ;;  %v1324_v21 = vmul.f32 1.442695, %v1555_v57  ;;  %v1554_v0 = vclamps-f32 %v1111_v11, 5.0 }
 0x1e1   :  { %v1914_v31 = vpop.eup %1913 }
 0x1e2   :  { %1443 = vst [vmem:[%s2942_s8 + $0x8] sm:$0xff] %v1411_v58  ;;  %v1410_v15 = vmul.f32 %v1914_v31, %v2526_v37  ;;  %1474 = vst [vmem:[%s2941_s9] sm:$0xff] %v1914_v31  ;;  %1919 = vpow2.f32 %v1324_v21  ;;  %v1322_v63 = vmul.f32 1.442695, %v1554_v0 }
 0x1e4   :  { %1442 = vst [vmem:[%s2942_s8] sm:$0xff] %v1410_v15  ;;  %1921 = vpow2.f32 %v1322_v63 }
 0x1e5   :  { %v1817_v44 = vpop.f32.mrf.mxu0 }
 0x1e6   :  { %v1557_v28 = vclamps-f32 %v1817_v44, 5.0 }
 0x1e7   :  { %v1916_v8 = vpop.eup %1915  ;;  %v1121_v9 = vpop.f32.mrf.mxu0 }
 0x1e8   :  { %v1413_v18 = vmul.f32 %v1916_v8, %v2538_v56  ;;  %1477 = vst [vmem:[%s2941_s9 + $0x18] sm:$0xff] %v1916_v8  ;;  %v1328_v37 = vmul.f32 1.442695, %v1557_v28  ;;  %v1556_v4 = vclamps-f32 %v1121_v9, 5.0 }
 0x1e9   :  { %v1918_v32 = vpop.eup %1917 }
 0x1ea   :  { %1445 = vst [vmem:[%s2942_s8 + $0x18] sm:$0xff] %v1413_v18  ;;  %v1412_v22 = vmul.f32 %v1918_v32, %v2533_v50  ;;  %1476 = vst [vmem:[%s2941_s9 + $0x10] sm:$0xff] %v1918_v32  ;;  %1923 = vpow2.f32 %v1328_v37  ;;  %v1326_v13 = vmul.f32 1.442695, %v1556_v4 }
 0x1ec   :  { %1444 = vst [vmem:[%s2942_s8 + $0x10] sm:$0xff] %v1412_v22  ;;  %1925 = vpow2.f32 %v1326_v13 }
 0x1ed   :  { %v1820_v56 = vpop.f32.mrf.mxu0 }
 0x1ee   :  { %v1559_v40 = vclamps-f32 %v1820_v56, 5.0 }
 0x1ef   :  { %v1920_v25 = vpop.eup %1919  ;;  %v1131_v39 = vpop.f32.mrf.mxu0 }
 0x1f0   :  { %v1415_v26 = vmul.f32 %v1920_v25, %v2548_v7  ;;  %1479 = vst [vmem:[%s2941_s9 + $0x28] sm:$0xff] %v1920_v25  ;;  %v1332_v50 = vmul.f32 1.442695, %v1559_v40  ;;  %v1558_v45 = vclamps-f32 %v1131_v39, 5.0 }
 0x1f1   :  { %v1922_v2 = vpop.eup %1921 }
 0x1f2   :  { %1447 = vst [vmem:[%s2942_s8 + $0x28] sm:$0xff] %v1415_v26  ;;  %v1414_v19 = vmul.f32 %v1922_v2, %v2543_v62  ;;  %1478 = vst [vmem:[%s2941_s9 + $0x20] sm:$0xff] %v1922_v2  ;;  %1927 = vpow2.f32 %v1332_v50  ;;  %v1330_v10 = vmul.f32 1.442695, %v1558_v45 }
 0x1f4   :  { %1446 = vst [vmem:[%s2942_s8 + $0x20] sm:$0xff] %v1414_v19  ;;  %1929 = vpow2.f32 %v1330_v10 }
 0x1f5   :  { %v1823_v7 = vpop.f32.mrf.mxu0 }
 0x1f6   :  { %v1561_v29 = vclamps-f32 %v1823_v7, 5.0 }
 0x1f7   :  { %v1924_v30 = vpop.eup %1923  ;;  %v1141_v14 = vpop.f32.mrf.mxu0 }
 0x1f8   :  { %v1417_v23 = vmul.f32 %v1924_v30, %v2560_v43  ;;  %1481 = vst [vmem:[%s2941_s9 + $0x38] sm:$0xff] %v1924_v30  ;;  %v1336_v62 = vmul.f32 1.442695, %v1561_v29  ;;  %v1560_v6 = vclamps-f32 %v1141_v14, 5.0 }
 0x1f9   :  { %v1926_v52 = vpop.eup %1925 }
 0x1fa   :  { %1449 = vst [vmem:[%s2942_s8 + $0x38] sm:$0xff] %v1417_v23  ;;  %v1416_v33 = vmul.f32 %v1926_v52, %v2554_v38  ;;  %1480 = vst [vmem:[%s2941_s9 + $0x30] sm:$0xff] %v1926_v52  ;;  %1931 = vpow2.f32 %v1336_v62  ;;  %v1334_v17 = vmul.f32 1.442695, %v1560_v6 }
 0x1fc   :  { %1448 = vst [vmem:[%s2942_s8 + $0x30] sm:$0xff] %v1416_v33  ;;  %1933 = vpow2.f32 %v1334_v17 }
 0x1fd   :  { %v1826_v43 = vpop.f32.mrf.mxu0 }
 0x1fe   :  { %v1563_v57 = vclamps-f32 %v1826_v43, 5.0 }
 0x1ff   :  { %v1928_v27 = vpop.eup %1927  ;;  %v1151_v11 = vpop.f32.mrf.mxu0 }
 0x200   :  { %v1419_v58 = vmul.f32 %v1928_v27, %v2572_v55  ;;  %1483 = vst [vmem:[%s2941_s9 + $0x48] sm:$0xff] %v1928_v27  ;;  %v1340_v38 = vmul.f32 1.442695, %v1563_v57  ;;  %v1562_v21 = vclamps-f32 %v1151_v11, 5.0 }
 0x201   :  { %v1930_v0 = vpop.eup %1929 }
 0x202   :  { %1451 = vst [vmem:[%s2942_s8 + $0x48] sm:$0xff] %v1419_v58  ;;  %v1418_v31 = vmul.f32 %v1930_v0, %v2566_v49  ;;  %1482 = vst [vmem:[%s2941_s9 + $0x40] sm:$0xff] %v1930_v0  ;;  %1935 = vpow2.f32 %v1340_v38  ;;  %v1338_v15 = vmul.f32 1.442695, %v1562_v21 }
 0x204   :  { %1450 = vst [vmem:[%s2942_s8 + $0x40] sm:$0xff] %v1418_v31  ;;  %1937 = vpow2.f32 %v1338_v15 }
 0x205   :  { %v1829_v55 = vpop.f32.mrf.mxu0 }
 0x206   :  { %v1565_v63 = vclamps-f32 %v1829_v55, 5.0 }
 0x207   :  { %v1932_v44 = vpop.eup %1931  ;;  %v1161_v28 = vpop.f32.mrf.mxu0 }
 0x208   :  { %v1421_v8 = vmul.f32 %v1932_v44, %v2584_v5  ;;  %1485 = vst [vmem:[%s2941_s9 + $0x58] sm:$0xff] %v1932_v44  ;;  %v1344_v49 = vmul.f32 1.442695, %v1565_v63  ;;  %v1564_v9 = vclamps-f32 %v1161_v28, 5.0 }
 0x209   :  { %v1934_v18 = vpop.eup %1933 }
 0x20a   :  { %1453 = vst [vmem:[%s2942_s8 + $0x58] sm:$0xff] %v1421_v8  ;;  %v1420_v37 = vmul.f32 %v1934_v18, %v2578_v61  ;;  %1484 = vst [vmem:[%s2941_s9 + $0x50] sm:$0xff] %v1934_v18  ;;  %1939 = vpow2.f32 %v1344_v49  ;;  %v1342_v4 = vmul.f32 1.442695, %v1564_v9 }
 0x20c   :  { %1452 = vst [vmem:[%s2942_s8 + $0x50] sm:$0xff] %v1420_v37  ;;  %1941 = vpow2.f32 %v1342_v4 }
 0x20d   :  { %v1832_v5 = vpop.f32.mrf.mxu0 }
 0x20e   :  { %v1567_v32 = vclamps-f32 %v1832_v5, 5.0 }
 0x20f   :  { %v1936_v22 = vpop.eup %1935  ;;  %v1171_v13 = vpop.f32.mrf.mxu0 }
 0x210   :  { %v1423_v56 = vmul.f32 %v1936_v22, %v2596_v42  ;;  %1487 = vst [vmem:[%s2941_s9 + $0x68] sm:$0xff] %v1936_v22  ;;  %v1348_v61 = vmul.f32 1.442695, %v1567_v32  ;;  %v1566_v40 = vclamps-f32 %v1171_v13, 5.0 }
 0x211   :  { %v1938_v25 = vpop.eup %1937 }
 0x212   :  { %1455 = vst [vmem:[%s2942_s8 + $0x68] sm:$0xff] %v1423_v56  ;;  %v1422_v39 = vmul.f32 %v1938_v25, %v2590_v36  ;;  %1486 = vst [vmem:[%s2941_s9 + $0x60] sm:$0xff] %v1938_v25  ;;  %1943 = vpow2.f32 %v1348_v61  ;;  %v1346_v26 = vmul.f32 1.442695, %v1566_v40 }
 0x214   :  { %1454 = vst [vmem:[%s2942_s8 + $0x60] sm:$0xff] %v1422_v39  ;;  %1945 = vpow2.f32 %v1346_v26 }
 0x215   :  { %v1835_v42 = vpop.f32.mrf.mxu0 }
 0x216   :  { %v1569_v50 = vclamps-f32 %v1835_v42, 5.0 }
 0x217   :  { %v1940_v45 = vpop.eup %1939  ;;  %v1181_v2 = vpop.f32.mrf.mxu0 }
 0x218   :  { %v1425_v19 = vmul.f32 %v1940_v45, %v2608_v54  ;;  %1489 = vst [vmem:[%s2941_s9 + $0x78] sm:$0xff] %v1940_v45  ;;  %v1352_v36 = vmul.f32 1.442695, %v1569_v50  ;;  %v1568_v10 = vclamps-f32 %v1181_v2, 5.0 }
 0x219   :  { %v1942_v7 = vpop.eup %1941 }
 0x21a   :  { %1457 = vst [vmem:[%s2942_s8 + $0x78] sm:$0xff] %v1425_v19  ;;  %v1424_v29 = vmul.f32 %v1942_v7, %v2602_v48  ;;  %1488 = vst [vmem:[%s2941_s9 + $0x70] sm:$0xff] %v1942_v7  ;;  %1947 = vpow2.f32 %v1352_v36  ;;  %v1350_v30 = vmul.f32 1.442695, %v1568_v10 }
 0x21c   :  { %1456 = vst [vmem:[%s2942_s8 + $0x70] sm:$0xff] %v1424_v29  ;;  %1949 = vpow2.f32 %v1350_v30 }
 0x21d   :  { %v1838_v54 = vpop.f32.mrf.mxu0 }
 0x21e   :  { %v1571_v14 = vclamps-f32 %v1838_v54, 5.0 }
 0x21f   :  { %v1944_v23 = vpop.eup %1943  ;;  %v1191_v62 = vpop.f32.mrf.mxu0 }
 0x220   :  { %v1427_v6 = vmul.f32 %v1944_v23, %v2620_v3  ;;  %1491 = vst [vmem:[%s2941_s9 + $0x88] sm:$0xff] %v1944_v23  ;;  %v1356_v48 = vmul.f32 1.442695, %v1571_v14  ;;  %v1570_v52 = vclamps-f32 %v1191_v62, 5.0  ;;  %v685_v62 = vpop.f32.mrf.mxu1 }
 0x221   :  { %v1946_v33 = vpop.eup %1945 }
 0x222   :  { %1459 = vst [vmem:[%s2942_s8 + $0x88] sm:$0xff] %v1427_v6  ;;  %v1426_v17 = vmul.f32 %v1946_v33, %v2614_v60  ;;  %1490 = vst [vmem:[%s2941_s9 + $0x80] sm:$0xff] %v1946_v33  ;;  %1951 = vpow2.f32 %v1356_v48  ;;  %v1354_v43 = vmul.f32 1.442695, %v1570_v52 }
 0x224   :  { %1458 = vst [vmem:[%s2942_s8 + $0x80] sm:$0xff] %v1426_v17  ;;  %1953 = vpow2.f32 %v1354_v43 }
 0x225   :  { %v1841_v3 = vpop.f32.mrf.mxu0 }
 0x226   :  { %v1573_v57 = vclamps-f32 %v1841_v3, 5.0 }
 0x227   :  { %v1948_v27 = vpop.eup %1947  ;;  %v1201_v11 = vpop.f32.mrf.mxu0 }
 0x228   :  { %v1429_v58 = vmul.f32 %v1948_v27, %v2632_v41  ;;  %1493 = vst [vmem:[%s2941_s9 + $0x98] sm:$0xff] %v1948_v27  ;;  %v1360_v60 = vmul.f32 1.442695, %v1573_v57  ;;  %v1572_v38 = vclamps-f32 %v1201_v11, 5.0 }
 0x229   :  { %v1950_v21 = vpop.eup %1949 }
 0x22a   :  { %1461 = vst [vmem:[%s2942_s8 + $0x98] sm:$0xff] %v1429_v58  ;;  %v1428_v0 = vmul.f32 %v1950_v21, %v2626_v35  ;;  %1492 = vst [vmem:[%s2941_s9 + $0x90] sm:$0xff] %v1950_v21  ;;  %1955 = vpow2.f32 %v1360_v60  ;;  %v1358_v31 = vmul.f32 1.442695, %v1572_v38 }
 0x22c   :  { %1460 = vst [vmem:[%s2942_s8 + $0x90] sm:$0xff] %v1428_v0  ;;  %1957 = vpow2.f32 %v1358_v31 }
 0x22d   :  { %v1844_v41 = vpop.f32.mrf.mxu0 }
 0x22e   :  { %v1575_v15 = vclamps-f32 %v1844_v41, 5.0 }
 0x22f   :  { %v1952_v55 = vpop.eup %1951  ;;  %v1211_v63 = vpop.f32.mrf.mxu0 }
 0x230   :  { %v1431_v44 = vmul.f32 %v1952_v55, %v2644_v53  ;;  %1495 = vst [vmem:[%s2941_s9 + $0xa8] sm:$0xff] %v1952_v55  ;;  %v1364_v35 = vmul.f32 1.442695, %v1575_v15  ;;  %v1574_v28 = vclamps-f32 %v1211_v63, 5.0 }
 0x231   :  { %v1954_v8 = vpop.eup %1953 }
 0x232   :  { %1463 = vst [vmem:[%s2942_s8 + $0xa8] sm:$0xff] %v1431_v44  ;;  %v1430_v49 = vmul.f32 %v1954_v8, %v2638_v47  ;;  %1494 = vst [vmem:[%s2941_s9 + $0xa0] sm:$0xff] %v1954_v8  ;;  %1959 = vpow2.f32 %v1364_v35  ;;  %v1362_v9 = vmul.f32 1.442695, %v1574_v28 }
 0x234   :  { %1462 = vst [vmem:[%s2942_s8 + $0xa0] sm:$0xff] %v1430_v49  ;;  %1961 = vpow2.f32 %v1362_v9 }
 0x235   :  { %v1847_v53 = vpop.f32.mrf.mxu0 }
 0x236   :  { %v1577_v18 = vclamps-f32 %v1847_v53, 5.0 }
 0x237   :  { %v1956_v37 = vpop.eup %1955  ;;  %v1221_v4 = vpop.f32.mrf.mxu0 }
 0x238   :  { %v1433_v5 = vmul.f32 %v1956_v37, %v2656_v1  ;;  %1497 = vst [vmem:[%s2941_s9 + $0xb8] sm:$0xff] %v1956_v37  ;;  %v1368_v47 = vmul.f32 1.442695, %v1577_v18  ;;  %v1576_v32 = vclamps-f32 %v1221_v4, 5.0 }
 0x239   :  { %v1958_v22 = vpop.eup %1957 }
 0x23a   :  { %1465 = vst [vmem:[%s2942_s8 + $0xb8] sm:$0xff] %v1433_v5  ;;  %v1432_v13 = vmul.f32 %v1958_v22, %v2650_v59  ;;  %1496 = vst [vmem:[%s2941_s9 + $0xb0] sm:$0xff] %v1958_v22  ;;  %1963 = vpow2.f32 %v1368_v47  ;;  %v1366_v56 = vmul.f32 1.442695, %v1576_v32 }
 0x23c   :  { %1464 = vst [vmem:[%s2942_s8 + $0xb0] sm:$0xff] %v1432_v13  ;;  %1965 = vpow2.f32 %v1366_v56 }
 0x23d   :  { %v1850_v1 = vpop.f32.mrf.mxu0 }
 0x23e   :  { %v1579_v61 = vclamps-f32 %v1850_v1, 5.0 }
 0x23f   :  { %v1960_v40 = vpop.eup %1959  ;;  %v1231_v25 = vpop.f32.mrf.mxu0 }
 0x240   :  { %v1435_v39 = vmul.f32 %v1960_v40, %v2668_v16  ;;  %1499 = vst [vmem:[%s2941_s9 + $0xc8] sm:$0xff] %v1960_v40  ;;  %v1372_v59 = vmul.f32 1.442695, %v1579_v61  ;;  %v1578_v26 = vclamps-f32 %v1231_v25, 5.0 }
 0x241   :  { %v1962_v42 = vpop.eup %1961 }
 0x242   :  { %1467 = vst [vmem:[%s2942_s8 + $0xc8] sm:$0xff] %v1435_v39  ;;  %v1434_v50 = vmul.f32 %v1962_v42, %v2662_v12  ;;  %1498 = vst [vmem:[%s2941_s9 + $0xc0] sm:$0xff] %v1962_v42  ;;  %1967 = vpow2.f32 %v1372_v59  ;;  %v1370_v45 = vmul.f32 1.442695, %v1578_v26 }
 0x244   :  { %1466 = vst [vmem:[%s2942_s8 + $0xc0] sm:$0xff] %v1434_v50  ;;  %1969 = vpow2.f32 %v1370_v45 }
 0x245   :  { %v1853_v16 = vpop.f32.mrf.mxu0 }
 0x246   :  { %v1581_v2 = vclamps-f32 %v1853_v16, 5.0 }
 0x247   :  { %v1964_v19 = vpop.eup %1963  ;;  %v1241_v36 = vpop.f32.mrf.mxu0 }
 0x248   :  { %v1437_v10 = vmul.f32 %v1964_v19, %v2680_v51  ;;  %1501 = vst [vmem:[%s2941_s9 + $0xd8] sm:$0xff] %v1964_v19  ;;  %v1376_v12 = vmul.f32 1.442695, %v1581_v2  ;;  %v1580_v7 = vclamps-f32 %v1241_v36, 5.0 }
 0x249   :  { %v1966_v29 = vpop.eup %1965 }
 0x24a   :  { %1469 = vst [vmem:[%s2942_s8 + $0xd8] sm:$0xff] %v1437_v10  ;;  %v1436_v30 = vmul.f32 %v1966_v29, %v2674_v46  ;;  %1500 = vst [vmem:[%s2941_s9 + $0xd0] sm:$0xff] %v1966_v29  ;;  %1971 = vpow2.f32 %v1376_v12  ;;  %v1374_v54 = vmul.f32 1.442695, %v1580_v7 }
 0x24c   :  { %1468 = vst [vmem:[%s2942_s8 + $0xd0] sm:$0xff] %v1436_v30  ;;  %1973 = vpow2.f32 %v1374_v54 }
 0x24f   :  { %v1968_v51 = vpop.eup %1967 }
 0x250   :  { %v1439_v14 = vmul.f32 %v1968_v51, %v2692_v24  ;;  %1503 = vst [vmem:[%s2941_s9 + $0xe8] sm:$0xff] %v1968_v51 }
 0x251   :  { %v1970_v23 = vpop.eup %1969 }
 0x252   :  { %1471 = vst [vmem:[%s2942_s8 + $0xe8] sm:$0xff] %v1439_v14  ;;  %v1438_v46 = vmul.f32 %v1970_v23, %v2686_v20  ;;  %1502 = vst [vmem:[%s2941_s9 + $0xe0] sm:$0xff] %v1970_v23 }
 0x254   :  { %1470 = vst [vmem:[%s2942_s8 + $0xe0] sm:$0xff] %v1438_v46 }
 0x257   :  { %v1972_v24 = vpop.eup %1971 }
 0x258   :  { %v1441_v6 = vmul.f32 %v1972_v24, %v685_v62  ;;  %1505 = vst [vmem:[%s2941_s9 + $0xf8] sm:$0xff] %v1972_v24 }
 0x259   :  { %v1974_v48 = vpop.eup %1973 }
 0x25a   :  { %1473 = vst [vmem:[%s2942_s8 + $0xf8] sm:$0xff] %v1441_v6  ;;  %v1440_v20 = vmul.f32 %v1974_v48, %v2698_v34  ;;  %1504 = vst [vmem:[%s2941_s9 + $0xf0] sm:$0xff] %v1974_v48 }
 0x25c   :  { %1472 = vst [vmem:[%s2942_s8 + $0xf0] sm:$0xff] %v1440_v20 }

// kernel: div.9
= control target key start
LH: loop header
LB: loop body
LE: loop exit
PB: predicated region body
PF: predicated region fallthrough
CT: control target
= control target key end

     0   :  { %s212_s0 = inlined_call_operand.vmem [shape: f32[64,128], index: 0, kind: input, shape index: {}]   ;;  %s213_s1 = inlined_call_operand.vmem [shape: f32[64,128], index: 1, kind: input, shape index: {}]   ;;  %s214_s2 = inlined_call_operand.vmem [shape: f32[64,128], index: 2, kind: output, shape index: {}]  }
   0x1   :  { %v4_v0 = vld [vmem:[%s213_s1] sm:$0xff]  ;;  %v89_v1 = vld [vmem:[%s213_s1 + $0x8] sm:$0xff]  ;;  %v92_v2 = vld [vmem:[%s213_s1 + $0x10] sm:$0xff] }
   0x2   :  { %109 = vrcp.f32 %v4_v0  ;;  %v95_v3 = vld [vmem:[%s213_s1 + $0x18] sm:$0xff]  ;;  %v98_v4 = vld [vmem:[%s213_s1 + $0x20] sm:$0xff]  ;;  %v101_v5 = vld [vmem:[%s213_s1 + $0x28] sm:$0xff] }
   0x3   :  { %111 = vrcp.f32 %v89_v1  ;;  %v104_v6 = vld [vmem:[%s213_s1 + $0x30] sm:$0xff]  ;;  %v107_v7 = vld [vmem:[%s213_s1 + $0x38] sm:$0xff]  ;;  %v3_v8 = vld [vmem:[%s212_s0] sm:$0xff] }
   0x4   :  { %113 = vrcp.f32 %v92_v2  ;;  %v88_v9 = vld [vmem:[%s212_s0 + $0x8] sm:$0xff]  ;;  %v91_v11 = vld [vmem:[%s212_s0 + $0x10] sm:$0xff]  ;;  %v94_v14 = vld [vmem:[%s212_s0 + $0x18] sm:$0xff] }
   0x5   :  { %115 = vrcp.f32 %v95_v3  ;;  %v97_v17 = vld [vmem:[%s212_s0 + $0x20] sm:$0xff]  ;;  %v100_v20 = vld [vmem:[%s212_s0 + $0x28] sm:$0xff]  ;;  %v103_v23 = vld [vmem:[%s212_s0 + $0x30] sm:$0xff] }
   0x6   :  { %117 = vrcp.f32 %v98_v4  ;;  %v106_v26 = vld [vmem:[%s212_s0 + $0x38] sm:$0xff] }
   0x7   :  { %119 = vrcp.f32 %v101_v5 }
   0x8   :  { %121 = vrcp.f32 %v104_v6 }
   0x9   :  { %123 = vrcp.f32 %v107_v7 }
   0xf   :  { %v110_v10 = vpop.eup %109 }
  0x10   :  { %v112_v12 = vpop.eup %111  ;;  %v8_v13 = vmul.f32 %v110_v10, %v3_v8 }
  0x11   :  { %v114_v15 = vpop.eup %113  ;;  %v18_v16 = vmul.f32 %v112_v12, %v88_v9 }
  0x12   :  { %v116_v18 = vpop.eup %115  ;;  %10 = vst [vmem:[%s214_s2] sm:$0xff] %v8_v13  ;;  %v29_v19 = vmul.f32 %v114_v15, %v91_v11 }
  0x13   :  { %v118_v21 = vpop.eup %117  ;;  %90 = vst [vmem:[%s214_s2 + $0x8] sm:$0xff] %v18_v16  ;;  %v40_v22 = vmul.f32 %v116_v18, %v94_v14 }
  0x14   :  { %v120_v24 = vpop.eup %119  ;;  %93 = vst [vmem:[%s214_s2 + $0x10] sm:$0xff] %v29_v19  ;;  %v51_v25 = vmul.f32 %v118_v21, %v97_v17 }
  0x15   :  { %v122_v27 = vpop.eup %121  ;;  %96 = vst [vmem:[%s214_s2 + $0x18] sm:$0xff] %v40_v22  ;;  %v62_v28 = vmul.f32 %v120_v24, %v100_v20 }
  0x16   :  { %v124_v29 = vpop.eup %123  ;;  %99 = vst [vmem:[%s214_s2 + $0x20] sm:$0xff] %v51_v25  ;;  %v73_v30 = vmul.f32 %v122_v27, %v103_v23 }
  0x17   :  { %102 = vst [vmem:[%s214_s2 + $0x28] sm:$0xff] %v62_v28  ;;  %v84_v31 = vmul.f32 %v124_v29, %v106_v26 }
  0x18   :  { %105 = vst [vmem:[%s214_s2 + $0x30] sm:$0xff] %v73_v30 }
  0x19   :  { %108 = vst [vmem:[%s214_s2 + $0x38] sm:$0xff] %v84_v31 }

// kernel: graph_transformer_layer.12
= control target key start
LH: loop header
LB: loop body
LE: loop exit
PB: predicated region body
PF: predicated region fallthrough
CT: control target
= control target key end

     0   :  { %v1102_v1 = vmov 0   ;;  %s1757_s3 = inlined_call_operand.vmem [shape: bf16[128,256], index: 3, kind: input, shape index: {}]   ;;  %s1758_s0 = inlined_call_operand.vmem [shape: f32[256,128], index: 0, kind: input, shape index: {}]   ;;  %s1759_s1 = inlined_call_operand.vmem [shape: f32[1,128], index: 1, kind: input, shape index: {}]   ;;  %s1760_s2 = inlined_call_operand.vmem [shape: f32[1,128], index: 2, kind: input, shape index: {}]   ;;  %s1761_s5 = inlined_call_operand.vmem [shape: bf16[256,128], index: 5, kind: input, shape index: {}]   ;;  %s1762_s4 = inlined_call_operand.vmem [shape: f32[1,256], index: 4, kind: input, shape index: {}]   ;;  %s1763_s6 = inlined_call_operand.vmem [shape: f32[1,128], index: 6, kind: input, shape index: {}]   ;;  %s1764_s7 = inlined_call_operand.vmem [shape: f32[256,128], index: 7, kind: output, shape index: {}]  }
   0x1   :  { %v1062_v0 = vld [vmem:[%s1757_s3 + $0x74] ss:$8 sps:$4 sm:$0xff]   ;;  %293 = vmatprep.mubr.bf16.mxu0 %v1102_v1  ;;  %v1064_v2 = vld [vmem:[%s1757_s3 + $0x70] ss:$8 sps:$4 sm:$0xff]   ;;  %v1065_v3 = vld [vmem:[%s1757_s3 + $0x64] ss:$8 sps:$4 sm:$0xff]  }
   0x2   :  { %261 = vmatprep.subr.bf16.mxu0 %v1062_v0  ;;  %v1067_v4 = vld [vmem:[%s1757_s3 + $0x60] ss:$8 sps:$4 sm:$0xff]   ;;  %v1068_v5 = vld [vmem:[%s1757_s3 + $0x54] ss:$8 sps:$4 sm:$0xff]   ;;  %v1070_v6 = vld [vmem:[%s1757_s3 + $0x50] ss:$8 sps:$4 sm:$0xff]  }
   0x3   :  { %262 = vmatpush1.bf16.msra.mxu0 %v1064_v2  ;;  %v1071_v7 = vld [vmem:[%s1757_s3 + $0x44] ss:$8 sps:$4 sm:$0xff]   ;;  %v1073_v8 = vld [vmem:[%s1757_s3 + $0x40] ss:$8 sps:$4 sm:$0xff]   ;;  %v1074_v9 = vld [vmem:[%s1757_s3 + $0x34] ss:$8 sps:$4 sm:$0xff]  }
   0x4   :  { %263 = vmatprep.subr.bf16.mxu0 %v1065_v3  ;;  %v1076_v10 = vld [vmem:[%s1757_s3 + $0x30] ss:$8 sps:$4 sm:$0xff]   ;;  %v1077_v11 = vld [vmem:[%s1757_s3 + $0x24] ss:$8 sps:$4 sm:$0xff]   ;;  %v1183_v13 = vld [vmem:[%s1759_s1] ss:$0 sm:$0xff] }
   0x5   :  { %v27_v12 = vld [vmem:[%s1758_s0] sm:$0xff]  ;;  %v28_v14 = vld [vmem:[%s1758_s0 + $0x8] sm:$0xff]  ;;  %v45_v18 = vld [vmem:[%s1758_s0 + $0x90] sm:$0xff] }
   0x6   :  { %v43_v15 = vld [vmem:[%s1758_s0 + $0x80] sm:$0xff]  ;;  %v44_v16 = vld [vmem:[%s1758_s0 + $0x88] sm:$0xff]  ;;  %v1080_v19 = vld [vmem:[%s1757_s3 + $0x14] ss:$8 sps:$4 sm:$0xff]   ;;  %v66_v20 = vmul.f32 %v1183_v13, %v27_v12  ;;  %v67_v22 = vmul.f32 %v1183_v13, %v28_v14  ;;  %v84_v28 = vmul.f32 %v1183_v13, %v45_v18 }
   0x7   :  { %264 = vmatpush1.bf16.msra.mxu0 %v1067_v4  ;;  %v1079_v17 = vld [vmem:[%s1757_s3 + $0x20] ss:$8 sps:$4 sm:$0xff]   ;;  %v46_v21 = vld [vmem:[%s1758_s0 + $0x98] sm:$0xff]  ;;  %v82_v24 = vmul.f32 %v1183_v13, %v43_v15  ;;  %v83_v25 = vmul.f32 %v1183_v13, %v44_v16  ;;  %v49_v29 = vld [vmem:[%s1758_s0 + $0xb0] sm:$0xff] }
   0x8   :  { %265 = vmatprep.subr.bf16.mxu0 %v1068_v5  ;;  %v1211_v23 = vld [vmem:[%s1760_s2] ss:$0 sm:$0xff]  ;;  %v48_v27 = vld [vmem:[%s1758_s0 + $0xa8] sm:$0xff]  ;;  %v50_v30 = vld [vmem:[%s1758_s0 + $0xb8] sm:$0xff]  ;;  %v85_v34 = vmul.f32 %v1183_v13, %v46_v21  ;;  %v88_v48 = vmul.f32 %v1183_v13, %v49_v29 }
   0x9   :  { %v47_v26 = vld [vmem:[%s1758_s0 + $0xa0] sm:$0xff]  ;;  %v1082_v31 = vld [vmem:[%s1757_s3 + $0x10] ss:$8 sps:$4 sm:$0xff]   ;;  %v1232_v32 = vadd.f32 %v1211_v23, %v82_v24  ;;  %v1235_v33 = vadd.f32 %v1211_v23, %v83_v25  ;;  %v52_v36 = vld [vmem:[%s1758_s0 + $0xc8] sm:$0xff]  ;;  %v1248_v38 = vadd.f32 %v1211_v23, %v66_v20  ;;  %v1254_v40 = vadd.f32 %v1211_v23, %v84_v28 }
   0xa   :  { %v51_v35 = vld [vmem:[%s1758_s0 + $0xc0] sm:$0xff]  ;;  %v29_v39 = vld [vmem:[%s1758_s0 + $0x10] sm:$0xff]  ;;  %v86_v41 = vmul.f32 %v1183_v13, %v47_v26  ;;  %v87_v42 = vmul.f32 %v1183_v13, %v48_v27  ;;  %v1265_v45 = vadd.f32 %v1211_v23, %v67_v22  ;;  %v30_v46 = vld [vmem:[%s1758_s0 + $0x18] sm:$0xff]  ;;  %v1271_v47 = vadd.f32 %v1211_v23, %v85_v34 }
   0xb   :  { %266 = vmatpush1.bf16.msra.mxu0 %v1070_v6  ;;  %v1083_v37 = vld [vmem:[%s1757_s3 + $0x4] ss:$8 sps:$4 sm:$0xff]   ;;  %v53_v43 = vld [vmem:[%s1758_s0 + $0xd0] sm:$0xff]  ;;  %v1085_v44 = vld [vmem:[%s1757_s3] ss:$8 sps:$4 sm:$0xff]   ;;  %v89_v49 = vmul.f32 %v1183_v13, %v50_v30  ;;  %v90_v54 = vmul.f32 %v1183_v13, %v51_v35  ;;  %v91_v55 = vmul.f32 %v1183_v13, %v52_v36  ;;  %v1299_v59 = vadd.f32 %v1211_v23, %v88_v48 }
   0xc   :  { %267 = vmatprep.subr.bf16.mxu0 %v1071_v7  ;;  %v54_v50 = vld [vmem:[%s1758_s0 + $0xd8] sm:$0xff]  ;;  %v55_v51 = vld [vmem:[%s1758_s0 + $0xe0] sm:$0xff]  ;;  %v1282_v52 = vadd.f32 %v1211_v23, %v86_v41  ;;  %v1285_v53 = vadd.f32 %v1211_v23, %v87_v42  ;;  %v56_v56 = vld [vmem:[%s1758_s0 + $0xe8] sm:$0xff]  ;;  %v92_v61 = vmul.f32 %v1183_v13, %v53_v43  ;;  %v68_v63 = vmul.f32 %v1183_v13, %v29_v39 }
   0xd   :  { %v57_v57 = vld [vmem:[%s1758_s0 + $0xf0] sm:$0xff]  ;;  %v58_v58 = vld [vmem:[%s1758_s0 + $0xf8] sm:$0xff]  ;;  %v1302_v60 = vadd.f32 %v1211_v23, %v89_v49  ;;  %v1310_v0 = vadd.f32 %v1211_v23, %v90_v54  ;;  %v1313_v2 = vadd.f32 %v1211_v23, %v91_v55  ;;  %v93_v3 = vmul.f32 %v1183_v13, %v54_v50  ;;  %v1090_v18 = vld [vmem:[%s1761_s5 + $0x68] sm:$0xff]  }
   0xe   :  { %v1086_v62 = vld [vmem:[%s1761_s5 + $0x78] sm:$0xff]   ;;  %v69_v5 = vmul.f32 %v1183_v13, %v30_v46  ;;  %v1321_v6 = vadd.f32 %v1211_v23, %v92_v61  ;;  %v94_v7 = vmul.f32 %v1183_v13, %v55_v51  ;;  %v96_v12 = vmul.f32 %v1183_v13, %v57_v57  ;;  %v1089_v15 = vld [vmem:[%s1761_s5 + $0x30] sm:$0xff]   ;;  %v31_v21 = vld [vmem:[%s1758_s0 + $0x20] sm:$0xff] }
   0xf   :  { %268 = vmatpush1.bf16.msra.mxu0 %v1073_v8  ;;  %v1087_v4 = vld [vmem:[%s1761_s5 + $0x38] sm:$0xff]   ;;  %v95_v8 = vmul.f32 %v1183_v13, %v56_v56  ;;  %949 = vmatprep.subr.bf16.mxu1 %v1086_v62  ;;  %v97_v14 = vmul.f32 %v1183_v13, %v58_v58  ;;  %v32_v22 = vld [vmem:[%s1758_s0 + $0x28] sm:$0xff]  ;;  %v1360_v24 = vadd.f32 %v1211_v23, %v68_v63  ;;  %v1092_v27 = vld [vmem:[%s1761_s5 + $0x60] sm:$0xff]  }
  0x10   :  { %269 = vmatprep.subr.bf16.mxu0 %v1074_v9  ;;  %v1088_v9 = vld [vmem:[%s1761_s5 + $0x70] sm:$0xff]   ;;  %950 = vmatpush3.bf16.msra.mxu1 %v1087_v4  ;;  %v1339_v16 = vadd.f32 %v1211_v23, %v94_v7  ;;  %v1363_v25 = vadd.f32 %v1211_v23, %v69_v5  ;;  %v1091_v26 = vld [vmem:[%s1761_s5 + $0x28] sm:$0xff]   ;;  %v1093_v28 = vld [vmem:[%s1761_s5 + $0x20] sm:$0xff]   ;;  %v71_v34 = vmul.f32 %v1183_v13, %v32_v22 }
  0x11   :  { %951 = vmatprep.subr.bf16.mxu1 %v1088_v9  ;;  %v1351_v20 = vadd.f32 %v1211_v23, %v97_v14  ;;  %v1094_v29 = vld [vmem:[%s1761_s5 + $0x58] sm:$0xff]   ;;  %v33_v39 = vld [vmem:[%s1758_s0 + $0x30] sm:$0xff]  ;;  %v35_v49 = vld [vmem:[%s1758_s0 + $0x40] sm:$0xff] }
  0x12   :  { %v138_v30 = vpack.c.bf16 %v1363_v25, %v1360_v24  ;;  %v1386_v36 = vadd.f32 %v1211_v23, %v71_v34  ;;  %v34_v41 = vld [vmem:[%s1758_s0 + $0x38] sm:$0xff]  ;;  %v72_v43 = vmul.f32 %v1183_v13, %v33_v39  ;;  %v36_v50 = vld [vmem:[%s1758_s0 + $0x48] sm:$0xff]  ;;  %v74_v54 = vmul.f32 %v1183_v13, %v35_v49  ;;  %v37_v58 = vld [vmem:[%s1758_s0 + $0x50] sm:$0xff] }
  0x13   :  { %270 = vmatpush1.bf16.msra.mxu0 %v1076_v10  ;;  %v137_v10 = vpack.c.bf16 %v1265_v45, %v1248_v38  ;;  %v75_v55 = vmul.f32 %v1183_v13, %v36_v50  ;;  %v38_v61 = vld [vmem:[%s1758_s0 + $0x58] sm:$0xff]  ;;  %v76_v63 = vmul.f32 %v1183_v13, %v37_v58  ;;  %v39_v7 = vld [vmem:[%s1758_s0 + $0x60] sm:$0xff]  ;;  %v146_v34 = vpack.c.bf16 %v1271_v47, %v1254_v40  ;;  %v1099_v39 = vld [vmem:[%s1761_s5 + $0x8] sm:$0xff]  }
  0x14   :  { %271 = vmatprep.subr.bf16.mxu0 %v1077_v11  ;;  %v1331_v11 = vadd.f32 %v1211_v23, %v93_v3  ;;  %952 = vmatpush3.bf16.msra.mxu1 %v1089_v15  ;;  %v1403_v46 = vadd.f32 %v1211_v23, %v72_v43  ;;  %v1420_v56 = vadd.f32 %v1211_v23, %v74_v54 }
  0x15   :  { %953 = vmatprep.subr.bf16.mxu1 %v1090_v18  ;;  %v1423_v57 = vadd.f32 %v1211_v23, %v75_v55  ;;  %v77_v3 = vmul.f32 %v1183_v13, %v38_v61  ;;  %v1437_v4 = vadd.f32 %v1211_v23, %v76_v63  ;;  %v41_v18 = vld [vmem:[%s1758_s0 + $0x70] sm:$0xff]  ;;  %v147_v43 = vpack.c.bf16 %v1285_v53, %v1282_v52  ;;  %v169_v63 = vld [vmem:[%s1762_s4] sm:$0x3] }
  0x16   :  { %v149_v49 = vpack.c.bf16 %v1313_v2, %v1310_v0  ;;  %v150_v50 = vpack.c.bf16 %v1331_v11, %v1321_v6  ;;  %v171_v55 = vlaneseq }
  0x17   :  { %272 = vmatpush1.bf16.msra.mxu0 %v1079_v17  ;;  %v1342_v17 = vadd.f32 %v1211_v23, %v95_v8  ;;  %v141_v62 = vpack.c.bf16 %v1423_v57, %v1420_v56  ;;  %v1440_v5 = vadd.f32 %v1211_v23, %v77_v3  ;;  %v40_v8 = vld [vmem:[%s1758_s0 + $0x68] sm:$0xff] }
  0x18   :  { %273 = vmatprep.subr.bf16.mxu0 %v1080_v19  ;;  %v1348_v19 = vadd.f32 %v1211_v23, %v96_v12  ;;  %954 = vmatpush3.bf16.msra.mxu1 %v1091_v26  ;;  %v79_v12 = vmul.f32 %v1183_v13, %v40_v8  ;;  %v80_v26 = vmul.f32 %v1183_v13, %v41_v18  ;;  %v172_v58 = vshrl.u32 %v171_v55, 7 }
  0x19   :  { %955 = vmatprep.subr.bf16.mxu1 %v1092_v27  ;;  %v142_v9 = vpack.c.bf16 %v1440_v5, %v1437_v4 }
  0x1a   :  { %v1457_v15 = vadd.f32 %v1211_v23, %v79_v12  ;;  %v152_v54 = vpack.c.bf16 %v1351_v20, %v1348_v19  ;;  %v177_v61 = vsub.s32 1, %v172_v58 }
  0x1b   :  { %274 = vmatpush1.bf16.msra.mxu0 %v1082_v31  ;;  %v70_v31 = vmul.f32 %v1183_v13, %v31_v21  ;;  %v42_v21 = vld [vmem:[%s1758_s0 + $0x78] sm:$0xff] }
  0x1c   :  { %275 = vmatprep.subr.bf16.mxu0 %v1083_v37  ;;  %956 = vmatpush3.bf16.msra.mxu1 %v1093_v28  ;;  %v1095_v37 = vld [vmem:[%s1761_s5 + $0x18] sm:$0xff]   ;;  %v81_v27 = vmul.f32 %v1183_v13, %v42_v21  ;;  %v1471_v28 = vadd.f32 %v1211_v23, %v80_v26 }
  0x1d   :  { %v1383_v35 = vadd.f32 %v1211_v23, %v70_v31  ;;  %957 = vmatprep.subr.bf16.mxu1 %v1094_v29  ;;  %v145_v31 = vpack.c.bf16 %v1235_v33, %v1232_v32 }
  0x1e   :  { %v1474_v29 = vadd.f32 %v1211_v23, %v81_v27 }
  0x1f   :  { %276 = vmatpush1.bf16.msra.mxu0 %v1085_v44  ;;  %v139_v42 = vpack.c.bf16 %v1386_v36, %v1383_v35  ;;  %v73_v44 = vmul.f32 %v1183_v13, %v34_v41  ;;  %v1100_v41 = vld [vmem:[%s1761_s5 + $0x40] sm:$0xff]  }
  0x20   :  { %958 = vmatpush3.bf16.msra.mxu1 %v1095_v37  ;;  %v1098_v37 = vld [vmem:[%s1761_s5 + $0x48] sm:$0xff]  }
  0x21   :  { %v1406_v48 = vadd.f32 %v1211_v23, %v73_v44  ;;  %v148_v44 = vpack.c.bf16 %v1302_v60, %v1299_v59 }
  0x22   :  { %294 = vmatmul.mubr.bf16.vlgmr.msra.gmra.mxu0 %v137_v10  ;;  %v78_v10 = vmul.f32 %v1183_v13, %v39_v7  ;;  %v1096_v13 = vld [vmem:[%s1761_s5 + $0x50] sm:$0xff]   ;;  %v1524_v7 = vrot.slane %v169_v63, %v177_v61 }
  0x23   :  { %303 = vmatprep.mubr.bf16.mxu0 %v1102_v1  ;;  %v140_v51 = vpack.c.bf16 %v1406_v48, %v1403_v46  ;;  %959 = vmatprep.subr.bf16.mxu1 %v1096_v13 }
  0x24   :  { %v1454_v14 = vadd.f32 %v1211_v23, %v78_v10  ;;  %v1097_v23 = vld [vmem:[%s1761_s5 + $0x10] sm:$0xff]  }
  0x25   :  { %960 = vmatpush3.bf16.msra.mxu1 %v1097_v23 }
  0x26   :  { %v143_v22 = vpack.c.bf16 %v1457_v15, %v1454_v14  ;;  %961 = vmatprep.subr.bf16.mxu1 %v1098_v37 }
  0x29   :  { %962 = vmatpush3.bf16.msra.mxu1 %v1099_v39 }
  0x2a   :  { %304 = vmatmul.mubr.bf16.gmra.mxu0 %v138_v30  ;;  %v144_v30 = vpack.c.bf16 %v1474_v29, %v1471_v28  ;;  %963 = vmatprep.subr.bf16.mxu1 %v1100_v41 }
  0x2b   :  { %313 = vmatprep.mubr.bf16.mxu0 %v1102_v1 }
  0x32   :  { %314 = vmatmul.mubr.bf16.gmra.mxu0 %v139_v42  ;;  %v1101_v42 = vld [vmem:[%s1761_s5] sm:$0xff]  }
  0x33   :  { %323 = vmatprep.mubr.bf16.mxu0 %v1102_v1  ;;  %964 = vmatpush3.bf16.msra.mxu1 %v1101_v42 }
  0x3a   :  { %324 = vmatmul.mubr.bf16.gmra.mxu0 %v140_v51  ;;  %v151_v51 = vpack.c.bf16 %v1342_v17, %v1339_v16 }
  0x3b   :  { %333 = vmatprep.mubr.bf16.mxu0 %v1102_v1 }
  0x42   :  { %334 = vmatmul.mubr.bf16.gmra.mxu0 %v141_v62  ;;  %v173_v62 = vsub.s32 0, %v172_v58 }
  0x43   :  { %343 = vmatprep.mubr.bf16.mxu0 %v1102_v1 }
  0x44   :  { %v1526_v8 = vrot.slane %v169_v63, %v173_v62 }
  0x4a   :  { %344 = vmatmul.mubr.bf16.gmra.mxu0 %v142_v9 }
  0x4b   :  { %353 = vmatprep.mubr.bf16.mxu0 %v1102_v1 }
  0x52   :  { %354 = vmatmul.mubr.bf16.gmra.mxu0 %v143_v22 }
  0x53   :  { %363 = vmatprep.mubr.bf16.mxu0 %v1102_v1 }
  0x5a   :  { %364 = vmatmul.mubr.bf16.gmra.mxu0 %v144_v30 }
  0x5b   :  { %373 = vmatprep.mubr.bf16.mxu0 %v1102_v1 }
  0x62   :  { %374 = vmatmul.mubr.bf16.gmra.mxu0 %v145_v31 }
  0x63   :  { %383 = vmatprep.mubr.bf16.mxu0 %v1102_v1 }
  0x6a   :  { %384 = vmatmul.mubr.bf16.gmra.mxu0 %v146_v34 }
  0x6b   :  { %393 = vmatprep.mubr.bf16.mxu0 %v1102_v1 }
  0x72   :  { %394 = vmatmul.mubr.bf16.gmra.mxu0 %v147_v43 }
  0x73   :  { %403 = vmatprep.mubr.bf16.mxu0 %v1102_v1 }
  0x7a   :  { %404 = vmatmul.mubr.bf16.gmra.mxu0 %v148_v44 }
  0x7b   :  { %413 = vmatprep.mubr.bf16.mxu0 %v1102_v1 }
  0x82   :  { %414 = vmatmul.mubr.bf16.gmra.mxu0 %v149_v49 }
  0x83   :  { %423 = vmatprep.mubr.bf16.mxu0 %v1102_v1 }
  0x8a   :  { %424 = vmatmul.mubr.bf16.gmra.mxu0 %v150_v50 }
  0x8b   :  { %433 = vmatprep.mubr.bf16.mxu0 %v1102_v1 }
  0x92   :  { %434 = vmatmul.mubr.bf16.gmra.mxu0 %v151_v51 }
  0x93   :  { %443 = vmatprep.mubr.bf16.mxu0 %v1102_v1 }
  0x9a   :  { %444 = vmatmul.mubr.bf16.gmra.mxu0 %v152_v54 }
  0xe2   :  { %v295_v3 = vpop.f32.mrf.mxu0 }
  0xe3   :  { %v296_v18 = vadd.f32 %v295_v3, %v1526_v8 }
  0xe4   :  { %v297_v9 = vpop.f32.mrf.mxu0 }
  0xe5   :  { %v298_v1 = vadd.f32 %v297_v9, %v1524_v7  ;;  %v454_v13 = vmax.f32 %v296_v18, 0.0 }
  0xe6   :  { %v299_v10 = vpop.f32.mrf.mxu0 }
  0xe7   :  { %v300_v12 = vadd.f32 %v299_v10, %v1526_v8  ;;  %v455_v30 = vmax.f32 %v298_v1, 0.0 }
  0xe8   :  { %v301_v21 = vpop.f32.mrf.mxu0 }
  0xe9   :  { %v302_v22 = vadd.f32 %v301_v21, %v1524_v7  ;;  %v456_v26 = vmax.f32 %v300_v12, 0.0 }
  0xea   :  { %v305_v27 = vpop.f32.mrf.mxu0 }
  0xeb   :  { %v457_v31 = vmax.f32 %v302_v22, 0.0  ;;  %v518_v37 = vpack.c.bf16 %v456_v26, %v454_v13  ;;  %v306_v43 = vadd.f32 %v305_v27, %v1526_v8 }
  0xec   :  { %v307_v23 = vpop.f32.mrf.mxu0 }
  0xed   :  { %v519_v34 = vpack.c.bf16 %v457_v31, %v455_v30  ;;  %v308_v41 = vadd.f32 %v307_v23, %v1524_v7  ;;  %v458_v58 = vmax.f32 %v306_v43, 0.0 }
  0xee   :  { %v309_v39 = vpop.f32.mrf.mxu0 }
  0xef   :  { %v310_v42 = vadd.f32 %v309_v39, %v1526_v8  ;;  %717 = vmatprep.mubr.bf16.mxu1 %v519_v34  ;;  %v459_v54 = vmax.f32 %v308_v41, 0.0 }
  0xf0   :  { %v311_v44 = vpop.f32.mrf.mxu0  ;;  %718 = vmatmul.mubr.bf16.vlgmr.msra.gmra.mxu1 %v518_v37 }
  0xf1   :  { %v312_v49 = vadd.f32 %v311_v44, %v1524_v7  ;;  %v460_v50 = vmax.f32 %v310_v42, 0.0 }
  0xf2   :  { %v315_v51 = vpop.f32.mrf.mxu0 }
  0xf3   :  { %v461_v55 = vmax.f32 %v312_v49, 0.0  ;;  %v520_v63 = vpack.c.bf16 %v460_v50, %v458_v58  ;;  %v316_v1 = vadd.f32 %v315_v51, %v1526_v8 }
  0xf4   :  { %v317_v61 = vpop.f32.mrf.mxu0 }
  0xf5   :  { %v521_v62 = vpack.c.bf16 %v461_v55, %v459_v54  ;;  %v318_v9 = vadd.f32 %v317_v61, %v1524_v7  ;;  %v462_v30 = vmax.f32 %v316_v1, 0.0 }
  0xf6   :  { %v319_v3 = vpop.f32.mrf.mxu0 }
  0xf7   :  { %v320_v10 = vadd.f32 %v319_v3, %v1526_v8  ;;  %725 = vmatprep.mubr.bf16.mxu1 %v521_v62  ;;  %v463_v26 = vmax.f32 %v318_v9, 0.0 }
  0xf8   :  { %v321_v12 = vpop.f32.mrf.mxu0  ;;  %726 = vmatmul.mubr.bf16.gmra.mxu1 %v520_v63 }
  0xf9   :  { %v322_v18 = vadd.f32 %v321_v12, %v1524_v7  ;;  %v464_v21 = vmax.f32 %v320_v10, 0.0 }
  0xfa   :  { %v325_v22 = vpop.f32.mrf.mxu0 }
  0xfb   :  { %v465_v27 = vmax.f32 %v322_v18, 0.0  ;;  %v522_v23 = vpack.c.bf16 %v464_v21, %v462_v30  ;;  %v326_v41 = vadd.f32 %v325_v22, %v1526_v8 }
  0xfc   :  { %v327_v31 = vpop.f32.mrf.mxu0 }
  0xfd   :  { %v523_v13 = vpack.c.bf16 %v465_v27, %v463_v26  ;;  %v328_v37 = vadd.f32 %v327_v31, %v1524_v7  ;;  %v466_v54 = vmax.f32 %v326_v41, 0.0 }
  0xfe   :  { %v329_v34 = vpop.f32.mrf.mxu0 }
  0xff   :  { %v330_v39 = vadd.f32 %v329_v34, %v1526_v8  ;;  %733 = vmatprep.mubr.bf16.mxu1 %v523_v13  ;;  %v467_v50 = vmax.f32 %v328_v37, 0.0 }
 0x100   :  { %v331_v42 = vpop.f32.mrf.mxu0  ;;  %734 = vmatmul.mubr.bf16.gmra.mxu1 %v522_v23 }
 0x101   :  { %v332_v43 = vadd.f32 %v331_v42, %v1524_v7  ;;  %v468_v44 = vmax.f32 %v330_v39, 0.0 }
 0x102   :  { %v335_v49 = vpop.f32.mrf.mxu0 }
 0x103   :  { %v469_v51 = vmax.f32 %v332_v43, 0.0  ;;  %v524_v61 = vpack.c.bf16 %v468_v44, %v466_v54  ;;  %v336_v9 = vadd.f32 %v335_v49, %v1526_v8 }
 0x104   :  { %v337_v55 = vpop.f32.mrf.mxu0 }
 0x105   :  { %v525_v58 = vpack.c.bf16 %v469_v51, %v467_v50  ;;  %v338_v63 = vadd.f32 %v337_v55, %v1524_v7  ;;  %v470_v26 = vmax.f32 %v336_v9, 0.0 }
 0x106   :  { %v339_v62 = vpop.f32.mrf.mxu0 }
 0x107   :  { %v340_v3 = vadd.f32 %v339_v62, %v1526_v8  ;;  %741 = vmatprep.mubr.bf16.mxu1 %v525_v58  ;;  %v471_v21 = vmax.f32 %v338_v63, 0.0 }
 0x108   :  { %v341_v10 = vpop.f32.mrf.mxu0  ;;  %742 = vmatmul.mubr.bf16.gmra.mxu1 %v524_v61 }
 0x109   :  { %v342_v1 = vadd.f32 %v341_v10, %v1524_v7  ;;  %v472_v12 = vmax.f32 %v340_v3, 0.0 }
 0x10a   :  { %v345_v18 = vpop.f32.mrf.mxu0 }
 0x10b   :  { %v473_v22 = vmax.f32 %v342_v1, 0.0  ;;  %v526_v31 = vpack.c.bf16 %v472_v12, %v470_v26  ;;  %v346_v37 = vadd.f32 %v345_v18, %v1526_v8 }
 0x10c   :  { %v347_v27 = vpop.f32.mrf.mxu0 }
 0x10d   :  { %v527_v30 = vpack.c.bf16 %v473_v22, %v471_v21  ;;  %v348_v23 = vadd.f32 %v347_v27, %v1524_v7  ;;  %v474_v50 = vmax.f32 %v346_v37, 0.0 }
 0x10e   :  { %v349_v13 = vpop.f32.mrf.mxu0 }
 0x10f   :  { %v350_v34 = vadd.f32 %v349_v13, %v1526_v8  ;;  %749 = vmatprep.mubr.bf16.mxu1 %v527_v30  ;;  %v475_v44 = vmax.f32 %v348_v23, 0.0 }
 0x110   :  { %v351_v39 = vpop.f32.mrf.mxu0  ;;  %750 = vmatmul.mubr.bf16.gmra.mxu1 %v526_v31 }
 0x111   :  { %v352_v41 = vadd.f32 %v351_v39, %v1524_v7  ;;  %v476_v42 = vmax.f32 %v350_v34, 0.0 }
 0x112   :  { %v355_v43 = vpop.f32.mrf.mxu0 }
 0x113   :  { %v477_v49 = vmax.f32 %v352_v41, 0.0  ;;  %v528_v55 = vpack.c.bf16 %v476_v42, %v474_v50  ;;  %v356_v63 = vadd.f32 %v355_v43, %v1526_v8 }
 0x114   :  { %v357_v51 = vpop.f32.mrf.mxu0 }
 0x115   :  { %v529_v54 = vpack.c.bf16 %v477_v49, %v475_v44  ;;  %v358_v61 = vadd.f32 %v357_v51, %v1524_v7  ;;  %v478_v21 = vmax.f32 %v356_v63, 0.0 }
 0x116   :  { %v359_v58 = vpop.f32.mrf.mxu0 }
 0x117   :  { %v360_v62 = vadd.f32 %v359_v58, %v1526_v8  ;;  %757 = vmatprep.mubr.bf16.mxu1 %v529_v54  ;;  %v479_v12 = vmax.f32 %v358_v61, 0.0 }
 0x118   :  { %v361_v3 = vpop.f32.mrf.mxu0  ;;  %758 = vmatmul.mubr.bf16.gmra.mxu1 %v528_v55 }
 0x119   :  { %v362_v9 = vadd.f32 %v361_v3, %v1524_v7  ;;  %v480_v10 = vmax.f32 %v360_v62, 0.0 }
 0x11a   :  { %v365_v1 = vpop.f32.mrf.mxu0 }
 0x11b   :  { %v481_v18 = vmax.f32 %v362_v9, 0.0  ;;  %v530_v27 = vpack.c.bf16 %v480_v10, %v478_v21  ;;  %v366_v23 = vadd.f32 %v365_v1, %v1526_v8 }
 0x11c   :  { %v367_v22 = vpop.f32.mrf.mxu0 }
 0x11d   :  { %v531_v26 = vpack.c.bf16 %v481_v18, %v479_v12  ;;  %v368_v31 = vadd.f32 %v367_v22, %v1524_v7  ;;  %v482_v44 = vmax.f32 %v366_v23, 0.0 }
 0x11e   :  { %v369_v30 = vpop.f32.mrf.mxu0 }
 0x11f   :  { %v370_v13 = vadd.f32 %v369_v30, %v1526_v8  ;;  %765 = vmatprep.mubr.bf16.mxu1 %v531_v26  ;;  %v483_v42 = vmax.f32 %v368_v31, 0.0 }
 0x120   :  { %v371_v34 = vpop.f32.mrf.mxu0  ;;  %766 = vmatmul.mubr.bf16.gmra.mxu1 %v530_v27 }
 0x121   :  { %v372_v37 = vadd.f32 %v371_v34, %v1524_v7  ;;  %v484_v39 = vmax.f32 %v370_v13, 0.0 }
 0x122   :  { %v375_v41 = vpop.f32.mrf.mxu0 }
 0x123   :  { %v485_v43 = vmax.f32 %v372_v37, 0.0  ;;  %v532_v51 = vpack.c.bf16 %v484_v39, %v482_v44  ;;  %v376_v61 = vadd.f32 %v375_v41, %v1526_v8 }
 0x124   :  { %v377_v49 = vpop.f32.mrf.mxu0 }
 0x125   :  { %v533_v50 = vpack.c.bf16 %v485_v43, %v483_v42  ;;  %v378_v55 = vadd.f32 %v377_v49, %v1524_v7  ;;  %v486_v12 = vmax.f32 %v376_v61, 0.0 }
 0x126   :  { %v379_v54 = vpop.f32.mrf.mxu0 }
 0x127   :  { %v380_v58 = vadd.f32 %v379_v54, %v1526_v8  ;;  %773 = vmatprep.mubr.bf16.mxu1 %v533_v50  ;;  %v487_v10 = vmax.f32 %v378_v55, 0.0 }
 0x128   :  { %v381_v62 = vpop.f32.mrf.mxu0  ;;  %774 = vmatmul.mubr.bf16.gmra.mxu1 %v532_v51 }
 0x129   :  { %v382_v63 = vadd.f32 %v381_v62, %v1524_v7  ;;  %v488_v3 = vmax.f32 %v380_v58, 0.0 }
 0x12a   :  { %v385_v9 = vpop.f32.mrf.mxu0 }
 0x12b   :  { %v489_v1 = vmax.f32 %v382_v63, 0.0  ;;  %v534_v22 = vpack.c.bf16 %v488_v3, %v486_v12  ;;  %v386_v31 = vadd.f32 %v385_v9, %v1526_v8 }
 0x12c   :  { %v387_v18 = vpop.f32.mrf.mxu0 }
 0x12d   :  { %v535_v21 = vpack.c.bf16 %v489_v1, %v487_v10  ;;  %v388_v27 = vadd.f32 %v387_v18, %v1524_v7  ;;  %v490_v42 = vmax.f32 %v386_v31, 0.0 }
 0x12e   :  { %v389_v26 = vpop.f32.mrf.mxu0 }
 0x12f   :  { %v390_v30 = vadd.f32 %v389_v26, %v1526_v8  ;;  %781 = vmatprep.mubr.bf16.mxu1 %v535_v21  ;;  %v491_v39 = vmax.f32 %v388_v27, 0.0 }
 0x130   :  { %v391_v13 = vpop.f32.mrf.mxu0  ;;  %782 = vmatmul.mubr.bf16.gmra.mxu1 %v534_v22 }
 0x131   :  { %v392_v23 = vadd.f32 %v391_v13, %v1524_v7  ;;  %v492_v34 = vmax.f32 %v390_v30, 0.0 }
 0x132   :  { %v395_v37 = vpop.f32.mrf.mxu0 }
 0x133   :  { %v493_v41 = vmax.f32 %v392_v23, 0.0  ;;  %v536_v49 = vpack.c.bf16 %v492_v34, %v490_v42  ;;  %v396_v55 = vadd.f32 %v395_v37, %v1526_v8 }
 0x134   :  { %v397_v43 = vpop.f32.mrf.mxu0 }
 0x135   :  { %v537_v44 = vpack.c.bf16 %v493_v41, %v491_v39  ;;  %v398_v51 = vadd.f32 %v397_v43, %v1524_v7  ;;  %v494_v10 = vmax.f32 %v396_v55, 0.0 }
 0x136   :  { %v399_v50 = vpop.f32.mrf.mxu0 }
 0x137   :  { %v400_v54 = vadd.f32 %v399_v50, %v1526_v8  ;;  %789 = vmatprep.mubr.bf16.mxu1 %v537_v44  ;;  %v495_v3 = vmax.f32 %v398_v51, 0.0 }
 0x138   :  { %v401_v58 = vpop.f32.mrf.mxu0  ;;  %790 = vmatmul.mubr.bf16.gmra.mxu1 %v536_v49 }
 0x139   :  { %v402_v61 = vadd.f32 %v401_v58, %v1524_v7  ;;  %v496_v62 = vmax.f32 %v400_v54, 0.0 }
 0x13a   :  { %v405_v63 = vpop.f32.mrf.mxu0 }
 0x13b   :  { %v497_v9 = vmax.f32 %v402_v61, 0.0  ;;  %v538_v18 = vpack.c.bf16 %v496_v62, %v494_v10  ;;  %v406_v27 = vadd.f32 %v405_v63, %v1526_v8 }
 0x13c   :  { %v407_v1 = vpop.f32.mrf.mxu0 }
 0x13d   :  { %v539_v12 = vpack.c.bf16 %v497_v9, %v495_v3  ;;  %v408_v22 = vadd.f32 %v407_v1, %v1524_v7  ;;  %v498_v39 = vmax.f32 %v406_v27, 0.0 }
 0x13e   :  { %v409_v21 = vpop.f32.mrf.mxu0 }
 0x13f   :  { %v410_v26 = vadd.f32 %v409_v21, %v1526_v8  ;;  %797 = vmatprep.mubr.bf16.mxu1 %v539_v12  ;;  %v499_v34 = vmax.f32 %v408_v22, 0.0 }
 0x140   :  { %v411_v30 = vpop.f32.mrf.mxu0  ;;  %798 = vmatmul.mubr.bf16.gmra.mxu1 %v538_v18 }
 0x141   :  { %v412_v31 = vadd.f32 %v411_v30, %v1524_v7  ;;  %v500_v13 = vmax.f32 %v410_v26, 0.0 }
 0x142   :  { %v415_v23 = vpop.f32.mrf.mxu0 }
 0x143   :  { %v501_v37 = vmax.f32 %v412_v31, 0.0  ;;  %v540_v43 = vpack.c.bf16 %v500_v13, %v498_v39  ;;  %v416_v51 = vadd.f32 %v415_v23, %v1526_v8 }
 0x144   :  { %v417_v41 = vpop.f32.mrf.mxu0 }
 0x145   :  { %v541_v42 = vpack.c.bf16 %v501_v37, %v499_v34  ;;  %v418_v49 = vadd.f32 %v417_v41, %v1524_v7  ;;  %v502_v3 = vmax.f32 %v416_v51, 0.0 }
 0x146   :  { %v419_v44 = vpop.f32.mrf.mxu0 }
 0x147   :  { %v420_v50 = vadd.f32 %v419_v44, %v1526_v8  ;;  %805 = vmatprep.mubr.bf16.mxu1 %v541_v42  ;;  %v503_v62 = vmax.f32 %v418_v49, 0.0 }
 0x148   :  { %v421_v54 = vpop.f32.mrf.mxu0  ;;  %806 = vmatmul.mubr.bf16.gmra.mxu1 %v540_v43 }
 0x149   :  { %v422_v55 = vadd.f32 %v421_v54, %v1524_v7  ;;  %v504_v58 = vmax.f32 %v420_v50, 0.0 }
 0x14a   :  { %v425_v61 = vpop.f32.mrf.mxu0 }
 0x14b   :  { %v505_v63 = vmax.f32 %v422_v55, 0.0  ;;  %v542_v1 = vpack.c.bf16 %v504_v58, %v502_v3  ;;  %v426_v22 = vadd.f32 %v425_v61, %v1526_v8 }
 0x14c   :  { %v427_v9 = vpop.f32.mrf.mxu0 }
 0x14d   :  { %v543_v10 = vpack.c.bf16 %v505_v63, %v503_v62  ;;  %v428_v18 = vadd.f32 %v427_v9, %v1524_v7  ;;  %v506_v34 = vmax.f32 %v426_v22, 0.0 }
 0x14e   :  { %v429_v12 = vpop.f32.mrf.mxu0 }
 0x14f   :  { %v430_v21 = vadd.f32 %v429_v12, %v1526_v8  ;;  %813 = vmatprep.mubr.bf16.mxu1 %v543_v10  ;;  %v507_v13 = vmax.f32 %v428_v18, 0.0 }
 0x150   :  { %v431_v26 = vpop.f32.mrf.mxu0  ;;  %814 = vmatmul.mubr.bf16.gmra.mxu1 %v542_v1 }
 0x151   :  { %v432_v27 = vadd.f32 %v431_v26, %v1524_v7  ;;  %v508_v30 = vmax.f32 %v430_v21, 0.0 }
 0x152   :  { %v435_v31 = vpop.f32.mrf.mxu0 }
 0x153   :  { %v509_v23 = vmax.f32 %v432_v27, 0.0  ;;  %v544_v41 = vpack.c.bf16 %v508_v30, %v506_v34  ;;  %v436_v49 = vadd.f32 %v435_v31, %v1526_v8 }
 0x154   :  { %v437_v37 = vpop.f32.mrf.mxu0 }
 0x155   :  { %v545_v39 = vpack.c.bf16 %v509_v23, %v507_v13  ;;  %v438_v43 = vadd.f32 %v437_v37, %v1524_v7  ;;  %v510_v62 = vmax.f32 %v436_v49, 0.0  ;;  %v1595_v37 = vld [vmem:[%s1763_s6] ss:$0 sm:$0xff] }
 0x156   :  { %v439_v42 = vpop.f32.mrf.mxu0 }
 0x157   :  { %v440_v44 = vadd.f32 %v439_v42, %v1526_v8  ;;  %821 = vmatprep.mubr.bf16.mxu1 %v545_v39  ;;  %v511_v58 = vmax.f32 %v438_v43, 0.0 }
 0x158   :  { %v441_v50 = vpop.f32.mrf.mxu0  ;;  %822 = vmatmul.mubr.bf16.gmra.mxu1 %v544_v41 }
 0x159   :  { %v442_v51 = vadd.f32 %v441_v50, %v1524_v7  ;;  %v512_v54 = vmax.f32 %v440_v44, 0.0 }
 0x15a   :  { %v445_v55 = vpop.f32.mrf.mxu0 }
 0x15b   :  { %v513_v61 = vmax.f32 %v442_v51, 0.0  ;;  %v546_v9 = vpack.c.bf16 %v512_v54, %v510_v62  ;;  %v446_v18 = vadd.f32 %v445_v55, %v1526_v8 }
 0x15c   :  { %v447_v63 = vpop.f32.mrf.mxu0 }
 0x15d   :  { %v547_v3 = vpack.c.bf16 %v513_v61, %v511_v58  ;;  %v448_v1 = vadd.f32 %v447_v63, %v1524_v7  ;;  %v514_v31 = vmax.f32 %v446_v18, 0.0 }
 0x15e   :  { %v449_v10 = vpop.f32.mrf.mxu0 }
 0x15f   :  { %v450_v12 = vadd.f32 %v449_v10, %v1526_v8  ;;  %829 = vmatprep.mubr.bf16.mxu1 %v547_v3  ;;  %v515_v27 = vmax.f32 %v448_v1, 0.0 }
 0x160   :  { %v451_v21 = vpop.f32.mrf.mxu0  ;;  %830 = vmatmul.mubr.bf16.gmra.mxu1 %v546_v9 }
 0x161   :  { %v452_v22 = vadd.f32 %v451_v21, %v1524_v7  ;;  %v516_v26 = vmax.f32 %v450_v12, 0.0 }
 0x163   :  { %v517_v30 = vmax.f32 %v452_v22, 0.0  ;;  %v548_v23 = vpack.c.bf16 %v516_v26, %v514_v31 }
 0x165   :  { %v549_v13 = vpack.c.bf16 %v517_v30, %v515_v27 }
 0x167   :  { %837 = vmatprep.mubr.bf16.mxu1 %v549_v13 }
 0x168   :  { %838 = vmatmul.mubr.bf16.gmra.mxu1 %v548_v23 }
 0x1b0   :  { %v965_v34 = vpop.f32.mrf.mxu1 }
 0x1b2   :  { %v966_v39 = vpop.f32.mrf.mxu1 }
 0x1b3   :  { %v967_v8 = vadd.f32 %v966_v39, %v965_v34 }
 0x1b4   :  { %v968_v41 = vpop.f32.mrf.mxu1 }
 0x1b5   :  { %v720_v42 = vadd.f32 %v967_v8, %v1595_v37 }
 0x1b6   :  { %v969_v7 = vpop.f32.mrf.mxu1 }
 0x1b7   :  { %v846_v43 = vadd.f32 %v720_v42, %v1248_v38  ;;  %v970_v44 = vadd.f32 %v969_v7, %v968_v41 }
 0x1b8   :  { %v971_v49 = vpop.f32.mrf.mxu1 }
 0x1b9   :  { %878 = vst [vmem:[%s1764_s7] sm:$0xff] %v846_v43  ;;  %v723_v50 = vadd.f32 %v970_v44, %v1595_v37 }
 0x1ba   :  { %v972_v51 = vpop.f32.mrf.mxu1 }
 0x1bb   :  { %v847_v54 = vadd.f32 %v723_v50, %v1265_v45  ;;  %v973_v55 = vadd.f32 %v972_v51, %v971_v49 }
 0x1bc   :  { %v974_v58 = vpop.f32.mrf.mxu1 }
 0x1bd   :  { %879 = vst [vmem:[%s1764_s7 + $0x8] sm:$0xff] %v847_v54  ;;  %v728_v61 = vadd.f32 %v973_v55, %v1595_v37 }
 0x1be   :  { %v975_v38 = vpop.f32.mrf.mxu1 }
 0x1bf   :  { %v848_v62 = vadd.f32 %v728_v61, %v1360_v24  ;;  %v976_v63 = vadd.f32 %v975_v38, %v974_v58 }
 0x1c0   :  { %v977_v3 = vpop.f32.mrf.mxu1 }
 0x1c1   :  { %880 = vst [vmem:[%s1764_s7 + $0x10] sm:$0xff] %v848_v62  ;;  %v731_v9 = vadd.f32 %v976_v63, %v1595_v37 }
 0x1c2   :  { %v978_v45 = vpop.f32.mrf.mxu1 }
 0x1c3   :  { %v849_v10 = vadd.f32 %v731_v9, %v1363_v25  ;;  %v979_v1 = vadd.f32 %v978_v45, %v977_v3 }
 0x1c4   :  { %v980_v12 = vpop.f32.mrf.mxu1 }
 0x1c5   :  { %881 = vst [vmem:[%s1764_s7 + $0x18] sm:$0xff] %v849_v10  ;;  %v736_v18 = vadd.f32 %v979_v1, %v1595_v37 }
 0x1c6   :  { %v981_v24 = vpop.f32.mrf.mxu1 }
 0x1c7   :  { %v850_v21 = vadd.f32 %v736_v18, %v1383_v35  ;;  %v982_v22 = vadd.f32 %v981_v24, %v980_v12 }
 0x1c8   :  { %v983_v26 = vpop.f32.mrf.mxu1 }
 0x1c9   :  { %882 = vst [vmem:[%s1764_s7 + $0x20] sm:$0xff] %v850_v21  ;;  %v739_v27 = vadd.f32 %v982_v22, %v1595_v37 }
 0x1ca   :  { %v984_v25 = vpop.f32.mrf.mxu1 }
 0x1cb   :  { %v851_v30 = vadd.f32 %v739_v27, %v1386_v36  ;;  %v985_v31 = vadd.f32 %v984_v25, %v983_v26 }
 0x1cc   :  { %v986_v13 = vpop.f32.mrf.mxu1 }
 0x1cd   :  { %883 = vst [vmem:[%s1764_s7 + $0x28] sm:$0xff] %v851_v30  ;;  %v744_v23 = vadd.f32 %v985_v31, %v1595_v37 }
 0x1ce   :  { %v987_v35 = vpop.f32.mrf.mxu1 }
 0x1cf   :  { %v852_v34 = vadd.f32 %v744_v23, %v1403_v46  ;;  %v988_v39 = vadd.f32 %v987_v35, %v986_v13 }
 0x1d0   :  { %v989_v8 = vpop.f32.mrf.mxu1 }
 0x1d1   :  { %884 = vst [vmem:[%s1764_s7 + $0x30] sm:$0xff] %v852_v34  ;;  %v747_v41 = vadd.f32 %v988_v39, %v1595_v37 }
 0x1d2   :  { %v990_v36 = vpop.f32.mrf.mxu1 }
 0x1d3   :  { %v853_v42 = vadd.f32 %v747_v41, %v1406_v48  ;;  %v991_v7 = vadd.f32 %v990_v36, %v989_v8 }
 0x1d4   :  { %v992_v43 = vpop.f32.mrf.mxu1 }
 0x1d5   :  { %885 = vst [vmem:[%s1764_s7 + $0x38] sm:$0xff] %v853_v42  ;;  %v752_v44 = vadd.f32 %v991_v7, %v1595_v37 }
 0x1d6   :  { %v993_v46 = vpop.f32.mrf.mxu1 }
 0x1d7   :  { %v854_v49 = vadd.f32 %v752_v44, %v1420_v56  ;;  %v994_v50 = vadd.f32 %v993_v46, %v992_v43 }
 0x1d8   :  { %v995_v51 = vpop.f32.mrf.mxu1 }
 0x1d9   :  { %886 = vst [vmem:[%s1764_s7 + $0x40] sm:$0xff] %v854_v49  ;;  %v755_v54 = vadd.f32 %v994_v50, %v1595_v37 }
 0x1da   :  { %v996_v48 = vpop.f32.mrf.mxu1 }
 0x1db   :  { %v855_v55 = vadd.f32 %v755_v54, %v1423_v57  ;;  %v997_v58 = vadd.f32 %v996_v48, %v995_v51 }
 0x1dc   :  { %v998_v61 = vpop.f32.mrf.mxu1 }
 0x1dd   :  { %887 = vst [vmem:[%s1764_s7 + $0x48] sm:$0xff] %v855_v55  ;;  %v760_v38 = vadd.f32 %v997_v58, %v1595_v37 }
 0x1de   :  { %v999_v56 = vpop.f32.mrf.mxu1 }
 0x1df   :  { %v856_v62 = vadd.f32 %v760_v38, %v1437_v4  ;;  %v1000_v63 = vadd.f32 %v999_v56, %v998_v61 }
 0x1e0   :  { %v1001_v3 = vpop.f32.mrf.mxu1 }
 0x1e1   :  { %888 = vst [vmem:[%s1764_s7 + $0x50] sm:$0xff] %v856_v62  ;;  %v763_v9 = vadd.f32 %v1000_v63, %v1595_v37 }
 0x1e2   :  { %v1002_v57 = vpop.f32.mrf.mxu1 }
 0x1e3   :  { %v857_v45 = vadd.f32 %v763_v9, %v1440_v5  ;;  %v1003_v10 = vadd.f32 %v1002_v57, %v1001_v3 }
 0x1e4   :  { %v1004_v1 = vpop.f32.mrf.mxu1 }
 0x1e5   :  { %889 = vst [vmem:[%s1764_s7 + $0x58] sm:$0xff] %v857_v45  ;;  %v768_v12 = vadd.f32 %v1003_v10, %v1595_v37 }
 0x1e6   :  { %v1005_v4 = vpop.f32.mrf.mxu1 }
 0x1e7   :  { %v858_v18 = vadd.f32 %v768_v12, %v1454_v14  ;;  %v1006_v24 = vadd.f32 %v1005_v4, %v1004_v1 }
 0x1e8   :  { %v1007_v21 = vpop.f32.mrf.mxu1 }
 0x1e9   :  { %890 = vst [vmem:[%s1764_s7 + $0x60] sm:$0xff] %v858_v18  ;;  %v771_v22 = vadd.f32 %v1006_v24, %v1595_v37 }
 0x1ea   :  { %v1008_v5 = vpop.f32.mrf.mxu1 }
 0x1eb   :  { %v859_v26 = vadd.f32 %v771_v22, %v1457_v15  ;;  %v1009_v27 = vadd.f32 %v1008_v5, %v1007_v21 }
 0x1ec   :  { %v1010_v25 = vpop.f32.mrf.mxu1 }
 0x1ed   :  { %891 = vst [vmem:[%s1764_s7 + $0x68] sm:$0xff] %v859_v26  ;;  %v776_v30 = vadd.f32 %v1009_v27, %v1595_v37 }
 0x1ee   :  { %v1011_v14 = vpop.f32.mrf.mxu1 }
 0x1ef   :  { %v860_v31 = vadd.f32 %v776_v30, %v1471_v28  ;;  %v1012_v13 = vadd.f32 %v1011_v14, %v1010_v25 }
 0x1f0   :  { %v1013_v23 = vpop.f32.mrf.mxu1 }
 0x1f1   :  { %892 = vst [vmem:[%s1764_s7 + $0x70] sm:$0xff] %v860_v31  ;;  %v779_v35 = vadd.f32 %v1012_v13, %v1595_v37 }
 0x1f2   :  { %v1014_v15 = vpop.f32.mrf.mxu1 }
 0x1f3   :  { %v861_v34 = vadd.f32 %v779_v35, %v1474_v29  ;;  %v1015_v39 = vadd.f32 %v1014_v15, %v1013_v23 }
 0x1f4   :  { %v1016_v8 = vpop.f32.mrf.mxu1 }
 0x1f5   :  { %893 = vst [vmem:[%s1764_s7 + $0x78] sm:$0xff] %v861_v34  ;;  %v784_v41 = vadd.f32 %v1015_v39, %v1595_v37 }
 0x1f6   :  { %v1017_v28 = vpop.f32.mrf.mxu1 }
 0x1f7   :  { %v862_v36 = vadd.f32 %v784_v41, %v1232_v32  ;;  %v1018_v42 = vadd.f32 %v1017_v28, %v1016_v8 }
 0x1f8   :  { %v1019_v7 = vpop.f32.mrf.mxu1 }
 0x1f9   :  { %894 = vst [vmem:[%s1764_s7 + $0x80] sm:$0xff] %v862_v36  ;;  %v787_v43 = vadd.f32 %v1018_v42, %v1595_v37 }
 0x1fa   :  { %v1020_v29 = vpop.f32.mrf.mxu1 }
 0x1fb   :  { %v863_v44 = vadd.f32 %v787_v43, %v1235_v33  ;;  %v1021_v46 = vadd.f32 %v1020_v29, %v1019_v7 }
 0x1fc   :  { %v1022_v49 = vpop.f32.mrf.mxu1 }
 0x1fd   :  { %895 = vst [vmem:[%s1764_s7 + $0x88] sm:$0xff] %v863_v44  ;;  %v792_v50 = vadd.f32 %v1021_v46, %v1595_v37 }
 0x1fe   :  { %v1023_v32 = vpop.f32.mrf.mxu1 }
 0x1ff   :  { %v864_v51 = vadd.f32 %v792_v50, %v1254_v40  ;;  %v1024_v54 = vadd.f32 %v1023_v32, %v1022_v49 }
 0x200   :  { %v1025_v48 = vpop.f32.mrf.mxu1 }
 0x201   :  { %896 = vst [vmem:[%s1764_s7 + $0x90] sm:$0xff] %v864_v51  ;;  %v795_v55 = vadd.f32 %v1024_v54, %v1595_v37 }
 0x202   :  { %v1026_v33 = vpop.f32.mrf.mxu1 }
 0x203   :  { %v865_v58 = vadd.f32 %v795_v55, %v1271_v47  ;;  %v1027_v61 = vadd.f32 %v1026_v33, %v1025_v48 }
 0x204   :  { %v1028_v38 = vpop.f32.mrf.mxu1 }
 0x205   :  { %897 = vst [vmem:[%s1764_s7 + $0x98] sm:$0xff] %v865_v58  ;;  %v800_v56 = vadd.f32 %v1027_v61, %v1595_v37 }
 0x206   :  { %v1029_v40 = vpop.f32.mrf.mxu1 }
 0x207   :  { %v866_v62 = vadd.f32 %v800_v56, %v1282_v52  ;;  %v1030_v63 = vadd.f32 %v1029_v40, %v1028_v38 }
 0x208   :  { %v1031_v3 = vpop.f32.mrf.mxu1 }
 0x209   :  { %898 = vst [vmem:[%s1764_s7 + $0xa0] sm:$0xff] %v866_v62  ;;  %v803_v9 = vadd.f32 %v1030_v63, %v1595_v37 }
 0x20a   :  { %v1032_v47 = vpop.f32.mrf.mxu1 }
 0x20b   :  { %v867_v57 = vadd.f32 %v803_v9, %v1285_v53  ;;  %v1033_v45 = vadd.f32 %v1032_v47, %v1031_v3 }
 0x20c   :  { %v1034_v10 = vpop.f32.mrf.mxu1 }
 0x20d   :  { %899 = vst [vmem:[%s1764_s7 + $0xa8] sm:$0xff] %v867_v57  ;;  %v808_v1 = vadd.f32 %v1033_v45, %v1595_v37 }
 0x20e   :  { %v1035_v52 = vpop.f32.mrf.mxu1 }
 0x20f   :  { %v868_v12 = vadd.f32 %v808_v1, %v1299_v59  ;;  %v1036_v4 = vadd.f32 %v1035_v52, %v1034_v10 }
 0x210   :  { %v1037_v18 = vpop.f32.mrf.mxu1 }
 0x211   :  { %900 = vst [vmem:[%s1764_s7 + $0xb0] sm:$0xff] %v868_v12  ;;  %v811_v24 = vadd.f32 %v1036_v4, %v1595_v37 }
 0x212   :  { %v1038_v53 = vpop.f32.mrf.mxu1 }
 0x213   :  { %v869_v21 = vadd.f32 %v811_v24, %v1302_v60  ;;  %v1039_v22 = vadd.f32 %v1038_v53, %v1037_v18 }
 0x214   :  { %v1040_v5 = vpop.f32.mrf.mxu1 }
 0x215   :  { %901 = vst [vmem:[%s1764_s7 + $0xb8] sm:$0xff] %v869_v21  ;;  %v816_v26 = vadd.f32 %v1039_v22, %v1595_v37 }
 0x216   :  { %v1041_v59 = vpop.f32.mrf.mxu1 }
 0x217   :  { %v870_v27 = vadd.f32 %v816_v26, %v1310_v0  ;;  %v1042_v25 = vadd.f32 %v1041_v59, %v1040_v5 }
 0x218   :  { %v1043_v30 = vpop.f32.mrf.mxu1 }
 0x219   :  { %902 = vst [vmem:[%s1764_s7 + $0xc0] sm:$0xff] %v870_v27  ;;  %v819_v14 = vadd.f32 %v1042_v25, %v1595_v37 }
 0x21a   :  { %v1044_v60 = vpop.f32.mrf.mxu1 }
 0x21b   :  { %v871_v31 = vadd.f32 %v819_v14, %v1313_v2  ;;  %v1045_v13 = vadd.f32 %v1044_v60, %v1043_v30 }
 0x21c   :  { %v1046_v23 = vpop.f32.mrf.mxu1 }
 0x21d   :  { %903 = vst [vmem:[%s1764_s7 + $0xc8] sm:$0xff] %v871_v31  ;;  %v824_v35 = vadd.f32 %v1045_v13, %v1595_v37 }
 0x21e   :  { %v1047_v0 = vpop.f32.mrf.mxu1 }
 0x21f   :  { %v872_v15 = vadd.f32 %v824_v35, %v1321_v6  ;;  %v1048_v34 = vadd.f32 %v1047_v0, %v1046_v23 }
 0x220   :  { %v1049_v39 = vpop.f32.mrf.mxu1 }
 0x221   :  { %904 = vst [vmem:[%s1764_s7 + $0xd0] sm:$0xff] %v872_v15  ;;  %v827_v8 = vadd.f32 %v1048_v34, %v1595_v37 }
 0x222   :  { %v1050_v2 = vpop.f32.mrf.mxu1 }
 0x223   :  { %v873_v41 = vadd.f32 %v827_v8, %v1331_v11  ;;  %v1051_v28 = vadd.f32 %v1050_v2, %v1049_v39 }
 0x224   :  { %v1052_v36 = vpop.f32.mrf.mxu1 }
 0x225   :  { %905 = vst [vmem:[%s1764_s7 + $0xd8] sm:$0xff] %v873_v41  ;;  %v832_v42 = vadd.f32 %v1051_v28, %v1595_v37 }
 0x226   :  { %v1053_v6 = vpop.f32.mrf.mxu1 }
 0x227   :  { %v874_v7 = vadd.f32 %v832_v42, %v1339_v16  ;;  %v1054_v43 = vadd.f32 %v1053_v6, %v1052_v36 }
 0x228   :  { %v1055_v29 = vpop.f32.mrf.mxu1 }
 0x229   :  { %906 = vst [vmem:[%s1764_s7 + $0xe0] sm:$0xff] %v874_v7  ;;  %v835_v44 = vadd.f32 %v1054_v43, %v1595_v37 }
 0x22a   :  { %v1056_v11 = vpop.f32.mrf.mxu1 }
 0x22b   :  { %v875_v46 = vadd.f32 %v835_v44, %v1342_v17  ;;  %v1057_v49 = vadd.f32 %v1056_v11, %v1055_v29 }
 0x22c   :  { %v1058_v50 = vpop.f32.mrf.mxu1 }
 0x22d   :  { %907 = vst [vmem:[%s1764_s7 + $0xe8] sm:$0xff] %v875_v46  ;;  %v840_v32 = vadd.f32 %v1057_v49, %v1595_v37 }
 0x22e   :  { %v1059_v16 = vpop.f32.mrf.mxu1 }
 0x22f   :  { %v876_v51 = vadd.f32 %v840_v32, %v1348_v19  ;;  %v1060_v54 = vadd.f32 %v1059_v16, %v1058_v50 }
 0x231   :  { %908 = vst [vmem:[%s1764_s7 + $0xf0] sm:$0xff] %v876_v51  ;;  %v843_v48 = vadd.f32 %v1060_v54, %v1595_v37 }
 0x233   :  { %v877_v17 = vadd.f32 %v843_v48, %v1351_v20 }
 0x235   :  { %909 = vst [vmem:[%s1764_s7 + $0xf8] sm:$0xff] %v877_v17 }

// kernel: graph_transformer_layer.8
= control target key start
LH: loop header
LB: loop body
LE: loop exit
PB: predicated region body
PF: predicated region fallthrough
CT: control target
= control target key end

     0   :  { %s387_s2 = inlined_call_operand.vmem [shape: bf16[128,128], index: 2, kind: input, shape index: {}]   ;;  %s388_s0 = inlined_call_operand.vmem [shape: f32[64,128], index: 0, kind: input, shape index: {}]   ;;  %s389_s3 = inlined_call_operand.vmem [shape: f32[1,128], index: 3, kind: input, shape index: {}]   ;;  %s390_s1 = inlined_call_operand.vmem [shape: f32[64,128], index: 1, kind: input, shape index: {}]   ;;  %s391_s4 = inlined_call_operand.vmem [shape: f32[64,128], index: 4, kind: output, shape index: {}]  }
   0x1   :  { %v255_v0 = vld [vmem:[%s387_s2 + $0x38] sm:$0xff]   ;;  %v256_v1 = vld [vmem:[%s387_s2 + $0x30] sm:$0xff]   ;;  %v257_v2 = vld [vmem:[%s387_s2 + $0x28] sm:$0xff]  }
   0x2   :  { %215 = vmatprep.subr.bf16.mxu0 %v255_v0  ;;  %239 = vmatprep.subr.bf16.mxu1 %v255_v0  ;;  %v258_v3 = vld [vmem:[%s387_s2 + $0x20] sm:$0xff]   ;;  %v19_v5 = vld [vmem:[%s388_s0 + $0x8] sm:$0xff]  ;;  %v259_v10 = vld [vmem:[%s387_s2 + $0x18] sm:$0xff]  }
   0x3   :  { %216 = vmatpush3.bf16.msra.mxu0 %v255_v0  ;;  %247 = vmatpush3.bf16.msra.mxu1 %v255_v0  ;;  %v18_v4 = vld [vmem:[%s388_s0] sm:$0xff]  ;;  %v23_v8 = vld [vmem:[%s388_s0 + $0x28] sm:$0xff]  ;;  %v260_v11 = vld [vmem:[%s387_s2 + $0x10] sm:$0xff]  }
   0x4   :  { %217 = vmatprep.subr.bf16.mxu0 %v256_v1  ;;  %240 = vmatprep.subr.bf16.mxu1 %v256_v1  ;;  %v22_v6 = vld [vmem:[%s388_s0 + $0x20] sm:$0xff]  ;;  %v26_v7 = vpack.c.bf16 %v19_v5, %v18_v4  ;;  %v261_v12 = vld [vmem:[%s387_s2 + $0x8] sm:$0xff]   ;;  %v20_v14 = vld [vmem:[%s388_s0 + $0x10] sm:$0xff] }
   0x5   :  { %v28_v9 = vpack.c.bf16 %v23_v8, %v22_v6  ;;  %v262_v13 = vld [vmem:[%s387_s2] sm:$0xff]   ;;  %v21_v15 = vld [vmem:[%s388_s0 + $0x18] sm:$0xff]  ;;  %v24_v16 = vld [vmem:[%s388_s0 + $0x30] sm:$0xff] }
   0x6   :  { %231 = vmatprep.mubr.bf16.mxu0 %v26_v7  ;;  %v25_v17 = vld [vmem:[%s388_s0 + $0x38] sm:$0xff]  ;;  %v27_v18 = vpack.c.bf16 %v21_v15, %v20_v14  ;;  %v194_v20 = vld [vmem:[%s389_s3] ss:$0 sm:$0xff]  ;;  %v168_v22 = vld [vmem:[%s390_s1 + $0x10] sm:$0xff] }
   0x7   :  { %218 = vmatpush3.bf16.msra.mxu0 %v256_v1  ;;  %248 = vmatpush3.bf16.msra.mxu1 %v256_v1  ;;  %v29_v19 = vpack.c.bf16 %v25_v17, %v24_v16  ;;  %v172_v24 = vld [vmem:[%s390_s1 + $0x30] sm:$0xff]  ;;  %v166_v28 = vld [vmem:[%s390_s1] sm:$0xff]  ;;  %v169_v36 = vld [vmem:[%s390_s1 + $0x18] sm:$0xff] }
   0x8   :  { %219 = vmatprep.subr.bf16.mxu0 %v257_v2  ;;  %241 = vmatprep.subr.bf16.mxu1 %v257_v2  ;;  %v170_v30 = vld [vmem:[%s390_s1 + $0x20] sm:$0xff]  ;;  %v173_v38 = vld [vmem:[%s390_s1 + $0x38] sm:$0xff]  ;;  %v167_v44 = vld [vmem:[%s390_s1 + $0x8] sm:$0xff] }
   0x9   :  { %235 = vmatprep.mubr.bf16.mxu1 %v28_v9  ;;  %v171_v46 = vld [vmem:[%s390_s1 + $0x28] sm:$0xff] }
   0xb   :  { %220 = vmatpush3.bf16.msra.mxu0 %v257_v2  ;;  %249 = vmatpush3.bf16.msra.mxu1 %v257_v2 }
   0xc   :  { %221 = vmatprep.subr.bf16.mxu0 %v258_v3  ;;  %242 = vmatprep.subr.bf16.mxu1 %v258_v3 }
   0xf   :  { %222 = vmatpush3.bf16.msra.mxu0 %v258_v3  ;;  %250 = vmatpush3.bf16.msra.mxu1 %v258_v3 }
  0x10   :  { %223 = vmatprep.subr.bf16.mxu0 %v259_v10  ;;  %243 = vmatprep.subr.bf16.mxu1 %v259_v10 }
  0x13   :  { %224 = vmatpush3.bf16.msra.mxu0 %v259_v10  ;;  %251 = vmatpush3.bf16.msra.mxu1 %v259_v10 }
  0x14   :  { %225 = vmatprep.subr.bf16.mxu0 %v260_v11  ;;  %244 = vmatprep.subr.bf16.mxu1 %v260_v11 }
  0x17   :  { %226 = vmatpush3.bf16.msra.mxu0 %v260_v11  ;;  %252 = vmatpush3.bf16.msra.mxu1 %v260_v11 }
  0x18   :  { %227 = vmatprep.subr.bf16.mxu0 %v261_v12  ;;  %245 = vmatprep.subr.bf16.mxu1 %v261_v12 }
  0x1b   :  { %228 = vmatpush3.bf16.msra.mxu0 %v261_v12  ;;  %253 = vmatpush3.bf16.msra.mxu1 %v261_v12 }
  0x1c   :  { %229 = vmatprep.subr.bf16.mxu0 %v262_v13  ;;  %246 = vmatprep.subr.bf16.mxu1 %v262_v13 }
  0x1f   :  { %230 = vmatpush3.bf16.msra.mxu0 %v262_v13  ;;  %254 = vmatpush3.bf16.msra.mxu1 %v262_v13 }
  0x22   :  { %232 = vmatmul.mubr.bf16.vlgmr.msra.gmra.mxu0 %v27_v18  ;;  %236 = vmatmul.mubr.bf16.vlgmr.msra.gmra.mxu1 %v29_v19 }
  0xe2   :  { %v233_v21 = vpop.f32.mrf.mxu0  ;;  %v237_v23 = vpop.f32.mrf.mxu1 }
  0xe3   :  { %v144_v25 = vadd.f32 %v233_v21, %v194_v20  ;;  %v160_v26 = vadd.f32 %v237_v23, %v194_v20 }
  0xe4   :  { %v135_v27 = vpop.f32.mrf.mxu0  ;;  %v151_v29 = vpop.f32.mrf.mxu1 }
  0xe5   :  { %v176_v31 = vadd.f32 %v168_v22, %v144_v25  ;;  %v180_v32 = vadd.f32 %v172_v24, %v160_v26  ;;  %v136_v33 = vadd.f32 %v194_v20, %v135_v27  ;;  %v152_v34 = vadd.f32 %v194_v20, %v151_v29 }
  0xe6   :  { %v234_v35 = vpop.f32.mrf.mxu0  ;;  %v238_v37 = vpop.f32.mrf.mxu1 }
  0xe7   :  { %184 = vst [vmem:[%s391_s4 + $0x10] sm:$0xff] %v176_v31  ;;  %188 = vst [vmem:[%s391_s4 + $0x30] sm:$0xff] %v180_v32  ;;  %v174_v39 = vadd.f32 %v166_v28, %v136_v33  ;;  %v178_v40 = vadd.f32 %v170_v30, %v152_v34  ;;  %v147_v41 = vadd.f32 %v234_v35, %v194_v20 }
  0xe8   :  { %v163_v42 = vadd.f32 %v238_v37, %v194_v20  ;;  %v138_v43 = vpop.f32.mrf.mxu0  ;;  %v154_v45 = vpop.f32.mrf.mxu1 }
  0xe9   :  { %182 = vst [vmem:[%s391_s4] sm:$0xff] %v174_v39  ;;  %186 = vst [vmem:[%s391_s4 + $0x20] sm:$0xff] %v178_v40  ;;  %v177_v47 = vadd.f32 %v169_v36, %v147_v41  ;;  %v139_v49 = vadd.f32 %v194_v20, %v138_v43  ;;  %v155_v50 = vadd.f32 %v194_v20, %v154_v45 }
  0xea   :  { %v181_v48 = vadd.f32 %v173_v38, %v163_v42 }
  0xeb   :  { %185 = vst [vmem:[%s391_s4 + $0x18] sm:$0xff] %v177_v47  ;;  %v175_v51 = vadd.f32 %v167_v44, %v139_v49  ;;  %v179_v52 = vadd.f32 %v171_v46, %v155_v50 }
  0xec   :  { %189 = vst [vmem:[%s391_s4 + $0x38] sm:$0xff] %v181_v48 }
  0xed   :  { %183 = vst [vmem:[%s391_s4 + $0x8] sm:$0xff] %v175_v51  ;;  %187 = vst [vmem:[%s391_s4 + $0x28] sm:$0xff] %v179_v52 }

// kernel: graph_transformer_layer.10
= control target key start
LH: loop header
LB: loop body
LE: loop exit
PB: predicated region body
PF: predicated region fallthrough
CT: control target
= control target key end

     0   :  { %s160_s0 = inlined_call_operand.vmem [shape: f32[64,128], index: 0, kind: input, shape index: {}]   ;;  %s161_s1 = inlined_call_operand.vmem [shape: f32[1,128], index: 1, kind: input, shape index: {}]   ;;  %s162_s2 = inlined_call_operand.vmem [shape: f32[1,128], index: 2, kind: input, shape index: {}]   ;;  %s163_s3 = inlined_call_operand.hbm [shape: f32[64,128], index: 3, kind: output, shape index: {}]  }
   0x1   :  { %v15_v0 = vld [vmem:[%s160_s0] sm:$0xff]  ;;  %v16_v4 = vld [vmem:[%s160_s0 + $0x8] sm:$0xff]  ;;  %v17_v5 = vld [vmem:[%s160_s0 + $0x10] sm:$0xff] }
   0x2   :  { %v77_v1 = vld [vmem:[%s161_s1] ss:$0 sm:$0xff]  ;;  %v18_v6 = vld [vmem:[%s160_s0 + $0x18] sm:$0xff]  ;;  %v20_v11 = vld [vmem:[%s160_s0 + $0x28] sm:$0xff] }
   0x3   :  { %v78_v2 = vld [vmem:[%s162_s2] ss:$0 sm:$0xff]  ;;  %v30_v3 = vmul.f32 %v77_v1, %v15_v0  ;;  %v31_v7 = vmul.f32 %v77_v1, %v16_v4  ;;  %v32_v8 = vmul.f32 %v77_v1, %v17_v5  ;;  %v33_v9 = vmul.f32 %v77_v1, %v18_v6  ;;  %v21_v12 = vld [vmem:[%s160_s0 + $0x30] sm:$0xff]  ;;  %v22_v17 = vld [vmem:[%s160_s0 + $0x38] sm:$0xff] }
   0x4   :  { %v19_v10 = vld [vmem:[%s160_s0 + $0x20] sm:$0xff]  ;;  %v35_v15 = vmul.f32 %v77_v1, %v20_v11  ;;  %v36_v16 = vmul.f32 %v77_v1, %v21_v12 }
   0x5   :  { %v45_v13 = vadd.f32 %v78_v2, %v30_v3  ;;  %v34_v14 = vmul.f32 %v77_v1, %v19_v10 }
   0x6   :  { %8 = vsyncpa [#allocation3], 0  ;;  %s104_s30 = smov [#allocation2]   ;;  %v46_v18 = vadd.f32 %v78_v2, %v31_v7  ;;  %v47_v19 = vadd.f32 %v78_v2, %v32_v8  ;;  %v48_v20 = vadd.f32 %v78_v2, %v33_v9  ;;  %v37_v21 = vmul.f32 %v77_v1, %v22_v17 }
   0x7   :  { %s66_s4 = sshll.u32 %s104_s30, 4  ;;  %53 = vst [vmem:[#allocation2] sm:$0xff] %v45_v13  ;;  %v49_v22 = vadd.f32 %v78_v2, %v34_v14  ;;  %v50_v23 = vadd.f32 %v78_v2, %v35_v15  ;;  %v51_v24 = vadd.f32 %v78_v2, %v36_v16  ;;  %s67_s4 = int_to_ptr.vmem [resolvable:$true] %s66_s4 }
   0x8   :  { %54 = vst [vmem:[#allocation2 + $0x8] sm:$0xff] %v46_v18  ;;  %55 = vst [vmem:[#allocation2 + $0x10] sm:$0xff] %v47_v19  ;;  %v52_v25 = vadd.f32 %v78_v2, %v37_v21  ;;  %s82_s0 = scalar_lea.vmem %s67_s4, 1024  ;;  %p87_p1 = scmp.lt.s32.totalorder %s67_s4, %s67_s4 }
   0x9   :  { %56 = vst [vmem:[#allocation2 + $0x18] sm:$0xff] %v48_v20  ;;  %57 = vst [vmem:[#allocation2 + $0x20] sm:$0xff] %v49_v22  ;;  %p83_p0 = scmp.ne.s32.totalorder %s67_s4, %s82_s0  ;;  %p88_p2 = scmp.lt.s32.totalorder %s82_s0, %s82_s0 }
   0xa   :  { %58 = vst [vmem:[#allocation2 + $0x28] sm:$0xff] %v50_v23  ;;  %59 = vst [vmem:[#allocation2 + $0x30] sm:$0xff] %v51_v24 }
   0xb   :  { %60 = vst [vmem:[#allocation2 + $0x38] sm:$0xff] %v52_v25  ;;  %p89_p3 = por %p88_p2, %p87_p1 }
   0xd   :  { %p90_p4 = pnand %p89_p3, %p83_p0 }
   0xf   :  { %93 = shalt.err (!%p90_p4)
}
  0x10   :  { %s105_s5 = smov 128   ;;  %s106_s6 = smov 8  }
  0x11   :  { %72 = dma.vmem_to_hbm [thread:$0]  %s67_s4, 1024, %s163_s3, [#allocation3], %s105_s5, %s105_s5, %s106_s6  }
  0x12   :  { %102 = dma.done.wait [#allocation3], 1024  }
  0x13   :  { %103 = vsyncadd [#allocation3], 4294966272 }
  0x14   :  { %76 = vsyncpa [#allocation3], 1 }

// kernel: graph_transformer_layer.9
= control target key start
LH: loop header
LB: loop body
LE: loop exit
PB: predicated region body
PF: predicated region fallthrough
CT: control target
= control target key end

     0   :  { %v610_v1 = vmov 0   ;;  %v87_v63 = vlaneseq  ;;  %s843_s3 = inlined_call_operand.vmem [shape: bf16[128,256], index: 3, kind: input, shape index: {}]   ;;  %s844_s5 = inlined_call_operand.vmem [shape: bf16[256,128], index: 5, kind: input, shape index: {}]   ;;  %s845_s0 = inlined_call_operand.vmem [shape: f32[64,128], index: 0, kind: input, shape index: {}]   ;;  %s846_s1 = inlined_call_operand.vmem [shape: f32[1,128], index: 1, kind: input, shape index: {}]   ;;  %s847_s2 = inlined_call_operand.vmem [shape: f32[1,128], index: 2, kind: input, shape index: {}]   ;;  %s848_s4 = inlined_call_operand.vmem [shape: f32[1,256], index: 4, kind: input, shape index: {}]   ;;  %s849_s6 = inlined_call_operand.vmem [shape: f32[1,128], index: 6, kind: input, shape index: {}]   ;;  %s850_s7 = inlined_call_operand.vmem [shape: f32[64,128], index: 7, kind: output, shape index: {}]  }
   0x1   :  { %v570_v0 = vld [vmem:[%s843_s3 + $0x74] ss:$8 sps:$4 sm:$0xff]   ;;  %209 = vmatprep.mubr.bf16.mxu0 %v610_v1  ;;  %v572_v2 = vld [vmem:[%s843_s3 + $0x70] ss:$8 sps:$4 sm:$0xff]   ;;  %v573_v3 = vld [vmem:[%s843_s3 + $0x64] ss:$8 sps:$4 sm:$0xff]  }
   0x2   :  { %177 = vmatprep.subr.bf16.mxu0 %v570_v0  ;;  %v575_v4 = vld [vmem:[%s843_s3 + $0x60] ss:$8 sps:$4 sm:$0xff]   ;;  %v576_v5 = vld [vmem:[%s843_s3 + $0x54] ss:$8 sps:$4 sm:$0xff]   ;;  %v578_v6 = vld [vmem:[%s843_s3 + $0x50] ss:$8 sps:$4 sm:$0xff]  }
   0x3   :  { %178 = vmatpush1.bf16.msra.mxu0 %v572_v2  ;;  %v579_v7 = vld [vmem:[%s843_s3 + $0x44] ss:$8 sps:$4 sm:$0xff]   ;;  %v581_v8 = vld [vmem:[%s843_s3 + $0x40] ss:$8 sps:$4 sm:$0xff]   ;;  %v582_v9 = vld [vmem:[%s843_s3 + $0x34] ss:$8 sps:$4 sm:$0xff]  }
   0x4   :  { %179 = vmatprep.subr.bf16.mxu0 %v573_v3  ;;  %v584_v10 = vld [vmem:[%s843_s3 + $0x30] ss:$8 sps:$4 sm:$0xff]   ;;  %v585_v11 = vld [vmem:[%s843_s3 + $0x24] ss:$8 sps:$4 sm:$0xff]   ;;  %v587_v15 = vld [vmem:[%s843_s3 + $0x20] ss:$8 sps:$4 sm:$0xff]  }
   0x5   :  { %v594_v12 = vld [vmem:[%s844_s5 + $0x78] sm:$0xff]   ;;  %v596_v14 = vld [vmem:[%s844_s5 + $0x70] sm:$0xff]   ;;  %v27_v16 = vld [vmem:[%s845_s0] sm:$0xff]  ;;  %v88_v0 = vshrl.u32 %v87_v63, 7 }
   0x6   :  { %v595_v13 = vld [vmem:[%s844_s5 + $0x38] sm:$0xff]   ;;  %529 = vmatprep.subr.bf16.mxu1 %v594_v12  ;;  %v28_v17 = vld [vmem:[%s845_s0 + $0x8] sm:$0xff]  ;;  %v597_v18 = vld [vmem:[%s844_s5 + $0x30] sm:$0xff]  }
   0x7   :  { %180 = vmatpush1.bf16.msra.mxu0 %v575_v4  ;;  %530 = vmatpush3.bf16.msra.mxu1 %v595_v13  ;;  %v598_v19 = vld [vmem:[%s844_s5 + $0x68] sm:$0xff]   ;;  %v494_v20 = vld [vmem:[%s846_s1] ss:$0 sm:$0xff]  ;;  %v588_v21 = vld [vmem:[%s843_s3 + $0x14] ss:$8 sps:$4 sm:$0xff]   ;;  %v89_v2 = vsub.s32 0, %v88_v0 }
   0x8   :  { %181 = vmatprep.subr.bf16.mxu0 %v576_v5  ;;  %531 = vmatprep.subr.bf16.mxu1 %v596_v14  ;;  %v590_v22 = vld [vmem:[%s843_s3 + $0x10] ss:$8 sps:$4 sm:$0xff]   ;;  %v495_v23 = vld [vmem:[%s847_s2] ss:$0 sm:$0xff]  ;;  %v599_v24 = vld [vmem:[%s844_s5 + $0x28] sm:$0xff]   ;;  %v42_v26 = vmul.f32 %v494_v20, %v27_v16  ;;  %v43_v27 = vmul.f32 %v494_v20, %v28_v17 }
   0x9   :  { %v591_v25 = vld [vmem:[%s843_s3 + $0x4] ss:$8 sps:$4 sm:$0xff]   ;;  %v602_v30 = vld [vmem:[%s844_s5 + $0x58] sm:$0xff]   ;;  %v593_v31 = vld [vmem:[%s843_s3] ss:$8 sps:$4 sm:$0xff]  }
   0xa   :  { %v600_v28 = vld [vmem:[%s844_s5 + $0x60] sm:$0xff]   ;;  %v29_v32 = vld [vmem:[%s845_s0 + $0x10] sm:$0xff]  ;;  %v30_v33 = vld [vmem:[%s845_s0 + $0x18] sm:$0xff]  ;;  %v745_v34 = vadd.f32 %v495_v23, %v42_v26  ;;  %v747_v35 = vadd.f32 %v495_v23, %v43_v27 }
   0xb   :  { %182 = vmatpush1.bf16.msra.mxu0 %v578_v6  ;;  %532 = vmatpush3.bf16.msra.mxu1 %v597_v18  ;;  %v601_v29 = vld [vmem:[%s844_s5 + $0x20] sm:$0xff]   ;;  %v603_v36 = vld [vmem:[%s844_s5 + $0x18] sm:$0xff]   ;;  %v44_v38 = vmul.f32 %v494_v20, %v29_v32  ;;  %v45_v39 = vmul.f32 %v494_v20, %v30_v33  ;;  %v32_v43 = vld [vmem:[%s845_s0 + $0x28] sm:$0xff] }
   0xc   :  { %183 = vmatprep.subr.bf16.mxu0 %v579_v7  ;;  %533 = vmatprep.subr.bf16.mxu1 %v598_v19  ;;  %v65_v37 = vpack.c.bf16 %v747_v35, %v745_v34  ;;  %v31_v42 = vld [vmem:[%s845_s0 + $0x20] sm:$0xff]  ;;  %v47_v46 = vmul.f32 %v494_v20, %v32_v43  ;;  %v33_v49 = vld [vmem:[%s845_s0 + $0x30] sm:$0xff]  ;;  %v34_v50 = vld [vmem:[%s845_s0 + $0x38] sm:$0xff] }
   0xd   :  { %v754_v40 = vadd.f32 %v495_v23, %v44_v38  ;;  %v756_v41 = vadd.f32 %v495_v23, %v45_v39  ;;  %v46_v45 = vmul.f32 %v494_v20, %v31_v42  ;;  %v48_v52 = vmul.f32 %v494_v20, %v33_v49  ;;  %v604_v57 = vld [vmem:[%s844_s5 + $0x50] sm:$0xff]   ;;  %v606_v59 = vld [vmem:[%s844_s5 + $0x48] sm:$0xff]   ;;  %v608_v61 = vld [vmem:[%s844_s5 + $0x40] sm:$0xff]  }
   0xe   :  { %v769_v48 = vadd.f32 %v495_v23, %v47_v46  ;;  %v49_v53 = vmul.f32 %v494_v20, %v34_v50  ;;  %v605_v58 = vld [vmem:[%s844_s5 + $0x10] sm:$0xff]   ;;  %v607_v60 = vld [vmem:[%s844_s5 + $0x8] sm:$0xff]   ;;  %v609_v62 = vld [vmem:[%s844_s5] sm:$0xff]  }
   0xf   :  { %184 = vmatpush1.bf16.msra.mxu0 %v581_v8  ;;  %534 = vmatpush3.bf16.msra.mxu1 %v599_v24  ;;  %v66_v44 = vpack.c.bf16 %v756_v41, %v754_v40  ;;  %v767_v47 = vadd.f32 %v495_v23, %v46_v45  ;;  %v780_v54 = vadd.f32 %v495_v23, %v48_v52  ;;  %v85_v3 = vld [vmem:[%s848_s4] sm:$0x3] }
  0x10   :  { %185 = vmatprep.subr.bf16.mxu0 %v582_v9  ;;  %535 = vmatprep.subr.bf16.mxu1 %v600_v28  ;;  %v782_v55 = vadd.f32 %v495_v23, %v49_v53  ;;  %v90_v6 = vrot.slane %v85_v3, %v89_v2 }
  0x11   :  { %v67_v51 = vpack.c.bf16 %v769_v48, %v767_v47 }
  0x12   :  { %v68_v56 = vpack.c.bf16 %v782_v55, %v780_v54 }
  0x13   :  { %186 = vmatpush1.bf16.msra.mxu0 %v584_v10  ;;  %536 = vmatpush3.bf16.msra.mxu1 %v601_v29 }
  0x14   :  { %187 = vmatprep.subr.bf16.mxu0 %v585_v11  ;;  %537 = vmatprep.subr.bf16.mxu1 %v602_v30 }
  0x17   :  { %188 = vmatpush1.bf16.msra.mxu0 %v587_v15  ;;  %538 = vmatpush3.bf16.msra.mxu1 %v603_v36 }
  0x18   :  { %189 = vmatprep.subr.bf16.mxu0 %v588_v21  ;;  %539 = vmatprep.subr.bf16.mxu1 %v604_v57 }
  0x1b   :  { %190 = vmatpush1.bf16.msra.mxu0 %v590_v22  ;;  %540 = vmatpush3.bf16.msra.mxu1 %v605_v58 }
  0x1c   :  { %191 = vmatprep.subr.bf16.mxu0 %v591_v25  ;;  %541 = vmatprep.subr.bf16.mxu1 %v606_v59 }
  0x1f   :  { %192 = vmatpush1.bf16.msra.mxu0 %v593_v31  ;;  %542 = vmatpush3.bf16.msra.mxu1 %v607_v60 }
  0x20   :  { %543 = vmatprep.subr.bf16.mxu1 %v608_v61 }
  0x22   :  { %210 = vmatmul.mubr.bf16.vlgmr.msra.gmra.mxu0 %v65_v37 }
  0x23   :  { %219 = vmatprep.mubr.bf16.mxu0 %v610_v1  ;;  %544 = vmatpush3.bf16.msra.mxu1 %v609_v62 }
  0x2a   :  { %220 = vmatmul.mubr.bf16.gmra.mxu0 %v66_v44 }
  0x2b   :  { %229 = vmatprep.mubr.bf16.mxu0 %v610_v1 }
  0x32   :  { %230 = vmatmul.mubr.bf16.gmra.mxu0 %v67_v51 }
  0x33   :  { %239 = vmatprep.mubr.bf16.mxu0 %v610_v1  ;;  %v93_v1 = vsub.s32 1, %v88_v0 }
  0x35   :  { %v94_v5 = vrot.slane %v85_v3, %v93_v1 }
  0x3a   :  { %240 = vmatmul.mubr.bf16.gmra.mxu0 %v68_v56 }
  0xe2   :  { %v211_v4 = vpop.f32.mrf.mxu0 }
  0xe3   :  { %v212_v11 = vadd.f32 %v211_v4, %v90_v6 }
  0xe4   :  { %v213_v7 = vpop.f32.mrf.mxu0 }
  0xe5   :  { %v214_v9 = vadd.f32 %v213_v7, %v94_v5  ;;  %v250_v18 = vmax.f32 %v212_v11, 0.0 }
  0xe6   :  { %v215_v8 = vpop.f32.mrf.mxu0 }
  0xe7   :  { %v216_v10 = vadd.f32 %v215_v8, %v90_v6  ;;  %v251_v16 = vmax.f32 %v214_v9, 0.0  ;;  %v512_v9 = vld [vmem:[%s849_s6] ss:$0 sm:$0xff] }
  0xe8   :  { %v217_v12 = vpop.f32.mrf.mxu0 }
  0xe9   :  { %v218_v13 = vadd.f32 %v217_v12, %v94_v5  ;;  %v252_v14 = vmax.f32 %v216_v10, 0.0 }
  0xea   :  { %v221_v15 = vpop.f32.mrf.mxu0 }
  0xeb   :  { %v253_v17 = vmax.f32 %v218_v13, 0.0  ;;  %v266_v21 = vpack.c.bf16 %v252_v14, %v250_v18  ;;  %v222_v25 = vadd.f32 %v221_v15, %v90_v6 }
  0xec   :  { %v223_v19 = vpop.f32.mrf.mxu0 }
  0xed   :  { %v267_v20 = vpack.c.bf16 %v253_v17, %v251_v16  ;;  %v224_v23 = vadd.f32 %v223_v19, %v94_v5  ;;  %v254_v32 = vmax.f32 %v222_v25, 0.0 }
  0xee   :  { %v225_v22 = vpop.f32.mrf.mxu0 }
  0xef   :  { %v226_v24 = vadd.f32 %v225_v22, %v90_v6  ;;  %441 = vmatprep.mubr.bf16.mxu1 %v267_v20  ;;  %v255_v30 = vmax.f32 %v224_v23, 0.0 }
  0xf0   :  { %v227_v26 = vpop.f32.mrf.mxu0  ;;  %442 = vmatmul.mubr.bf16.vlgmr.msra.gmra.mxu1 %v266_v21 }
  0xf1   :  { %v228_v27 = vadd.f32 %v227_v26, %v94_v5  ;;  %v256_v28 = vmax.f32 %v226_v24, 0.0 }
  0xf2   :  { %v231_v29 = vpop.f32.mrf.mxu0 }
  0xf3   :  { %v257_v31 = vmax.f32 %v228_v27, 0.0  ;;  %v268_v37 = vpack.c.bf16 %v256_v28, %v254_v32  ;;  %v232_v43 = vadd.f32 %v231_v29, %v90_v6 }
  0xf4   :  { %v233_v33 = vpop.f32.mrf.mxu0 }
  0xf5   :  { %v269_v36 = vpack.c.bf16 %v257_v31, %v255_v30  ;;  %v234_v39 = vadd.f32 %v233_v33, %v94_v5  ;;  %v258_v52 = vmax.f32 %v232_v43, 0.0 }
  0xf6   :  { %v235_v38 = vpop.f32.mrf.mxu0 }
  0xf7   :  { %v236_v42 = vadd.f32 %v235_v38, %v90_v6  ;;  %449 = vmatprep.mubr.bf16.mxu1 %v269_v36  ;;  %v259_v50 = vmax.f32 %v234_v39, 0.0 }
  0xf8   :  { %v237_v44 = vpop.f32.mrf.mxu0  ;;  %450 = vmatmul.mubr.bf16.gmra.mxu1 %v268_v37 }
  0xf9   :  { %v238_v45 = vadd.f32 %v237_v44, %v94_v5  ;;  %v260_v46 = vmax.f32 %v236_v42, 0.0 }
  0xfa   :  { %v241_v49 = vpop.f32.mrf.mxu0 }
  0xfb   :  { %v261_v51 = vmax.f32 %v238_v45, 0.0  ;;  %v270_v57 = vpack.c.bf16 %v260_v46, %v258_v52  ;;  %v242_v61 = vadd.f32 %v241_v49, %v90_v6 }
  0xfc   :  { %v243_v53 = vpop.f32.mrf.mxu0 }
  0xfd   :  { %v271_v56 = vpack.c.bf16 %v261_v51, %v259_v50  ;;  %v244_v59 = vadd.f32 %v243_v53, %v94_v5  ;;  %v262_v3 = vmax.f32 %v242_v61, 0.0 }
  0xfe   :  { %v245_v58 = vpop.f32.mrf.mxu0 }
  0xff   :  { %v246_v60 = vadd.f32 %v245_v58, %v90_v6  ;;  %457 = vmatprep.mubr.bf16.mxu1 %v271_v56  ;;  %v263_v1 = vmax.f32 %v244_v59, 0.0 }
 0x100   :  { %v247_v62 = vpop.f32.mrf.mxu0  ;;  %458 = vmatmul.mubr.bf16.gmra.mxu1 %v270_v57 }
 0x101   :  { %v248_v63 = vadd.f32 %v247_v62, %v94_v5  ;;  %v264_v0 = vmax.f32 %v246_v60, 0.0 }
 0x103   :  { %v265_v2 = vmax.f32 %v248_v63, 0.0  ;;  %v272_v7 = vpack.c.bf16 %v264_v0, %v262_v3 }
 0x105   :  { %v273_v4 = vpack.c.bf16 %v265_v2, %v263_v1 }
 0x107   :  { %465 = vmatprep.mubr.bf16.mxu1 %v273_v4 }
 0x108   :  { %466 = vmatmul.mubr.bf16.gmra.mxu1 %v272_v7 }
 0x1b0   :  { %v545_v8 = vpop.f32.mrf.mxu1 }
 0x1b2   :  { %v546_v10 = vpop.f32.mrf.mxu1 }
 0x1b3   :  { %v547_v11 = vadd.f32 %v546_v10, %v545_v8 }
 0x1b4   :  { %v548_v12 = vpop.f32.mrf.mxu1 }
 0x1b5   :  { %v444_v6 = vadd.f32 %v547_v11, %v512_v9 }
 0x1b6   :  { %v549_v13 = vpop.f32.mrf.mxu1 }
 0x1b7   :  { %v474_v5 = vadd.f32 %v444_v6, %v745_v34  ;;  %v550_v14 = vadd.f32 %v549_v13, %v548_v12 }
 0x1b8   :  { %v551_v15 = vpop.f32.mrf.mxu1 }
 0x1b9   :  { %482 = vst [vmem:[%s850_s7] sm:$0xff] %v474_v5  ;;  %v447_v16 = vadd.f32 %v550_v14, %v512_v9 }
 0x1ba   :  { %v552_v17 = vpop.f32.mrf.mxu1 }
 0x1bb   :  { %v475_v18 = vadd.f32 %v447_v16, %v747_v35  ;;  %v553_v19 = vadd.f32 %v552_v17, %v551_v15 }
 0x1bc   :  { %v554_v20 = vpop.f32.mrf.mxu1 }
 0x1bd   :  { %483 = vst [vmem:[%s850_s7 + $0x8] sm:$0xff] %v475_v18  ;;  %v452_v21 = vadd.f32 %v553_v19, %v512_v9 }
 0x1be   :  { %v555_v22 = vpop.f32.mrf.mxu1 }
 0x1bf   :  { %v476_v34 = vadd.f32 %v452_v21, %v754_v40  ;;  %v556_v23 = vadd.f32 %v555_v22, %v554_v20 }
 0x1c0   :  { %v557_v24 = vpop.f32.mrf.mxu1 }
 0x1c1   :  { %484 = vst [vmem:[%s850_s7 + $0x10] sm:$0xff] %v476_v34  ;;  %v455_v25 = vadd.f32 %v556_v23, %v512_v9 }
 0x1c2   :  { %v558_v26 = vpop.f32.mrf.mxu1 }
 0x1c3   :  { %v477_v35 = vadd.f32 %v455_v25, %v756_v41  ;;  %v559_v27 = vadd.f32 %v558_v26, %v557_v24 }
 0x1c4   :  { %v560_v28 = vpop.f32.mrf.mxu1 }
 0x1c5   :  { %485 = vst [vmem:[%s850_s7 + $0x18] sm:$0xff] %v477_v35  ;;  %v460_v29 = vadd.f32 %v559_v27, %v512_v9 }
 0x1c6   :  { %v561_v30 = vpop.f32.mrf.mxu1 }
 0x1c7   :  { %v478_v40 = vadd.f32 %v460_v29, %v767_v47  ;;  %v562_v31 = vadd.f32 %v561_v30, %v560_v28 }
 0x1c8   :  { %v563_v32 = vpop.f32.mrf.mxu1 }
 0x1c9   :  { %486 = vst [vmem:[%s850_s7 + $0x20] sm:$0xff] %v478_v40  ;;  %v463_v33 = vadd.f32 %v562_v31, %v512_v9 }
 0x1ca   :  { %v564_v36 = vpop.f32.mrf.mxu1 }
 0x1cb   :  { %v479_v41 = vadd.f32 %v463_v33, %v769_v48  ;;  %v565_v37 = vadd.f32 %v564_v36, %v563_v32 }
 0x1cc   :  { %v566_v38 = vpop.f32.mrf.mxu1 }
 0x1cd   :  { %487 = vst [vmem:[%s850_s7 + $0x28] sm:$0xff] %v479_v41  ;;  %v468_v39 = vadd.f32 %v565_v37, %v512_v9 }
 0x1ce   :  { %v567_v42 = vpop.f32.mrf.mxu1 }
 0x1cf   :  { %v480_v47 = vadd.f32 %v468_v39, %v780_v54  ;;  %v568_v43 = vadd.f32 %v567_v42, %v566_v38 }
 0x1d1   :  { %488 = vst [vmem:[%s850_s7 + $0x30] sm:$0xff] %v480_v47  ;;  %v471_v44 = vadd.f32 %v568_v43, %v512_v9 }
 0x1d3   :  { %v481_v45 = vadd.f32 %v471_v44, %v782_v55 }
 0x1d5   :  { %489 = vst [vmem:[%s850_s7 + $0x38] sm:$0xff] %v481_v45 }

</bundles_post_ra>
